<compile_context>
chip_gen: v6e
topology: v6e:2x2x1
jax: 0.10.0
libtpu: 0.0.40
codegen_flags: <defaults>
</compile_context>

<pallas_src>
import functools

import jax
import jax.numpy as jnp
from jax.experimental import pallas as pl
from jax.experimental.pallas import tpu as pltpu


def _se_bottleneck_kernel(x_ref, w1_ref, b1_ref, wl1_ref, wl2_ref,
                          w2_ref, b2_ref, out_ref, pad_ref,
                          *, H, W, add, block_n):
    HW = H * W
    BHW = block_n * HW
    C1 = w1_ref.shape[0]
    Cm = w1_ref.shape[1]
    C2 = w2_ref.shape[3]

    w1 = w1_ref[...]        # (C1, Cm) bf16, BN1 scale folded in
    b1 = b1_ref[...]        # (1,  Cm) f32,  BN1 shift
    b2 = b2_ref[...]        # (1,  C2) f32,  BN2 shift

    def conv1x1_silu(z2d):  # z2d: (BHW, C1) bf16 -> (BHW, Cm) f32
        y = jnp.dot(z2d, w1, preferred_element_type=jnp.float32) + b1
        return y * jax.nn.sigmoid(y)            # SiLU

    # cv1: 1x1 conv (+ folded BN1) + SiLU -- one batched matmul for the whole block.
    x2d = x_ref[...].reshape(BHW, C1)           # (BHW, C1) bf16, channels on lanes
    x1 = conv1x1_silu(x2d)                      # (BHW, Cm) f32

    # SE gate: per-image global avg-pool + two tiny bias-free linears, batched
    # across the block (hid is tiny, so these dots are negligible MXU work).
    x1_3d = x1.reshape(block_n, HW, Cm)
    pooled = jnp.mean(x1_3d, axis=1)                                     # (block_n, Cm)
    h1 = jnp.maximum(
        jnp.dot(pooled, wl1_ref[...], preferred_element_type=jnp.float32), 0.0)
    gate = jax.nn.sigmoid(
        jnp.dot(h1, wl2_ref[...], preferred_element_type=jnp.float32))   # (block_n, Cm)
    x_se = (x1_3d * gate[:, None, :]).reshape(BHW, Cm)                   # f32

    if add:
        z = x_se
    else:
        # cv2(cv1(x_se)) branch of the module (requires Cm == C1).
        z = conv1x1_silu(x_se.astype(jnp.bfloat16))

    # cv2: 3x3 same-padded conv (+ folded BN2) + SiLU as 9 shifted batched matmuls
    # over a zero-padded bf16 scratch slab. The border must be zero every grid step
    # (scratch persistence across steps is not relied on: the "parallel" axis may be
    # sharded across TensorCores); the interior is fully overwritten.
    pad_ref[...] = jnp.zeros_like(pad_ref)
    pad_ref[:, 1:H + 1, 1:W + 1, :] = z.astype(jnp.bfloat16).reshape(
        block_n, H, W, Cm)
    acc = jnp.zeros((BHW, C2), jnp.float32)
    for ky in range(3):                         # static 3x3 taps, fully unrolled
        for kx in range(3):
            tap = pad_ref[:, ky:ky + H, kx:kx + W, :].reshape(BHW, Cm)
            acc = acc + jnp.dot(tap, w2_ref[ky, kx],
                                preferred_element_type=jnp.float32)
    y2 = acc + b2
    y2 = y2 * jax.nn.sigmoid(y2)                                         # SiLU

    out = x_se + y2 if add else y2
    out_ref[...] = out.reshape(block_n, HW, C2).astype(out_ref.dtype)


def _vmem_bytes_per_step(block_n, H, W, C1, Cm, C2, hid):
    """Rough per-grid-step VMEM working set (bytes), double-buffering included."""
    hw = H * W
    blk = block_n * hw * (C1 + C2) * 2                       # bf16 in + out blocks
    weights = (C1 * Cm + 9 * Cm * C2) * 2 + (Cm + C2 + 2 * hid * Cm) * 4
    pad = block_n * (H + 2) * (W + 2) * Cm * 2               # scratch slab
    temps = block_n * hw * (2 * C1 + 12 * Cm + 8 * C2)       # live f32/bf16 temporaries
    return 2 * (blk + weights) + pad + temps


def _choose_block_n(N, H, W, C1, Cm, C2, hid, budget=8 * 1024 * 1024):
    """Largest divisor of N under the VMEM budget, keeping >=2 grid steps (v7x)."""
    best = 1
    for bn in range(1, N + 1):
        if N % bn:
            continue
        if N >= 2 and N // bn < 2:      # leave work for both TensorCores
            continue
        if _vmem_bytes_per_step(bn, H, W, C1, Cm, C2, hid) <= budget:
            best = bn
    return best


def se_bottleneck(x, params, *, add=True, block_n=None):
    """x: (N, C1, H, W) float (NCHW, like PyTorch). Returns (N, C2, H, W) float32."""
    N, C1, H, W = x.shape
    w1, b1 = params["w1"], params["b1"]
    wl1t, wl2t = params["wl1t"], params["wl2t"]
    w2, b2 = params["w2"], params["b2"]
    Cm, C2, hid = w1.shape[1], w2.shape[3], wl1t.shape[1]
    HW = H * W

    # Lane-dense, spatially pre-flattened layout + bf16 HBM traffic
    # (layout plumbing lives in the wrapper, not the kernel).
    x_flat = jnp.transpose(x, (0, 2, 3, 1)).reshape(N, HW, C1).astype(jnp.bfloat16)

    if block_n is None:
        block_n = _choose_block_n(N, H, W, C1, Cm, C2, hid)
    assert N % block_n == 0
    grid = (N // block_n,)

    est = _vmem_bytes_per_step(block_n, H, W, C1, Cm, C2, hid)
    vmem_limit = int(min(64 * 1024 * 1024, max(32 * 1024 * 1024, 4 * est)))

    full = lambda shape: pl.BlockSpec(shape, lambda n: (0,) * len(shape))
    kernel = functools.partial(_se_bottleneck_kernel,
                               H=H, W=W, add=add, block_n=block_n)

    out = pl.pallas_call(
        kernel,
        out_shape=jax.ShapeDtypeStruct((N, HW, C2), jnp.bfloat16),
        grid_spec=pltpu.PrefetchScalarGridSpec(
            num_scalar_prefetch=0,
            grid=grid,
            in_specs=[
                pl.BlockSpec((block_n, HW, C1), lambda n: (n, 0, 0)),  # x
                full((C1, Cm)),        # w1 (BN1 scale folded, bf16)
                full((1, Cm)),         # b1 (BN1 shift, f32)
                full((Cm, hid)),       # l1 weight^T (f32)
                full((hid, Cm)),       # l2 weight^T (f32)
                full((3, 3, Cm, C2)),  # w2 (BN2 scale folded, bf16)
                full((1, C2)),         # b2 (BN2 shift, f32)
            ],
            out_specs=pl.BlockSpec((block_n, HW, C2), lambda n: (n, 0, 0)),
            scratch_shapes=[
                pltpu.VMEM((block_n, H + 2, W + 2, Cm), jnp.bfloat16)],
        ),
        compiler_params=pltpu.CompilerParams(
            dimension_semantics=("parallel",),
            vmem_limit_bytes=vmem_limit),
    )(x_flat, w1, b1, wl1t, wl2t, w2, b2)

    # Back to NCHW f32 (glue).
    out = out.reshape(N, H, W, C2).astype(jnp.float32)
    return jnp.transpose(out, (0, 3, 1, 2))


def make_params(key, c1, c2, e=1.0):
    """Random PyTorch-style weights + inference BN stats, folded for the kernel."""
    c_ = int(c2 * e)
    assert c_ == c1, "seBottleneck's SE linears require int(c2 * e) == c1"
    hid = max(1, c1 // 4)
    eps = 1e-5
    ks = jax.random.split(key, 12)

    # cv1: Conv2d(c1, c_, 1, bias=False) + BN(c_)
    w_cv1 = jax.random.normal(ks[0], (c_, c1), jnp.float32) / (c1 ** 0.5)
    g1 = 1.0 + 0.1 * jax.random.normal(ks[1], (c_,), jnp.float32)
    be1 = 0.1 * jax.random.normal(ks[2], (c_,), jnp.float32)
    mu1 = 0.1 * jax.random.normal(ks[3], (c_,), jnp.float32)
    var1 = jnp.abs(1.0 + 0.1 * jax.random.normal(ks[4], (c_,), jnp.float32))
    # cv2: Conv2d(c_, c2, 3, padding=1, bias=False, groups=1) + BN(c2)
    # TODO(synk): grouped 3x3 conv (g > 1) not implemented; module default g=1 only.
    w_cv2 = jax.random.normal(ks[5], (c2, c_, 3, 3), jnp.float32) / ((9 * c_) ** 0.5)
    g2 = 1.0 + 0.1 * jax.random.normal(ks[6], (c2,), jnp.float32)
    be2 = 0.1 * jax.random.normal(ks[7], (c2,), jnp.float32)
    mu2 = 0.1 * jax.random.normal(ks[8], (c2,), jnp.float32)
    var2 = jnp.abs(1.0 + 0.1 * jax.random.normal(ks[9], (c2,), jnp.float32))
    # SE linears (bias=False), PyTorch (out, in) layout.
    w_l1 = jax.random.normal(ks[10], (hid, c1), jnp.float32) / (c1 ** 0.5)
    w_l2 = jax.random.normal(ks[11], (c1, hid), jnp.float32) / (hid ** 0.5)

    s1 = g1 / jnp.sqrt(var1 + eps); sh1 = be1 - mu1 * s1
    s2 = g2 / jnp.sqrt(var2 + eps); sh2 = be2 - mu2 * s2

    return {
        "w1": (w_cv1 * s1[:, None]).T.astype(jnp.bfloat16),                 # (c1, c_)
        "b1": sh1.reshape(1, c_).astype(jnp.float32),
        "wl1t": w_l1.T.astype(jnp.float32),                                 # (c_, hid)
        "wl2t": w_l2.T.astype(jnp.float32),                                 # (hid, c_)
        "w2": (jnp.transpose(w_cv2, (2, 3, 1, 0)) * s2).astype(jnp.bfloat16),  # (3,3,c_,c2)
        "b2": sh2.reshape(1, c2).astype(jnp.float32),
    }


def se_bottleneck_ref(x, p, *, add=True):
    """Pure-JAX reference following the PyTorch forward, using the same folded
    bf16 parameters and bf16 input quantization as the kernel."""
    N, C1, H, W = x.shape
    C2 = p["w2"].shape[3]
    xb = jnp.transpose(x, (0, 2, 3, 1)).astype(jnp.bfloat16).astype(jnp.float32)
    w1 = p["w1"].astype(jnp.float32)
    w2 = p["w2"].astype(jnp.float32)

    def conv1x1_silu(z):
        y = jnp.einsum("nhwc,cd->nhwd", z, w1) + p["b1"]
        return y * jax.nn.sigmoid(y)

    x1 = conv1x1_silu(xb)                                            # (N,H,W,Cm)
    pooled = jnp.mean(x1, axis=(1, 2))                               # (N, Cm)
    h1 = jnp.maximum(pooled @ p["wl1t"], 0.0)                        # (N, hid)
    gate = jax.nn.sigmoid(h1 @ p["wl2t"])                            # (N, Cm)
    x_se = x1 * gate[:, None, None, :]

    z = x_se if add else conv1x1_silu(x_se.astype(jnp.bfloat16).astype(jnp.float32))
    zb = z.astype(jnp.bfloat16).astype(jnp.float32)
    zp = jnp.pad(zb, ((0, 0), (1, 1), (1, 1), (0, 0)))
    acc = jnp.zeros((N, H, W, C2), jnp.float32)
    for ky in range(3):
        for kx in range(3):
            acc = acc + jnp.einsum("nhwc,cd->nhwd",
                                   zp[:, ky:ky + H, kx:kx + W, :], w2[ky, kx])
    y2 = acc + p["b2"]
    y2 = y2 * jax.nn.sigmoid(y2)
    out = x_se + y2 if add else y2
    return jnp.transpose(out, (0, 3, 1, 2))


if __name__ == "__main__":
    key = jax.random.PRNGKey(0)
    kx, kp = jax.random.split(key)

    # Shapes consistent with the module's forward: add=True needs c1 == c2 and the
    # SE linears need int(c2 * e) == c1, hence e = 1.0. hid = c1 // 4 = 4.
    N, C, H, W = 2, 16, 16, 16
    x = jax.random.normal(kx, (N, C, H, W), jnp.float32)
    params = make_params(kp, c1=C, c2=C, e=1.0)

    out = se_bottleneck(x, params, add=True)
    out = jax.block_until_ready(out)

    ref = se_bottleneck_ref(x, params, add=True)
    assert out.shape == (N, C, H, W)
    max_err = float(jnp.max(jnp.abs(out - ref)))
    assert jnp.allclose(out, ref, rtol=2e-2, atol=2e-2), \
        f"mismatch vs reference (max abs err {max_err})"

    print("KERNEL_OK")
</pallas_src>

<mosaic_0001>
module attributes {stable_mosaic.version = 11 : i64} {
  func.func @_se_bottleneck_kernel(%arg0: i32, %arg1: memref<1x256x16xbf16, #tpu.memory_space<vmem>>, %arg2: memref<16x16xbf16, #tpu.memory_space<vmem>>, %arg3: memref<1x16xf32, #tpu.memory_space<vmem>>, %arg4: memref<16x4xf32, #tpu.memory_space<vmem>>, %arg5: memref<4x16xf32, #tpu.memory_space<vmem>>, %arg6: memref<3x3x16x16xbf16, #tpu.memory_space<vmem>>, %arg7: memref<1x16xf32, #tpu.memory_space<vmem>>, %arg8: memref<1x256x16xbf16, #tpu.memory_space<vmem>>, %arg9: memref<1x18x18x16xbf16, #tpu.memory_space<vmem>>) attributes {dimension_semantics = [#tpu.dimension_semantics<parallel>], iteration_bounds = array<i64: 2>, scalar_prefetch = 0 : i64, scratch_operands = 1 : i64, tpu.core_type = #tpu.core_type<tc>, window_params = [{transform_indices = @transform_0, window_bounds = array<i64: 1, 256, 16>}, {pipeline_mode = #tpu.pipeline_mode<synchronous>, transform_indices = @transform_1, window_bounds = array<i64: 16, 16>}, {pipeline_mode = #tpu.pipeline_mode<synchronous>, transform_indices = @transform_2, window_bounds = array<i64: 1, 16>}, {pipeline_mode = #tpu.pipeline_mode<synchronous>, transform_indices = @transform_3, window_bounds = array<i64: 16, 4>}, {pipeline_mode = #tpu.pipeline_mode<synchronous>, transform_indices = @transform_4, window_bounds = array<i64: 4, 16>}, {pipeline_mode = #tpu.pipeline_mode<synchronous>, transform_indices = @transform_5, window_bounds = array<i64: 3, 3, 16, 16>}, {pipeline_mode = #tpu.pipeline_mode<synchronous>, transform_indices = @transform_6, window_bounds = array<i64: 1, 16>}, {transform_indices = @transform_7, window_bounds = array<i64: 1, 256, 16>}]} {
    %c0 = arith.constant 0 : index
    %c0_0 = arith.constant 0 : index
    %0 = vector.load %arg2[%c0, %c0_0] : memref<16x16xbf16, #tpu.memory_space<vmem>>, vector<16x16xbf16>
    %c0_1 = arith.constant 0 : index
    %c0_2 = arith.constant 0 : index
    %1 = vector.load %arg3[%c0_1, %c0_2] : memref<1x16xf32, #tpu.memory_space<vmem>>, vector<1x16xf32>
    %c0_3 = arith.constant 0 : index
    %c0_4 = arith.constant 0 : index
    %2 = vector.load %arg7[%c0_3, %c0_4] : memref<1x16xf32, #tpu.memory_space<vmem>>, vector<1x16xf32>
    %c0_5 = arith.constant 0 : index
    %c0_6 = arith.constant 0 : index
    %c0_7 = arith.constant 0 : index
    %3 = vector.load %arg1[%c0_5, %c0_6, %c0_7] : memref<1x256x16xbf16, #tpu.memory_space<vmem>>, vector<1x256x16xbf16>
    %4 = vector.shape_cast %3 : vector<1x256x16xbf16> to vector<256x16xbf16>
    %cst = arith.constant dense<0.000000e+00> : vector<256x16xf32>
    %5 = tpu.matmul %4, %0, %cst {dimension_numbers = #tpu.dot_dimension_numbers<[1], [0], [0], [1], [0, 0, 1, 1], [], []>} : vector<256x16xbf16>, vector<16x16xbf16>, vector<256x16xf32> -> vector<256x16xf32>
    %6 = vector.broadcast %1 : vector<1x16xf32> to vector<256x16xf32>
    %7 = arith.addf %5, %6 : vector<256x16xf32>
    %8 = arith.negf %7 : vector<256x16xf32>
    %9 = math.exp %8 : vector<256x16xf32>
    %cst_8 = arith.constant 1.000000e+00 : f32
    %10 = vector.broadcast %cst_8 : f32 to vector<256x16xf32>
    %11 = arith.addf %10, %9 : vector<256x16xf32>
    %12 = arith.divf %10, %11 : vector<256x16xf32>
    %13 = arith.mulf %7, %12 : vector<256x16xf32>
    %14 = vector.shape_cast %13 : vector<256x16xf32> to vector<1x256x16xf32>
    %cst_9 = arith.constant dense<0.000000e+00> : vector<1x16xf32>
    %15 = vector.multi_reduction <add>, %14, %cst_9 [1] : vector<1x256x16xf32> to vector<1x16xf32>
    %cst_10 = arith.constant 2.560000e+02 : f32
    %16 = vector.broadcast %cst_10 : f32 to vector<1x16xf32>
    %17 = arith.divf %15, %16 : vector<1x16xf32>
    %c0_11 = arith.constant 0 : index
    %c0_12 = arith.constant 0 : index
    %18 = vector.load %arg4[%c0_11, %c0_12] : memref<16x4xf32, #tpu.memory_space<vmem>>, vector<16x4xf32>
    %cst_13 = arith.constant dense<0.000000e+00> : vector<1x4xf32>
    %19 = tpu.matmul %17, %18, %cst_13 {dimension_numbers = #tpu.dot_dimension_numbers<[1], [0], [0], [1], [0, 0, 1, 1], [], []>} : vector<1x16xf32>, vector<16x4xf32>, vector<1x4xf32> -> vector<1x4xf32>
    %cst_14 = arith.constant 0.000000e+00 : f32
    %20 = vector.broadcast %cst_14 : f32 to vector<1x4xf32>
    %21 = arith.maximumf %19, %20 : vector<1x4xf32>
    %c0_15 = arith.constant 0 : index
    %c0_16 = arith.constant 0 : index
    %22 = vector.load %arg5[%c0_15, %c0_16] : memref<4x16xf32, #tpu.memory_space<vmem>>, vector<4x16xf32>
    %cst_17 = arith.constant dense<0.000000e+00> : vector<1x16xf32>
    %23 = tpu.matmul %21, %22, %cst_17 {dimension_numbers = #tpu.dot_dimension_numbers<[1], [0], [0], [1], [0, 0, 1, 1], [], []>} : vector<1x4xf32>, vector<4x16xf32>, vector<1x16xf32> -> vector<1x16xf32>
    %24 = arith.negf %23 : vector<1x16xf32>
    %25 = math.exp %24 : vector<1x16xf32>
    %cst_18 = arith.constant 1.000000e+00 : f32
    %26 = vector.broadcast %cst_18 : f32 to vector<1x16xf32>
    %27 = arith.addf %26, %25 : vector<1x16xf32>
    %28 = arith.divf %26, %27 : vector<1x16xf32>
    %29 = vector.shape_cast %28 : vector<1x16xf32> to vector<1x1x16xf32>
    %30 = vector.broadcast %29 : vector<1x1x16xf32> to vector<1x256x16xf32>
    %31 = arith.mulf %14, %30 : vector<1x256x16xf32>
    %32 = vector.shape_cast %31 : vector<1x256x16xf32> to vector<256x16xf32>
    %cst_19 = arith.constant 0.000000e+00 : bf16
    %33 = vector.broadcast %cst_19 : bf16 to vector<1x18x18x16xbf16>
    %c0_20 = arith.constant 0 : index
    %c0_21 = arith.constant 0 : index
    %c0_22 = arith.constant 0 : index
    %c0_23 = arith.constant 0 : index
    %34 = vector.load %arg9[%c0_20, %c0_21, %c0_22, %c0_23] : memref<1x18x18x16xbf16, #tpu.memory_space<vmem>>, vector<1x18x18x16xbf16>
    tpu.vector_store %arg9[%c0_20, %c0_21, %c0_22, %c0_23], %33 {strides = array<i32>} : memref<1x18x18x16xbf16, #tpu.memory_space<vmem>>, vector<1x18x18x16xbf16>,
    %35 = arith.truncf %32 : vector<256x16xf32> to vector<256x16xbf16>
    %36 = vector.shape_cast %35 : vector<256x16xbf16> to vector<1x16x16x16xbf16>
    %c0_24 = arith.constant 0 : index
    %c1 = arith.constant 1 : index
    %c1_25 = arith.constant 1 : index
    %c0_26 = arith.constant 0 : index
    %37 = vector.load %arg9[%c0_24, %c1, %c1_25, %c0_26] : memref<1x18x18x16xbf16, #tpu.memory_space<vmem>>, vector<1x16x16x16xbf16>
    tpu.vector_store %arg9[%c0_24, %c1, %c1_25, %c0_26], %36 {strides = array<i32>} : memref<1x18x18x16xbf16, #tpu.memory_space<vmem>>, vector<1x16x16x16xbf16>,
    %cst_27 = arith.constant 0.000000e+00 : f32
    %38 = vector.broadcast %cst_27 : f32 to vector<256x16xf32>
    %c0_28 = arith.constant 0 : index
    %c0_29 = arith.constant 0 : index
    %c0_30 = arith.constant 0 : index
    %c0_31 = arith.constant 0 : index
    %39 = vector.load %arg9[%c0_28, %c0_29, %c0_30, %c0_31] : memref<1x18x18x16xbf16, #tpu.memory_space<vmem>>, vector<1x16x16x16xbf16>
    %40 = vector.shape_cast %39 : vector<1x16x16x16xbf16> to vector<256x16xbf16>
    %c0_32 = arith.constant 0 : index
    %c0_33 = arith.constant 0 : index
    %c0_34 = arith.constant 0 : index
    %c0_35 = arith.constant 0 : index
    %41 = vector.load %arg6[%c0_32, %c0_33, %c0_34, %c0_35] : memref<3x3x16x16xbf16, #tpu.memory_space<vmem>>, vector<1x1x16x16xbf16>
    %42 = vector.shape_cast %41 : vector<1x1x16x16xbf16> to vector<16x16xbf16>
    %cst_36 = arith.constant dense<0.000000e+00> : vector<256x16xf32>
    %43 = tpu.matmul %40, %42, %cst_36 {dimension_numbers = #tpu.dot_dimension_numbers<[1], [0], [0], [1], [0, 0, 1, 1], [], []>} : vector<256x16xbf16>, vector<16x16xbf16>, vector<256x16xf32> -> vector<256x16xf32>
    %44 = arith.addf %38, %43 : vector<256x16xf32>
    %c0_37 = arith.constant 0 : index
    %c0_38 = arith.constant 0 : index
    %c1_39 = arith.constant 1 : index
    %c0_40 = arith.constant 0 : index
    %45 = vector.load %arg9[%c0_37, %c0_38, %c1_39, %c0_40] : memref<1x18x18x16xbf16, #tpu.memory_space<vmem>>, vector<1x16x16x16xbf16>
    %46 = vector.shape_cast %45 : vector<1x16x16x16xbf16> to vector<256x16xbf16>
    %c0_41 = arith.constant 0 : index
    %c1_42 = arith.constant 1 : index
    %c0_43 = arith.constant 0 : index
    %c0_44 = arith.constant 0 : index
    %47 = vector.load %arg6[%c0_41, %c1_42, %c0_43, %c0_44] : memref<3x3x16x16xbf16, #tpu.memory_space<vmem>>, vector<1x1x16x16xbf16>
    %48 = vector.shape_cast %47 : vector<1x1x16x16xbf16> to vector<16x16xbf16>
    %cst_45 = arith.constant dense<0.000000e+00> : vector<256x16xf32>
    %49 = tpu.matmul %46, %48, %cst_45 {dimension_numbers = #tpu.dot_dimension_numbers<[1], [0], [0], [1], [0, 0, 1, 1], [], []>} : vector<256x16xbf16>, vector<16x16xbf16>, vector<256x16xf32> -> vector<256x16xf32>
    %50 = arith.addf %44, %49 : vector<256x16xf32>
    %c0_46 = arith.constant 0 : index
    %c0_47 = arith.constant 0 : index
    %c2 = arith.constant 2 : index
    %c0_48 = arith.constant 0 : index
    %51 = vector.load %arg9[%c0_46, %c0_47, %c2, %c0_48] : memref<1x18x18x16xbf16, #tpu.memory_space<vmem>>, vector<1x16x16x16xbf16>
    %52 = vector.shape_cast %51 : vector<1x16x16x16xbf16> to vector<256x16xbf16>
    %c0_49 = arith.constant 0 : index
    %c2_50 = arith.constant 2 : index
    %c0_51 = arith.constant 0 : index
    %c0_52 = arith.constant 0 : index
    %53 = vector.load %arg6[%c0_49, %c2_50, %c0_51, %c0_52] : memref<3x3x16x16xbf16, #tpu.memory_space<vmem>>, vector<1x1x16x16xbf16>
    %54 = vector.shape_cast %53 : vector<1x1x16x16xbf16> to vector<16x16xbf16>
    %cst_53 = arith.constant dense<0.000000e+00> : vector<256x16xf32>
    %55 = tpu.matmul %52, %54, %cst_53 {dimension_numbers = #tpu.dot_dimension_numbers<[1], [0], [0], [1], [0, 0, 1, 1], [], []>} : vector<256x16xbf16>, vector<16x16xbf16>, vector<256x16xf32> -> vector<256x16xf32>
    %56 = arith.addf %50, %55 : vector<256x16xf32>
    %c0_54 = arith.constant 0 : index
    %c1_55 = arith.constant 1 : index
    %c0_56 = arith.constant 0 : index
    %c0_57 = arith.constant 0 : index
    %57 = vector.load %arg9[%c0_54, %c1_55, %c0_56, %c0_57] : memref<1x18x18x16xbf16, #tpu.memory_space<vmem>>, vector<1x16x16x16xbf16>
    %58 = vector.shape_cast %57 : vector<1x16x16x16xbf16> to vector<256x16xbf16>
    %c1_58 = arith.constant 1 : index
    %c0_59 = arith.constant 0 : index
    %c0_60 = arith.constant 0 : index
    %c0_61 = arith.constant 0 : index
    %59 = vector.load %arg6[%c1_58, %c0_59, %c0_60, %c0_61] : memref<3x3x16x16xbf16, #tpu.memory_space<vmem>>, vector<1x1x16x16xbf16>
    %60 = vector.shape_cast %59 : vector<1x1x16x16xbf16> to vector<16x16xbf16>
    %cst_62 = arith.constant dense<0.000000e+00> : vector<256x16xf32>
    %61 = tpu.matmul %58, %60, %cst_62 {dimension_numbers = #tpu.dot_dimension_numbers<[1], [0], [0], [1], [0, 0, 1, 1], [], []>} : vector<256x16xbf16>, vector<16x16xbf16>, vector<256x16xf32> -> vector<256x16xf32>
    %62 = arith.addf %56, %61 : vector<256x16xf32>
    %c0_63 = arith.constant 0 : index
    %c1_64 = arith.constant 1 : index
    %c1_65 = arith.constant 1 : index
    %c0_66 = arith.constant 0 : index
    %63 = vector.load %arg9[%c0_63, %c1_64, %c1_65, %c0_66] : memref<1x18x18x16xbf16, #tpu.memory_space<vmem>>, vector<1x16x16x16xbf16>
    %64 = vector.shape_cast %63 : vector<1x16x16x16xbf16> to vector<256x16xbf16>
    %c1_67 = arith.constant 1 : index
    %c1_68 = arith.constant 1 : index
    %c0_69 = arith.constant 0 : index
    %c0_70 = arith.constant 0 : index
    %65 = vector.load %arg6[%c1_67, %c1_68, %c0_69, %c0_70] : memref<3x3x16x16xbf16, #tpu.memory_space<vmem>>, vector<1x1x16x16xbf16>
    %66 = vector.shape_cast %65 : vector<1x1x16x16xbf16> to vector<16x16xbf16>
    %cst_71 = arith.constant dense<0.000000e+00> : vector<256x16xf32>
    %67 = tpu.matmul %64, %66, %cst_71 {dimension_numbers = #tpu.dot_dimension_numbers<[1], [0], [0], [1], [0, 0, 1, 1], [], []>} : vector<256x16xbf16>, vector<16x16xbf16>, vector<256x16xf32> -> vector<256x16xf32>
    %68 = arith.addf %62, %67 : vector<256x16xf32>
    %c0_72 = arith.constant 0 : index
    %c1_73 = arith.constant 1 : index
    %c2_74 = arith.constant 2 : index
    %c0_75 = arith.constant 0 : index
    %69 = vector.load %arg9[%c0_72, %c1_73, %c2_74, %c0_75] : memref<1x18x18x16xbf16, #tpu.memory_space<vmem>>, vector<1x16x16x16xbf16>
    %70 = vector.shape_cast %69 : vector<1x16x16x16xbf16> to vector<256x16xbf16>
    %c1_76 = arith.constant 1 : index
    %c2_77 = arith.constant 2 : index
    %c0_78 = arith.constant 0 : index
    %c0_79 = arith.constant 0 : index
    %71 = vector.load %arg6[%c1_76, %c2_77, %c0_78, %c0_79] : memref<3x3x16x16xbf16, #tpu.memory_space<vmem>>, vector<1x1x16x16xbf16>
    %72 = vector.shape_cast %71 : vector<1x1x16x16xbf16> to vector<16x16xbf16>
    %cst_80 = arith.constant dense<0.000000e+00> : vector<256x16xf32>
    %73 = tpu.matmul %70, %72, %cst_80 {dimension_numbers = #tpu.dot_dimension_numbers<[1], [0], [0], [1], [0, 0, 1, 1], [], []>} : vector<256x16xbf16>, vector<16x16xbf16>, vector<256x16xf32> -> vector<256x16xf32>
    %74 = arith.addf %68, %73 : vector<256x16xf32>
    %c0_81 = arith.constant 0 : index
    %c2_82 = arith.constant 2 : index
    %c0_83 = arith.constant 0 : index
    %c0_84 = arith.constant 0 : index
    %75 = vector.load %arg9[%c0_81, %c2_82, %c0_83, %c0_84] : memref<1x18x18x16xbf16, #tpu.memory_space<vmem>>, vector<1x16x16x16xbf16>
    %76 = vector.shape_cast %75 : vector<1x16x16x16xbf16> to vector<256x16xbf16>
    %c2_85 = arith.constant 2 : index
    %c0_86 = arith.constant 0 : index
    %c0_87 = arith.constant 0 : index
    %c0_88 = arith.constant 0 : index
    %77 = vector.load %arg6[%c2_85, %c0_86, %c0_87, %c0_88] : memref<3x3x16x16xbf16, #tpu.memory_space<vmem>>, vector<1x1x16x16xbf16>
    %78 = vector.shape_cast %77 : vector<1x1x16x16xbf16> to vector<16x16xbf16>
    %cst_89 = arith.constant dense<0.000000e+00> : vector<256x16xf32>
    %79 = tpu.matmul %76, %78, %cst_89 {dimension_numbers = #tpu.dot_dimension_numbers<[1], [0], [0], [1], [0, 0, 1, 1], [], []>} : vector<256x16xbf16>, vector<16x16xbf16>, vector<256x16xf32> -> vector<256x16xf32>
    %80 = arith.addf %74, %79 : vector<256x16xf32>
    %c0_90 = arith.constant 0 : index
    %c2_91 = arith.constant 2 : index
    %c1_92 = arith.constant 1 : index
    %c0_93 = arith.constant 0 : index
    %81 = vector.load %arg9[%c0_90, %c2_91, %c1_92, %c0_93] : memref<1x18x18x16xbf16, #tpu.memory_space<vmem>>, vector<1x16x16x16xbf16>
    %82 = vector.shape_cast %81 : vector<1x16x16x16xbf16> to vector<256x16xbf16>
    %c2_94 = arith.constant 2 : index
    %c1_95 = arith.constant 1 : index
    %c0_96 = arith.constant 0 : index
    %c0_97 = arith.constant 0 : index
    %83 = vector.load %arg6[%c2_94, %c1_95, %c0_96, %c0_97] : memref<3x3x16x16xbf16, #tpu.memory_space<vmem>>, vector<1x1x16x16xbf16>
    %84 = vector.shape_cast %83 : vector<1x1x16x16xbf16> to vector<16x16xbf16>
    %cst_98 = arith.constant dense<0.000000e+00> : vector<256x16xf32>
    %85 = tpu.matmul %82, %84, %cst_98 {dimension_numbers = #tpu.dot_dimension_numbers<[1], [0], [0], [1], [0, 0, 1, 1], [], []>} : vector<256x16xbf16>, vector<16x16xbf16>, vector<256x16xf32> -> vector<256x16xf32>
    %86 = arith.addf %80, %85 : vector<256x16xf32>
    %c0_99 = arith.constant 0 : index
    %c2_100 = arith.constant 2 : index
    %c2_101 = arith.constant 2 : index
    %c0_102 = arith.constant 0 : index
    %87 = vector.load %arg9[%c0_99, %c2_100, %c2_101, %c0_102] : memref<1x18x18x16xbf16, #tpu.memory_space<vmem>>, vector<1x16x16x16xbf16>
    %88 = vector.shape_cast %87 : vector<1x16x16x16xbf16> to vector<256x16xbf16>
    %c2_103 = arith.constant 2 : index
    %c2_104 = arith.constant 2 : index
    %c0_105 = arith.constant 0 : index
    %c0_106 = arith.constant 0 : index
    %89 = vector.load %arg6[%c2_103, %c2_104, %c0_105, %c0_106] : memref<3x3x16x16xbf16, #tpu.memory_space<vmem>>, vector<1x1x16x16xbf16>
    %90 = vector.shape_cast %89 : vector<1x1x16x16xbf16> to vector<16x16xbf16>
    %cst_107 = arith.constant dense<0.000000e+00> : vector<256x16xf32>
    %91 = tpu.matmul %88, %90, %cst_107 {dimension_numbers = #tpu.dot_dimension_numbers<[1], [0], [0], [1], [0, 0, 1, 1], [], []>} : vector<256x16xbf16>, vector<16x16xbf16>, vector<256x16xf32> -> vector<256x16xf32>
    %92 = arith.addf %86, %91 : vector<256x16xf32>
    %93 = vector.broadcast %2 : vector<1x16xf32> to vector<256x16xf32>
    %94 = arith.addf %92, %93 : vector<256x16xf32>
    %95 = arith.negf %94 : vector<256x16xf32>
    %96 = math.exp %95 : vector<256x16xf32>
    %cst_108 = arith.constant 1.000000e+00 : f32
    %97 = vector.broadcast %cst_108 : f32 to vector<256x16xf32>
    %98 = arith.addf %97, %96 : vector<256x16xf32>
    %99 = arith.divf %97, %98 : vector<256x16xf32>
    %100 = arith.mulf %94, %99 : vector<256x16xf32>
    %101 = arith.addf %32, %100 : vector<256x16xf32>
    %102 = vector.shape_cast %101 : vector<256x16xf32> to vector<1x256x16xf32>
    %103 = arith.truncf %102 : vector<1x256x16xf32> to vector<1x256x16xbf16>
    %c0_109 = arith.constant 0 : index
    %c0_110 = arith.constant 0 : index
    %c0_111 = arith.constant 0 : index
    %104 = vector.load %arg8[%c0_109, %c0_110, %c0_111] : memref<1x256x16xbf16, #tpu.memory_space<vmem>>, vector<1x256x16xbf16>
    tpu.vector_store %arg8[%c0_109, %c0_110, %c0_111], %103 {strides = array<i32>} : memref<1x256x16xbf16, #tpu.memory_space<vmem>>, vector<1x256x16xbf16>,
    return
  }
  func.func @transform_0(%arg0: i32) -> (i32, i32, i32) {
    %c0_i32 = arith.constant 0 : i32
    %c0_i32_0 = arith.constant 0 : i32
    %c0_i32_1 = arith.constant 0 : i32
    return %arg0, %c0_i32, %c0_i32_0 : i32, i32, i32
  }
  func.func @transform_1(%arg0: i32) -> (i32, i32) {
    %c0_i32 = arith.constant 0 : i32
    %c0_i32_0 = arith.constant 0 : i32
    %c0_i32_1 = arith.constant 0 : i32
    return %c0_i32, %c0_i32_0 : i32, i32
  }
  func.func @transform_2(%arg0: i32) -> (i32, i32) {
    %c0_i32 = arith.constant 0 : i32
    %c0_i32_0 = arith.constant 0 : i32
    %c0_i32_1 = arith.constant 0 : i32
    return %c0_i32, %c0_i32_0 : i32, i32
  }
  func.func @transform_3(%arg0: i32) -> (i32, i32) {
    %c0_i32 = arith.constant 0 : i32
    %c0_i32_0 = arith.constant 0 : i32
    %c0_i32_1 = arith.constant 0 : i32
    return %c0_i32, %c0_i32_0 : i32, i32
  }
  func.func @transform_4(%arg0: i32) -> (i32, i32) {
    %c0_i32 = arith.constant 0 : i32
    %c0_i32_0 = arith.constant 0 : i32
    %c0_i32_1 = arith.constant 0 : i32
    return %c0_i32, %c0_i32_0 : i32, i32
  }
  func.func @transform_5(%arg0: i32) -> (i32, i32, i32, i32) {
    %c0_i32 = arith.constant 0 : i32
    %c0_i32_0 = arith.constant 0 : i32
    %c0_i32_1 = arith.constant 0 : i32
    %c0_i32_2 = arith.constant 0 : i32
    %c0_i32_3 = arith.constant 0 : i32
    return %c0_i32, %c0_i32_0, %c0_i32_1, %c0_i32_2 : i32, i32, i32, i32
  }
  func.func @transform_6(%arg0: i32) -> (i32, i32) {
    %c0_i32 = arith.constant 0 : i32
    %c0_i32_0 = arith.constant 0 : i32
    %c0_i32_1 = arith.constant 0 : i32
    return %c0_i32, %c0_i32_0 : i32, i32
  }
  func.func @transform_7(%arg0: i32) -> (i32, i32, i32) {
    %c0_i32 = arith.constant 0 : i32
    %c0_i32_0 = arith.constant 0 : i32
    %c0_i32_1 = arith.constant 0 : i32
    return %arg0, %c0_i32, %c0_i32_0 : i32, i32, i32
  }
}

</mosaic_0001>

<bundles_post_ra>
// kernel: tpu_custom_call.1
= control target key start
LH: loop header
LB: loop body
LE: loop exit
PB: predicated region body
PF: predicated region fallthrough
CT: control target
= control target key end

     0   :  { %s8334_s24 = smov 0   ;;  %s11901_s0 = inlined_call_operand.vmem [shape: bf16[2,256,16], index: 0, kind: input, shape index: {}]   ;;  %s11902_s1 = inlined_call_operand.vmem [shape: bf16[16,16], index: 1, kind: input, shape index: {}]   ;;  %s11903_s2 = inlined_call_operand.vmem [shape: f32[1,16], index: 2, kind: input, shape index: {}]   ;;  %s11904_s3 = inlined_call_operand.vmem [shape: f32[16,4], index: 3, kind: input, shape index: {}]   ;;  %s11905_s4 = inlined_call_operand.vmem [shape: f32[4,16], index: 4, kind: input, shape index: {}]   ;;  %s11906_s5 = inlined_call_operand.vmem [shape: bf16[3,3,16,16], index: 5, kind: input, shape index: {}]   ;;  %s11907_s6 = inlined_call_operand.vmem [shape: f32[1,16], index: 6, kind: input, shape index: {}]   ;;  %s11908_s7 = inlined_call_operand.vmem [shape: bf16[2,256,16], index: 7, kind: output, shape index: {}]  }
   0x1 LB: > { %s6804_s25 = sadd.s32 4294967295, %s8289_s24   ;;  %p6808_p0 = scmp.ge.s32.totalorder %s8289_s24, 1  ;;  %s8289_s24 = sphi %s8334_s24, %s17_s24  }
   0x2   : > { %p237_p1 = scmp.lt.s32.totalorder %s8289_s24, 3 }
   0x4   : > { %p238_p2 = pnand %p6808_p0, %p237_p1 }
   0x6   : > { %241 = sbr.rel (%p238_p2) target bundleno = 1426 (0x592), region = 48 }
   0xb   : > { %v7947_v0 = vld [vmem:[%s11902_s1] sm:$0xff]   ;;  %p269_p3 = scmp.lt.s32.totalorder %s6804_s25, 1  ;;  %vm408_vm0 = vcmask 130048   ;;  %vm1110_vm1 = vcmask 125952   ;;  %v8291_v17 = vmov 0   ;;  %vm1113_vm2 = vcmask 122880  }
   0xc   : > { %7584 = vmatprep.subr.bf16.mxu0 %v7947_v0  ;;  %1118 = vst.msk [vmem:[#allocation2 + $0x18] sm:$0xf] %vm1110_vm1, %v8291_v17  ;;  %1111 = vst.msk [vmem:[#allocation2] sm:$0xf] %vm1110_vm1, %v8291_v17  ;;  %v914_v18 = vld [vmem:[%s11904_s3 + $0x8] sm:$0xff]  ;;  %v8292_v19 = vmov 0.0  }
   0xd   : > { %s12313_s25 = smov (!%p269_p3, %s6804_s25), 1  ;;  %7585 = vmatpush3.bf16.msra.mxu0 %v7947_v0  ;;  %1112 = vst.msk [vmem:[#allocation2 + $0x4] sm:$0xf] %vm1110_vm1, %v8291_v17  ;;  %1115 = vst.msk [vmem:[#allocation2 + $0xc] sm:$0xf] %vm1110_vm1, %v8291_v17  ;;  %7625 = vmatprep.subr.mxu1 %v8292_v19  ;;  %v913_v20 = vld [vmem:[%s11904_s3] sm:$0xff] }
   0xe   : > { %s7343_s28 = sshll.u32 %s12313_s25, 7  ;;  %1116 = vst.msk [vmem:[#allocation2 + $0x10] sm:$0xf] %vm1110_vm1, %v8291_v17  ;;  %1119 = vst.msk [vmem:[#allocation2 + $0x1c] sm:$0xf] %vm1110_vm1, %v8291_v17  ;;  %7618 = vmatprep.subr.mxu0 %v8292_v19  ;;  %vm8293_vm3 = vmmov 0  }
   0xf   : > { %s8353_s8 = scalar_lea.vmem %s11901_s0, %s7343_s28  ;;  %1121 = vst.msk [vmem:[#allocation2 + $0x24] sm:$0xf] %vm1110_vm1, %v8291_v17  ;;  %1122 = vst.msk [vmem:[#allocation2 + $0x28] sm:$0xf] %vm1110_vm1, %v8291_v17  ;;  %7627 = vmatprep.mubr.msk.f32.mxu1 %vm8293_vm3, %v8292_v19  ;;  %v8450_v21 = vld [vmem:[%s11903_s2] ss:$0 sm:$0xff]  ;;  %s11702_s19 = scalar_lea.vmem %s11908_s7, %s7343_s28 }
  0x10   : > { %v7948_v1 = vld [vmem:[%s8353_s8] sm:$0xff]   ;;  %v7949_v2 = vld [vmem:[%s8353_s8 + $0x8] sm:$0xff]   ;;  %v7950_v3 = vld [vmem:[%s8353_s8 + $0x10] sm:$0xff]   ;;  %1124 = vst.msk [vmem:[#allocation2 + $0x30] sm:$0xf] %vm1110_vm1, %v8291_v17  ;;  %vm994_vm4 = vcmask 1043456  }
  0x11   : > { %7586 = vmatprep.mubr.msk.bf16.mxu0 %vm408_vm0, %v7948_v1  ;;  %v7951_v4 = vld [vmem:[%s8353_s8 + $0x18] sm:$0xff]   ;;  %v7952_v5 = vld [vmem:[%s8353_s8 + $0x20] sm:$0xff]   ;;  %v7953_v6 = vld [vmem:[%s8353_s8 + $0x28] sm:$0xff]   ;;  %1125 = vst.msk [vmem:[#allocation2 + $0x34] sm:$0xf] %vm1110_vm1, %v8291_v17  ;;  %vm990_vm5 = vcmask 31744  }
  0x12   : > { %7587 = vmatmul.mubr.msk.bf16.vlgmr.msra.gmra.mxu0 %vm408_vm0, %v7949_v2  ;;  %v7954_v7 = vld [vmem:[%s8353_s8 + $0x30] sm:$0xff]   ;;  %v7955_v8 = vld [vmem:[%s8353_s8 + $0x38] sm:$0xff]   ;;  %v7956_v9 = vld [vmem:[%s8353_s8 + $0x40] sm:$0xff]   ;;  %1127 = vst.msk [vmem:[#allocation2 + $0x3c] sm:$0xf] %vm1110_vm1, %v8291_v17  ;;  %vm2749_vm15 = vcmask 1042432  }
  0x13   : > { %7590 = vmatprep.mubr.msk.bf16.mxu0 %vm408_vm0, %v7950_v3  ;;  %v7957_v10 = vld [vmem:[%s8353_s8 + $0x48] sm:$0xff]   ;;  %v7958_v11 = vld [vmem:[%s8353_s8 + $0x50] sm:$0xff]   ;;  %v7959_v12 = vld [vmem:[%s8353_s8 + $0x58] sm:$0xff]   ;;  %1128 = vst.msk [vmem:[#allocation2 + $0x40] sm:$0xf] %vm1110_vm1, %v8291_v17  ;;  %7619 = vmatpush3.msra.mxu0 %v914_v18 }
  0x14   : > { %v7960_v13 = vld [vmem:[%s8353_s8 + $0x60] sm:$0xff]   ;;  %v7961_v14 = vld [vmem:[%s8353_s8 + $0x68] sm:$0xff]   ;;  %v7962_v15 = vld [vmem:[%s8353_s8 + $0x70] sm:$0xff]   ;;  %1130 = vst.msk [vmem:[#allocation2 + $0x48] sm:$0xf] %vm1110_vm1, %v8291_v17  ;;  %7620 = vmatprep.subr.mxu0 %v8292_v19 }
  0x15   : > { %v7963_v16 = vld [vmem:[%s8353_s8 + $0x78] sm:$0xff]   ;;  %1131 = vst.msk [vmem:[#allocation2 + $0x4c] sm:$0xf] %vm1110_vm1, %v8291_v17  ;;  %1133 = vst.msk [vmem:[#allocation2 + $0x54] sm:$0xf] %vm1110_vm1, %v8291_v17  ;;  %7621 = vmatpush3.msra.mxu0 %v913_v20 }
  0x16   : > { %1134 = vst.msk [vmem:[#allocation2 + $0x58] sm:$0xf] %vm1110_vm1, %v8291_v17  ;;  %1136 = vst.msk [vmem:[#allocation2 + $0x60] sm:$0xf] %vm1110_vm1, %v8291_v17  ;;  %vm1753_vm6 = vsmask.f32 3328 }
  0x17   : > { %1137 = vst.msk [vmem:[#allocation2 + $0x64] sm:$0xf] %vm1110_vm1, %v8291_v17  ;;  %1139 = vst.msk [vmem:[#allocation2 + $0x6c] sm:$0xf] %vm1110_vm1, %v8291_v17  ;;  %vm1754_vm7 = vsmask.f32 7440 }
  0x18   : > { %1140 = vst.msk [vmem:[#allocation2 + $0x70] sm:$0xf] %vm1110_vm1, %v8291_v17  ;;  %1142 = vst.msk [vmem:[#allocation2 + $0x78] sm:$0xf] %vm1110_vm1, %v8291_v17  ;;  %vm1587_vm9 = vsmask.f32 7938 }
  0x19   : > { %1143 = vst.msk [vmem:[#allocation2 + $0x7c] sm:$0xf] %vm1110_vm1, %v8291_v17  ;;  %1145 = vst.msk [vmem:[#allocation2 + $0x84] sm:$0xf] %vm1110_vm1, %v8291_v17  ;;  %vm1262_vm10 = vsmask.f32 256 }
  0x1a   : > { %7591 = vmatmul.mubr.msk.bf16.gmra.mxu0 %vm408_vm0, %v7951_v4  ;;  %1146 = vst.msk [vmem:[#allocation2 + $0x88] sm:$0xf] %vm1110_vm1, %v8291_v17  ;;  %1148 = vst.msk [vmem:[#allocation2 + $0x90] sm:$0xf] %vm1110_vm1, %v8291_v17  ;;  %vm1263_vm11 = vsmask.f32 4368 }
  0x1b   : > { %7594 = vmatprep.mubr.msk.bf16.mxu0 %vm408_vm0, %v7952_v5  ;;  %1149 = vst.msk [vmem:[#allocation2 + $0x94] sm:$0xf] %vm1110_vm1, %v8291_v17  ;;  %1151 = vst.msk [vmem:[#allocation2 + $0x9c] sm:$0xf] %vm1110_vm1, %v8291_v17 }
  0x1c   : > { %1152 = vst.msk [vmem:[#allocation2 + $0xa0] sm:$0xf] %vm1110_vm1, %v8291_v17  ;;  %1154 = vst.msk [vmem:[#allocation2 + $0xa8] sm:$0xf] %vm1110_vm1, %v8291_v17 }
  0x1d   : > { %1155 = vst.msk [vmem:[#allocation2 + $0xac] sm:$0xf] %vm1110_vm1, %v8291_v17  ;;  %1157 = vst.msk [vmem:[#allocation2 + $0xb4] sm:$0xf] %vm1110_vm1, %v8291_v17 }
  0x1e   : > { %1158 = vst.msk [vmem:[#allocation2 + $0xb8] sm:$0xf] %vm1110_vm1, %v8291_v17  ;;  %1160 = vst.msk [vmem:[#allocation2 + $0xc0] sm:$0xf] %vm1110_vm1, %v8291_v17 }
  0x1f   : > { %1161 = vst.msk [vmem:[#allocation2 + $0xc4] sm:$0xf] %vm1110_vm1, %v8291_v17  ;;  %1163 = vst.msk [vmem:[#allocation2 + $0xcc] sm:$0xf] %vm1110_vm1, %v8291_v17 }
  0x20   : > { %1164 = vst.msk [vmem:[#allocation2 + $0xd0] sm:$0xf] %vm1110_vm1, %v8291_v17  ;;  %vm8751_vm8 = vmor %vm1753_vm6, %vm1754_vm7 }
  0x21   : > { %1120 = vst.msk [vmem:[#allocation2 + $0x20] sm:$0x1] %vm1113_vm2, %v8291_v17  ;;  %1114 = vst.msk [vmem:[#allocation2 + $0x8] sm:$0x1] %vm1113_vm2, %v8291_v17 }
  0x22   : > { %7595 = vmatmul.mubr.msk.bf16.gmra.mxu0 %vm408_vm0, %v7953_v6  ;;  %1117 = vst.msk [vmem:[#allocation2 + $0x14] sm:$0x1] %vm1113_vm2, %v8291_v17  ;;  %1123 = vst.msk [vmem:[#allocation2 + $0x2c] sm:$0x1] %vm1113_vm2, %v8291_v17 }
  0x23   : > { %7598 = vmatprep.mubr.msk.bf16.mxu0 %vm408_vm0, %v7954_v7  ;;  %1126 = vst.msk [vmem:[#allocation2 + $0x38] sm:$0x1] %vm1113_vm2, %v8291_v17  ;;  %1129 = vst.msk [vmem:[#allocation2 + $0x44] sm:$0x1] %vm1113_vm2, %v8291_v17 }
  0x24   : > { %1132 = vst.msk [vmem:[#allocation2 + $0x50] sm:$0x1] %vm1113_vm2, %v8291_v17  ;;  %1135 = vst.msk [vmem:[#allocation2 + $0x5c] sm:$0x1] %vm1113_vm2, %v8291_v17 }
  0x25   : > { %1138 = vst.msk [vmem:[#allocation2 + $0x68] sm:$0x1] %vm1113_vm2, %v8291_v17  ;;  %1141 = vst.msk [vmem:[#allocation2 + $0x74] sm:$0x1] %vm1113_vm2, %v8291_v17 }
  0x26   : > { %1144 = vst.msk [vmem:[#allocation2 + $0x80] sm:$0x1] %vm1113_vm2, %v8291_v17  ;;  %1147 = vst.msk [vmem:[#allocation2 + $0x8c] sm:$0x1] %vm1113_vm2, %v8291_v17 }
  0x27   : > { %1150 = vst.msk [vmem:[#allocation2 + $0x98] sm:$0x1] %vm1113_vm2, %v8291_v17  ;;  %1153 = vst.msk [vmem:[#allocation2 + $0xa4] sm:$0x1] %vm1113_vm2, %v8291_v17 }
  0x28   : > { %1156 = vst.msk [vmem:[#allocation2 + $0xb0] sm:$0x1] %vm1113_vm2, %v8291_v17  ;;  %1159 = vst.msk [vmem:[#allocation2 + $0xbc] sm:$0x1] %vm1113_vm2, %v8291_v17 }
  0x29   : > { %1162 = vst.msk [vmem:[#allocation2 + $0xc8] sm:$0x1] %vm1113_vm2, %v8291_v17  ;;  %1165 = vst.msk [vmem:[#allocation2 + $0xd4] sm:$0x1] %vm1113_vm2, %v8291_v17 }
  0x2a   : > { %7599 = vmatmul.mubr.msk.bf16.gmra.mxu0 %vm408_vm0, %v7955_v8  ;;  %vm9260_vm12 = vmand %vm1110_vm1, %vm1587_vm9 }
  0x2b   : > { %7602 = vmatprep.mubr.msk.bf16.mxu0 %vm408_vm0, %v7956_v9  ;;  %vm9276_vm13 = vmor %vm1262_vm10, %vm1263_vm11 }
  0x2c   : > { %vm9304_vm14 = vmand %vm1113_vm2, %vm1262_vm10  ;;  %vm2750_vm2 = vcmask 1046532  }
  0x32   : > { %7603 = vmatmul.mubr.msk.bf16.gmra.mxu0 %vm408_vm0, %v7957_v10 }
  0x33   : > { %7606 = vmatprep.mubr.msk.bf16.mxu0 %vm408_vm0, %v7958_v11 }
  0x3a   : > { %7607 = vmatmul.mubr.msk.bf16.gmra.mxu0 %vm408_vm0, %v7959_v12 }
  0x3b   : > { %7610 = vmatprep.mubr.msk.bf16.mxu0 %vm408_vm0, %v7960_v13 }
  0x42   : > { %7611 = vmatmul.mubr.msk.bf16.gmra.mxu0 %vm408_vm0, %v7961_v14 }
  0x43   : > { %7614 = vmatprep.mubr.msk.bf16.mxu0 %vm408_vm0, %v7962_v15 }
  0x4a   : > { %7615 = vmatmul.mubr.msk.bf16.gmra.mxu0 %vm408_vm0, %v7963_v16 }
  0x4b   : > { %7622 = vmatprep.mubr.msk.f32.mxu0 %vm8293_vm3, %v8292_v19  ;;  %vm9748_vm3 = vmor %vm2749_vm15, %vm2750_vm2 }
  0xd2   : > { %v7588_v22 = vpop.f32.mrf.mxu0 }
  0xd3   : > { %v8453_v23 = vadd.f32 %v7588_v22, %v8450_v21 }
  0xd4   : > { %v491_v24 = vpop.f32.mrf.mxu0 }
  0xd5   : > { %v6849_v25 = vmul.f32 -1.442695, %v8453_v23  ;;  %v8457_v26 = vadd.f32 %v8450_v21, %v491_v24 }
  0xd6   : > { %v7589_v27 = vpop.f32.mrf.mxu0 }
  0xd7   : > { %8021 = vpow2.f32 %v6849_v25  ;;  %v6847_v28 = vmul.f32 -1.442695, %v8457_v26  ;;  %v8461_v29 = vadd.f32 %v7589_v27, %v8450_v21 }
  0xd8   : > { %v494_v30 = vpop.f32.mrf.mxu0 }
  0xd9   : > { %8023 = vpow2.f32 %v6847_v28  ;;  %v6850_v31 = vmul.f32 -1.442695, %v8461_v29  ;;  %v8465_v32 = vadd.f32 %v8450_v21, %v494_v30 }
  0xda   : > { %v7592_v33 = vpop.f32.mrf.mxu0 }
  0xdb   : > { %8025 = vpow2.f32 %v6850_v31  ;;  %v6848_v34 = vmul.f32 -1.442695, %v8465_v32  ;;  %v8469_v35 = vadd.f32 %v7592_v33, %v8450_v21 }
  0xdc   : > { %v507_v36 = vpop.f32.mrf.mxu0 }
  0xdd   : > { %8027 = vpow2.f32 %v6848_v34  ;;  %v6853_v37 = vmul.f32 -1.442695, %v8469_v35  ;;  %v8473_v38 = vadd.f32 %v8450_v21, %v507_v36 }
  0xde   : > { %v7593_v39 = vpop.f32.mrf.mxu0 }
  0xdf   : > { %8029 = vpow2.f32 %v6853_v37  ;;  %v6851_v40 = vmul.f32 -1.442695, %v8473_v38  ;;  %v8477_v41 = vadd.f32 %v7593_v39, %v8450_v21 }
  0xe0   : > { %v510_v42 = vpop.f32.mrf.mxu0 }
  0xe1   : > { %8031 = vpow2.f32 %v6851_v40  ;;  %v6854_v43 = vmul.f32 -1.442695, %v8477_v41  ;;  %v8481_v44 = vadd.f32 %v8450_v21, %v510_v42 }
  0xe2   : > { %v7596_v45 = vpop.f32.mrf.mxu0 }
  0xe3   : > { %8033 = vpow2.f32 %v6854_v43  ;;  %v6852_v46 = vmul.f32 -1.442695, %v8481_v44  ;;  %v8485_v47 = vadd.f32 %v7596_v45, %v8450_v21 }
  0xe4   : > { %v8022_v48 = vpop.eup %8021  ;;  %v523_v49 = vpop.f32.mrf.mxu0 }
  0xe5   : > { %v716_v50 = vadd.f32 1.0, %v8022_v48  ;;  %8035 = vpow2.f32 %v6852_v46  ;;  %v6857_v51 = vmul.f32 -1.442695, %v8485_v47  ;;  %v8489_v52 = vadd.f32 %v8450_v21, %v523_v49 }
  0xe6   : > { %v8024_v53 = vpop.eup %8023  ;;  %v7597_v54 = vpop.f32.mrf.mxu0 }
  0xe7   : > { %8037 = vrcp.f32 %v716_v50  ;;  %v714_v55 = vadd.f32 1.0, %v8024_v53  ;;  %v6855_v56 = vmul.f32 -1.442695, %v8489_v52  ;;  %v8493_v57 = vadd.f32 %v7597_v54, %v8450_v21 }
  0xe8   : > { %v8026_v58 = vpop.eup %8025  ;;  %8039 = vpow2.f32 %v6857_v51  ;;  %v526_v59 = vpop.f32.mrf.mxu0 }
  0xe9   : > { %8041 = vrcp.f32 %v714_v55  ;;  %v717_v60 = vadd.f32 1.0, %v8026_v58  ;;  %v6858_v61 = vmul.f32 -1.442695, %v8493_v57  ;;  %v8497_v62 = vadd.f32 %v8450_v21, %v526_v59 }
  0xea   : > { %v8028_v63 = vpop.eup %8027  ;;  %8043 = vpow2.f32 %v6855_v56  ;;  %v7600_v0 = vpop.f32.mrf.mxu0 }
  0xeb   : > { %8045 = vrcp.f32 %v717_v60  ;;  %v715_v1 = vadd.f32 1.0, %v8028_v63  ;;  %v6856_v2 = vmul.f32 -1.442695, %v8497_v62  ;;  %v8501_v3 = vadd.f32 %v7600_v0, %v8450_v21 }
  0xec   : > { %v8030_v4 = vpop.eup %8029  ;;  %8047 = vpow2.f32 %v6858_v61  ;;  %v539_v5 = vpop.f32.mrf.mxu0 }
  0xed   : > { %8049 = vrcp.f32 %v715_v1  ;;  %v720_v6 = vadd.f32 1.0, %v8030_v4  ;;  %v6861_v7 = vmul.f32 -1.442695, %v8501_v3  ;;  %v8505_v8 = vadd.f32 %v8450_v21, %v539_v5 }
  0xee   : > { %v8032_v9 = vpop.eup %8031  ;;  %8051 = vpow2.f32 %v6856_v2  ;;  %v7601_v10 = vpop.f32.mrf.mxu0 }
  0xef   : > { %8053 = vrcp.f32 %v720_v6  ;;  %v718_v11 = vadd.f32 1.0, %v8032_v9  ;;  %v6859_v12 = vmul.f32 -1.442695, %v8505_v8  ;;  %v8509_v13 = vadd.f32 %v7601_v10, %v8450_v21 }
  0xf0   : > { %v8034_v14 = vpop.eup %8033  ;;  %8055 = vpow2.f32 %v6861_v7  ;;  %v542_v15 = vpop.f32.mrf.mxu0 }
  0xf1   : > { %8057 = vrcp.f32 %v718_v11  ;;  %v721_v16 = vadd.f32 1.0, %v8034_v14  ;;  %v6862_v17 = vmul.f32 -1.442695, %v8509_v13  ;;  %v8513_v18 = vadd.f32 %v8450_v21, %v542_v15 }
  0xf2   : > { %v8036_v19 = vpop.eup %8035  ;;  %8059 = vpow2.f32 %v6859_v12  ;;  %v7604_v20 = vpop.f32.mrf.mxu0 }
  0xf3   : > { %8061 = vrcp.f32 %v721_v16  ;;  %v719_v22 = vadd.f32 1.0, %v8036_v19  ;;  %v6860_v24 = vmul.f32 -1.442695, %v8513_v18  ;;  %v8517_v25 = vadd.f32 %v7604_v20, %v8450_v21 }
  0xf4   : > { %v8038_v27 = vpop.eup %8037  ;;  %8063 = vpow2.f32 %v6862_v17  ;;  %v555_v28 = vpop.f32.mrf.mxu0 }
  0xf5   : > { %v8040_v30 = vpop.eup %8039  ;;  %8065 = vrcp.f32 %v719_v22  ;;  %v6865_v31 = vmul.f32 -1.442695, %v8517_v25  ;;  %v8521_v33 = vadd.f32 %v8450_v21, %v555_v28  ;;  %v8525_v43 = vmul.f32 %v8038_v27, %v8453_v23 }
  0xf6   : > { %v8042_v34 = vpop.eup %8041  ;;  %v724_v36 = vadd.f32 1.0, %v8040_v30  ;;  %8067 = vpow2.f32 %v6860_v24  ;;  %v7605_v37 = vpop.f32.mrf.mxu0 }
  0xf7   : > { %v8044_v39 = vpop.eup %8043  ;;  %8069 = vpow2.f32 %v6865_v31  ;;  %v6863_v40 = vmul.f32 -1.442695, %v8521_v33  ;;  %v8528_v46 = vadd.f32 %v7605_v37, %v8450_v21  ;;  %v8531_v50 = vmul.f32 %v8042_v34, %v8457_v26 }
  0xf8   : > { %v8046_v42 = vpop.eup %8045  ;;  %8071 = vrcp.f32 %v724_v36  ;;  %v722_v45 = vadd.f32 1.0, %v8044_v39  ;;  %v558_v48 = vpop.f32.mrf.mxu0  ;;  %v845_v63 = vsel %vm408_vm0, %v8525_v43, 0.0 }
  0xf9   : > { %v8048_v49 = vpop.eup %8047  ;;  %8073 = vpow2.f32 %v6863_v40  ;;  %v8534_v51 = vadd.f32 %v8450_v21, %v558_v48  ;;  %v6866_v23 = vmul.f32 -1.442695, %v8528_v46  ;;  %v8538_v58 = vmul.f32 %v8046_v42, %v8461_v29 }
  0xfa   : > { %v8050_v53 = vpop.eup %8049  ;;  %8075 = vrcp.f32 %v722_v45  ;;  %v725_v54 = vadd.f32 1.0, %v8048_v49  ;;  %v7608_v55 = vpop.f32.mrf.mxu0  ;;  %v842_v29 = vsel %vm408_vm0, %v8531_v50, 0.0 }
  0xfb   : > { %v8052_v56 = vpop.eup %8051  ;;  %v8541_v59 = vmul.f32 %v8050_v53, %v8465_v32  ;;  %v6864_v26 = vmul.f32 -1.442695, %v8534_v51  ;;  %v8545_v60 = vadd.f32 %v7608_v55, %v8450_v21  ;;  %v847_v12 = vsel %vm408_vm0, %v8538_v58, 0.0 }
  0xfc   : > { %v8054_v61 = vpop.eup %8053  ;;  %8077 = vrcp.f32 %v725_v54  ;;  %v723_v0 = vadd.f32 1.0, %v8052_v56  ;;  %v571_v1 = vpop.f32.mrf.mxu0 }
  0xfd   : > { %v8056_v2 = vpop.eup %8055  ;;  %v843_v32 = vsel %vm408_vm0, %v8541_v59, 0.0  ;;  %8079 = vpow2.f32 %v6866_v23  ;;  %v6869_v4 = vmul.f32 -1.442695, %v8545_v60  ;;  %v8555_v9 = vadd.f32 %v8450_v21, %v571_v1 }
  0xfe   : > { %v8058_v5 = vpop.eup %8057  ;;  %v844_v6 = vadd.f32 %v843_v32, %v842_v29  ;;  %8081 = vrcp.f32 %v723_v0  ;;  %v728_v7 = vadd.f32 1.0, %v8056_v2  ;;  %v7609_v10 = vpop.f32.mrf.mxu0  ;;  %v8567_v27 = vmul.f32 %v8054_v61, %v8469_v35 }
  0xff   : > { %v8060_v11 = vpop.eup %8059  ;;  %v8560_v14 = vmul.f32 %v8058_v5, %v8473_v38  ;;  %8083 = vpow2.f32 %v6864_v26  ;;  %v8563_v15 = vadd.f32 %v7609_v10, %v8450_v21  ;;  %v6867_v20 = vmul.f32 -1.442695, %v8555_v9 }
 0x100   : > { %v8062_v16 = vpop.eup %8061  ;;  %v846_v17 = vadd.f32 %v845_v63, %v844_v6  ;;  %8085 = vrcp.f32 %v728_v7  ;;  %v726_v19 = vadd.f32 1.0, %v8060_v11  ;;  %v574_v22 = vpop.f32.mrf.mxu0  ;;  %v853_v1 = vsel %vm408_vm0, %v8567_v27, 0.0 }
 0x101   : > { %v8064_v24 = vpop.eup %8063  ;;  %v849_v28 = vsel %vm408_vm0, %v8560_v14, 0.0  ;;  %8087 = vpow2.f32 %v6869_v4  ;;  %v6870_v38 = vmul.f32 -1.442695, %v8563_v15  ;;  %v8573_v36 = vadd.f32 %v8450_v21, %v574_v22 }
 0x102   : > { %v8066_v30 = vpop.eup %8065  ;;  %v848_v31 = vadd.f32 %v847_v12, %v846_v17  ;;  %8089 = vrcp.f32 %v726_v19  ;;  %v729_v34 = vadd.f32 1.0, %v8064_v24  ;;  %v7612_v37 = vpop.f32.mrf.mxu0  ;;  %v8576_v40 = vmul.f32 %v8062_v16, %v8477_v41 }
 0x103   : > { %v8068_v39 = vpop.eup %8067  ;;  %v8579_v35 = vmul.f32 %v8066_v30, %v8481_v44  ;;  %8091 = vpow2.f32 %v6867_v20  ;;  %v8582_v42 = vadd.f32 %v7612_v37, %v8450_v21  ;;  %v6868_v53 = vmul.f32 -1.442695, %v8573_v36 }
 0x104   : > { %v8070_v45 = vpop.eup %8069  ;;  %v850_v48 = vadd.f32 %v849_v28, %v848_v31  ;;  %8093 = vrcp.f32 %v729_v34  ;;  %v727_v49 = vadd.f32 1.0, %v8068_v39  ;;  %v587_v54 = vpop.f32.mrf.mxu0  ;;  %v855_v32 = vsel %vm408_vm0, %v8576_v40, 0.0 }
 0x105   : > { %v8072_v23 = vpop.eup %8071  ;;  %v851_v55 = vsel %vm408_vm0, %v8579_v35, 0.0  ;;  %v732_v41 = vadd.f32 1.0, %v8070_v45  ;;  %8095 = vpow2.f32 %v6870_v38  ;;  %v6873_v26 = vmul.f32 -1.442695, %v8582_v42 }
 0x106   : > { %v8074_v56 = vpop.eup %8073  ;;  %v852_v44 = vadd.f32 %v851_v55, %v850_v48  ;;  %8097 = vrcp.f32 %v727_v49  ;;  %v8589_v61 = vadd.f32 %v8450_v21, %v587_v54  ;;  %v7613_v63 = vpop.f32.mrf.mxu0  ;;  %v8613_v30 = vmul.f32 %v8072_v23, %v8485_v47 }
 0x107   : > { %v8076_v0 = vpop.eup %8075  ;;  %8099 = vrcp.f32 %v732_v41  ;;  %v730_v2 = vadd.f32 1.0, %v8074_v56  ;;  %v8594_v29 = vadd.f32 %v7613_v63, %v8450_v21 }
 0x108   : > { %v854_v4 = vadd.f32 %v853_v1, %v852_v44  ;;  %v8599_v5 = vmul.f32 %v8076_v0, %v8489_v52  ;;  %8101 = vpow2.f32 %v6868_v53  ;;  %v590_v6 = vpop.f32.mrf.mxu0  ;;  %v6871_v10 = vmul.f32 -1.442695, %v8589_v61 }
 0x109   : > { %v8078_v7 = vpop.eup %8077  ;;  %8103 = vrcp.f32 %v730_v2  ;;  %v6874_v11 = vmul.f32 -1.442695, %v8594_v29  ;;  %v8604_v12 = vadd.f32 %v8450_v21, %v590_v6  ;;  %v861_v44 = vsel %vm408_vm0, %v8613_v30, 0.0 }
 0x10a   : > { %v8080_v16 = vpop.eup %8079  ;;  %v856_v17 = vadd.f32 %v855_v32, %v854_v4  ;;  %v857_v19 = vsel %vm408_vm0, %v8599_v5, 0.0  ;;  %8105 = vpow2.f32 %v6873_v26  ;;  %v7616_v20 = vpop.f32.mrf.mxu0  ;;  %v8623_v54 = vmul.f32 %v8078_v7, %v8493_v57 }
 0x10b   : > { %v8082_v52 = vpop.eup %8081  ;;  %v733_v22 = vadd.f32 1.0, %v8080_v16  ;;  %8107 = vpow2.f32 %v6871_v10  ;;  %v6872_v24 = vmul.f32 -1.442695, %v8604_v12  ;;  %v8610_v28 = vadd.f32 %v7616_v20, %v8450_v21 }
 0x10c   : > { %v8084_v38 = vpop.eup %8083  ;;  %v858_v31 = vadd.f32 %v857_v19, %v856_v17  ;;  %v8616_v34 = vmul.f32 %v8082_v52, %v8497_v62  ;;  %8109 = vpow2.f32 %v6874_v11  ;;  %v603_v37 = vpop.f32.mrf.mxu0  ;;  %v863_v7 = vsel %vm408_vm0, %v8623_v54, 0.0 }
 0x10d   : > { %v8086_v39 = vpop.eup %8085  ;;  %8111 = vrcp.f32 %v733_v22  ;;  %v731_v45 = vadd.f32 1.0, %v8084_v38  ;;  %v6877_v48 = vmul.f32 -1.442695, %v8610_v28  ;;  %v8620_v49 = vadd.f32 %v8450_v21, %v603_v37 }
 0x10e   : > { %v8088_v53 = vpop.eup %8087  ;;  %v859_v47 = vsel %vm408_vm0, %v8616_v34, 0.0  ;;  %8113 = vpow2.f32 %v6872_v24  ;;  %v7617_v62 = vpop.f32.mrf.mxu0  ;;  %v8644_v20 = vmul.f32 %v8086_v39, %v8501_v3 }
 0x10f   : > { %v8090_v23 = vpop.eup %8089  ;;  %v860_v55 = vadd.f32 %v859_v47, %v858_v31  ;;  %8115 = vrcp.f32 %v731_v45  ;;  %v6875_v41 = vmul.f32 -1.442695, %v8620_v49  ;;  %v736_v63 = vadd.f32 1.0, %v8088_v53 }
 0x110   : > { %v8092_v56 = vpop.eup %8091  ;;  %v8631_v26 = vmul.f32 %v8090_v23, %v8505_v8  ;;  %v8634_v57 = vadd.f32 %v7617_v62, %v8450_v21  ;;  %v606_v0 = vpop.f32.mrf.mxu0  ;;  %8117 = vpow2.f32 %v6877_v48 }
 0x111   : > { %v8094_v1 = vpop.eup %8093  ;;  %v862_v2 = vadd.f32 %v861_v44, %v860_v55  ;;  %v734_v32 = vadd.f32 1.0, %v8092_v56  ;;  %v8637_v4 = vadd.f32 %v8450_v21, %v606_v0  ;;  %8119 = vpow2.f32 %v6875_v41 }
 0x112   : > { %v8096_v6 = vpop.eup %8095  ;;  %v6878_v8 = vmul.f32 -1.442695, %v8634_v57  ;;  %v865_v21 = vsel %vm408_vm0, %v8631_v26, 0.0  ;;  %v8652_v31 = vmul.f32 %v8094_v1, %v8509_v13 }
 0x113   : > { %v8098_v10 = vpop.eup %8097  ;;  %v864_v11 = vadd.f32 %v863_v7, %v862_v2  ;;  %8121 = vrcp.f32 %v734_v32  ;;  %v737_v16 = vadd.f32 1.0, %v8096_v6  ;;  %v6876_v17 = vmul.f32 -1.442695, %v8637_v4 }
 0x114   : > { %v8100_v19 = vpop.eup %8099  ;;  %v8649_v52 = vmul.f32 %v8098_v10, %v8513_v18  ;;  %8123 = vpow2.f32 %v6878_v8  ;;  %v869_v18 = vsel %vm408_vm0, %v8644_v20, 0.0  ;;  %v871_v41 = vsel %vm408_vm0, %v8652_v31, 0.0 }
 0x115   : > { %v8102_v22 = vpop.eup %8101  ;;  %v866_v24 = vadd.f32 %v865_v21, %v864_v11  ;;  %8125 = vrcp.f32 %v736_v63 }
 0x116   : > { %v8104_v38 = vpop.eup %8103  ;;  %v867_v37 = vsel %vm408_vm0, %v8649_v52, 0.0  ;;  %v735_v45 = vadd.f32 1.0, %v8102_v22  ;;  %8127 = vpow2.f32 %v6876_v17 }
 0x117   : > { %v8106_v3 = vpop.eup %8105  ;;  %v868_v39 = vadd.f32 %v867_v37, %v866_v24  ;;  %8129 = vrcp.f32 %v737_v16  ;;  %v8659_v53 = vmul.f32 %v8104_v38, %v8521_v33  ;;  %v8666_v33 = vmul.f32 %v8100_v19, %v8517_v25 }
 0x118   : > { %v8108_v48 = vpop.eup %8107  ;;  %8131 = vrcp.f32 %v735_v45  ;;  %v740_v13 = vadd.f32 1.0, %v8106_v3 }
 0x119   : > { %v8110_v47 = vpop.eup %8109  ;;  %v870_v62 = vadd.f32 %v869_v18, %v868_v39  ;;  %v738_v23 = vadd.f32 1.0, %v8108_v48  ;;  %v873_v0 = vsel %vm408_vm0, %v8659_v53, 0.0  ;;  %v877_v19 = vsel %vm408_vm0, %v8666_v33, 0.0 }
 0x11a   : > { %v8112_v55 = vpop.eup %8111  ;;  %v741_v1 = vadd.f32 1.0, %v8110_v47 }
 0x11b   : > { %v8114_v56 = vpop.eup %8113  ;;  %v872_v44 = vadd.f32 %v871_v41, %v870_v62  ;;  %8133 = vrcp.f32 %v738_v23  ;;  %v8672_v10 = vmul.f32 %v8112_v55, %v8528_v46 }
 0x11c   : > { %v8116_v63 = vpop.eup %8115  ;;  %v739_v2 = vadd.f32 1.0, %v8114_v56  ;;  %8135 = vrcp.f32 %v740_v13 }
 0x11d   : > { %v874_v32 = vadd.f32 %v873_v0, %v872_v44  ;;  %v8669_v6 = vmul.f32 %v8116_v63, %v8534_v51  ;;  %v8118_v7 = vpop.eup %8117  ;;  %v879_v37 = vsel %vm408_vm0, %v8672_v10, 0.0 }
 0x11e   : > { %8137 = vrcp.f32 %v739_v2  ;;  %v8120_v8 = vpop.eup %8119  ;;  %v744_v22 = vadd.f32 1.0, %v8118_v7 }
 0x11f   : > { %v875_v11 = vsel %vm408_vm0, %v8669_v6, 0.0  ;;  %8139 = vrcp.f32 %v741_v1  ;;  %v742_v21 = vadd.f32 1.0, %v8120_v8 }
 0x120   : > { %v8122_v16 = vpop.eup %8121  ;;  %v876_v17 = vadd.f32 %v875_v11, %v874_v32 }
 0x121   : > { %v8124_v25 = vpop.eup %8123  ;;  %v8679_v51 = vmul.f32 %v8122_v16, %v8555_v9  ;;  %8141 = vrcp.f32 %v742_v21 }
 0x122   : > { %v8126_v24 = vpop.eup %8125  ;;  %v878_v38 = vadd.f32 %v877_v19, %v876_v17  ;;  %v745_v39 = vadd.f32 1.0, %v8124_v25  ;;  %8143 = vrcp.f32 %v744_v22 }
 0x123   : > { %v8128_v46 = vpop.eup %8127  ;;  %v881_v47 = vsel %vm408_vm0, %v8679_v51, 0.0  ;;  %v8686_v9 = vmul.f32 %v8126_v24, %v8545_v60 }
 0x124   : > { %v8130_v45 = vpop.eup %8129  ;;  %v880_v3 = vadd.f32 %v879_v37, %v878_v38  ;;  %v743_v48 = vadd.f32 1.0, %v8128_v46 }
 0x125   : > { %v8132_v18 = vpop.eup %8131  ;;  %v8692_v55 = vmul.f32 %v8130_v45, %v8563_v15  ;;  %v885_v63 = vsel %vm408_vm0, %v8686_v9, 0.0 }
 0x126   : > { %v882_v62 = vadd.f32 %v881_v47, %v880_v3  ;;  %v8689_v13 = vmul.f32 %v8132_v18, %v8573_v36  ;;  %8145 = vrcp.f32 %v743_v48 }
 0x127   : > { %8147 = vrcp.f32 %v745_v39  ;;  %v887_v1 = vsel %vm408_vm0, %v8692_v55, 0.0 }
 0x128   : > { %v8134_v23 = vpop.eup %8133  ;;  %v883_v41 = vsel %vm408_vm0, %v8689_v13, 0.0 }
 0x129   : > { %v884_v56 = vadd.f32 %v883_v41, %v882_v62  ;;  %v8136_v44 = vpop.eup %8135  ;;  %v8699_v60 = vmul.f32 %v8134_v23, %v8589_v61 }
 0x12a   : > { %v8707_v7 = vmul.f32 %v8136_v44, %v8582_v42 }
 0x12b   : > { %v8138_v0 = vpop.eup %8137  ;;  %v886_v36 = vadd.f32 %v885_v63, %v884_v56  ;;  %v889_v8 = vsel %vm408_vm0, %v8699_v60, 0.0 }
 0x12c   : > { %v8704_v15 = vmul.f32 %v8138_v0, %v8604_v12  ;;  %v8140_v2 = vpop.eup %8139  ;;  %v893_v12 = vsel %vm408_vm0, %v8707_v7, 0.0 }
 0x12d   : > { %v888_v32 = vadd.f32 %v887_v1, %v886_v36  ;;  %v8714_v17 = vmul.f32 %v8140_v2, %v8594_v29 }
 0x12e   : > { %v891_v61 = vsel %vm408_vm0, %v8704_v15, 0.0  ;;  %v8142_v11 = vpop.eup %8141 }
 0x12f   : > { %v890_v16 = vadd.f32 %v889_v8, %v888_v32  ;;  %v8144_v25 = vpop.eup %8143  ;;  %v8719_v19 = vmul.f32 %v8142_v11, %v8620_v49  ;;  %v895_v24 = vsel %vm408_vm0, %v8714_v17, 0.0  ;;  %v7964_v32 = vld [vmem:[%s11906_s5] sm:$0xff]  }
 0x130   : > { %v8727_v29 = vmul.f32 %v8144_v25, %v8610_v28  ;;  %7664 = vmatprep.subr.bf16.mxu0 %v7964_v32  ;;  %v1703_v8 = vld [vmem:[#allocation2] sm:$0xf] }
 0x131   : > { %v892_v21 = vadd.f32 %v891_v61, %v890_v16  ;;  %v897_v45 = vsel %vm408_vm0, %v8719_v19, 0.0  ;;  %v1704_v61 = vld [vmem:[#allocation2 + $0x4] sm:$0xf]  ;;  %v1757_v16 = vshrl.u32 %v1703_v8, 16 }
 0x132   : > { %v6950_v11 = vcombine.low %v1703_v8, %v1704_v61 }
 0x133   : > { %v8146_v42 = vpop.eup %8145  ;;  %v894_v22 = vadd.f32 %v893_v12, %v892_v21  ;;  %v1760_v21 = vshll.u32 %v1703_v8, 16  ;;  %v1759_v25 = vrot.slane %v1757_v16, 4 }
 0x134   : > { %v8724_v38 = vmul.f32 %v8146_v42, %v8637_v4  ;;  %v8148_v46 = vpop.eup %8147  ;;  %v901_v4 = vsel %vm408_vm0, %v8727_v29, 0.0  ;;  %v1770_v42 = vshrl.u32 %v1704_v61, 16 }
 0x135   : > { %v896_v37 = vadd.f32 %v895_v24, %v894_v22  ;;  %v8734_v39 = vmul.f32 %v8148_v46, %v8634_v57  ;;  %v989_v57 = vld [vmem:[%s11905_s4] sm:$0xf]  ;;  %v1762_v12 = vrot.slane %v1760_v21, 5  ;;  %v7968_v22 = vld [vmem:[%s11906_s5 + $0x8] sm:$0xff]  }
 0x136   : > { %v899_v49 = vsel %vm408_vm0, %v8724_v38, 0.0  ;;  %7626 = vmatpush3.msk.msra.mxu1 %vm994_vm4, %v989_v57  ;;  %v1737_v24 = vld [vmem:[#allocation2 + $0x8] sm:$0x1] }
 0x137   : > { %v898_v3 = vadd.f32 %v897_v45, %v896_v37  ;;  %v903_v47 = vsel %vm408_vm0, %v8734_v39, 0.0  ;;  %v1763_v46 = vor.u32 %v1762_v12, %v1759_v25  ;;  %v1766_v37 = vshll.u32 %v1704_v61, 16  ;;  %7630 = vmatprep.subr.bf16.mxu1 %v7968_v22 }
 0x138   : > { %v1772_v45 = vrot.slane %v1770_v42, 4 }
 0x139   : > { %v900_v48 = vadd.f32 %v899_v49, %v898_v3  ;;  %v1776_v49 = vshll.u32 %v1737_v24, 16  ;;  %v1764_v3 = vrot.slane %v1763_v46, 4 }
 0x13b   : > { %v902_v18 = vadd.f32 %v901_v4, %v900_v48  ;;  %v1768_v48 = vrot.slane %v1766_v37, 5  ;;  %v11972_v4 = vmov 0 }
 0x13c   : > { %v11973_v4 = vsel %vm8751_vm8, 4294967295, %v11972_v4 }
 0x13d   : > { %v904_v28 = vadd.f32 %v903_v47, %v902_v18  ;;  %11974 = vst [vmem:[#allocation3_spill] sm:$0xff] %v11973_v4  ;;  %v8758_v18 = vld [vmem:[%s11906_s5 + $0x10] sm:$0xff]   ;;  %v1773_v47 = vor.u32 %v1772_v45, %v1768_v48 }
 0x13e   : > { %11975 = vst [vmem:[#allocation4_spill] sm:$0xff] %v8758_v18 }
 0x13f   : > { %v905_v62 = vrot.slane %v904_v28, 4 }
 0x141   : > { %v906_v23 = vadd.f32 %v905_v62, %v904_v28  ;;  %v1778_v28 = vrot.slane %v1776_v49, 5  ;;  %v1769_v62 = vsel %vm8751_vm8, %v1764_v3, %v1768_v48 }
 0x143   : > { %v907_v41 = vrot.slane %v906_v23, 2 }
 0x145   : > { %v908_v56 = vadd.f32 %v907_v41, %v906_v23  ;;  %v1774_v23 = vrot.slane %v1773_v47, 4 }
 0x147   : > { %v909_v44 = vrot.slane %v908_v56, 1  ;;  %v1779_v41 = vsel %vm8751_vm8, %v1774_v23, %v1778_v28 }
 0x149   : > { %v910_v63 = vadd.f32 %v909_v44, %v908_v56  ;;  %v6917_v56 = vcombine.low %v1769_v62, %v1779_v41  ;;  %v8929_v62 = vld [vmem:[%s11906_s5 + $0x18] sm:$0xff]  }
 0x14a   : > { %12008 = vst [vmem:[#allocation37_spill] sm:$0xff] %v8929_v62 }
 0x14b   : > { %v912_v0 = vmul.f32 0.00390625, %v910_v63 }
 0x14d   : > { %7623 = vmatmul.mubr.msk.f32.vlgmr.msra.gmra.mxu0 %vm408_vm0, %v912_v0 }
 0x14e   : > { %7665 = vmatpush3.bf16.msra.mxu0 %v7964_v32  ;;  %7666 = vmatprep.mubr.msk.bf16.mxu0 %vm408_vm0, %v6950_v11 }
 0x14f   : > { %7732 = vmatprep.subr.bf16.mxu0 %v8929_v62 }
 0x20d   : > { %v984_v36 = vpop.f32.mrf.mxu0 }
 0x20e   : > { %v988_v1 = vmax.f32 %v984_v36, 0.0 }
 0x20f   : > { %v7624_v2 = vpop.f32.mrf.mxu0 }
 0x210   : > { %7628 = vmatmul.mubr.msk.f32.vlgmr.msra.gmra.mxu1 %vm990_vm5, %v988_v1  ;;  %v1074_v1 = vlaneseq }
 0x211   : > { %7631 = vmatpush3.bf16.msra.mxu1 %v7968_v22  ;;  %7632 = vmatprep.mubr.msk.bf16.mxu1 %vm408_vm0, %v6917_v56 }
 0x212   : > { %7698 = vmatprep.subr.bf16.mxu1 %v8758_v18  ;;  %v1075_v2 = vshrl.u32 %v1074_v1, 7 }
 0x214   : > { %v1076_v32 = vsub.s32 0, %v1075_v2 }
 0x2d0   : > { %v1064_v44 = vpop.f32.mrf.mxu1 }
 0x2d1   : > { %v6882_v63 = vmul.f32 -1.442695, %v1064_v44 }
 0x2d2   : > { %v7629_v0 = vpop.f32.mrf.mxu1 }
 0x2d3   : > { %8149 = vpow2.f32 %v6882_v63 }
 0x2e0   : > { %v8150_v57 = vpop.eup %8149 }
 0x2e1   : > { %v1071_v36 = vadd.f32 1.0, %v8150_v57 }
 0x2e3   : > { %8151 = vrcp.f32 %v1071_v36 }
 0x2f0   : > { %v8152_v8 = vpop.eup %8151 }
 0x2f1   : > { %v1077_v61 = vrot.slane %v8152_v8, %v1076_v32 }
 0x2f3   : > { %v8767_v11 = vmul.f32 %v1077_v61, %v8531_v50  ;;  %v8770_v16 = vmul.f32 %v1077_v61, %v8541_v59  ;;  %v8773_v21 = vmul.f32 %v1077_v61, %v8525_v43  ;;  %v8776_v25 = vmul.f32 %v1077_v61, %v8538_v58 }
 0x2f4   : > { %v8779_v12 = vmul.f32 %v1077_v61, %v8560_v14  ;;  %v8782_v42 = vmul.f32 %v1077_v61, %v8579_v35  ;;  %v8785_v22 = vmul.f32 %v1077_v61, %v8567_v27  ;;  %v8788_v50 = vmul.f32 %v1077_v61, %v8576_v40 }
 0x2f5   : > { %11976 = vst [vmem:[#allocation5_spill] sm:$0xff] %v8767_v11  ;;  %11977 = vst [vmem:[#allocation6_spill] sm:$0xff] %v8770_v16  ;;  %v8791_v59 = vmul.f32 %v1077_v61, %v8599_v5  ;;  %v8794_v43 = vmul.f32 %v1077_v61, %v8616_v34  ;;  %v8797_v58 = vmul.f32 %v1077_v61, %v8613_v30 }
 0x2f6   : > { %11978 = vst [vmem:[#allocation7_spill] sm:$0xff] %v8773_v21  ;;  %11979 = vst [vmem:[#allocation8_spill] sm:$0xff] %v8776_v25  ;;  %v8800_v14 = vmul.f32 %v1077_v61, %v8623_v54  ;;  %v8803_v35 = vmul.f32 %v1077_v61, %v8631_v26  ;;  %v8806_v27 = vmul.f32 %v1077_v61, %v8649_v52 }
 0x2f7   : > { %11980 = vst [vmem:[#allocation9_spill] sm:$0xff] %v8779_v12  ;;  %11981 = vst [vmem:[#allocation10_spill] sm:$0xff] %v8782_v42  ;;  %v8809_v40 = vmul.f32 %v1077_v61, %v8644_v20  ;;  %v8812_v5 = vmul.f32 %v1077_v61, %v8652_v31  ;;  %v8815_v34 = vmul.f32 %v1077_v61, %v8659_v53 }
 0x2f8   : > { %11982 = vst [vmem:[#allocation11_spill] sm:$0xff] %v8785_v22  ;;  %11983 = vst [vmem:[#allocation12_spill] sm:$0xff] %v8788_v50  ;;  %v8818_v30 = vmul.f32 %v1077_v61, %v8669_v6  ;;  %v8821_v54 = vmul.f32 %v1077_v61, %v8666_v33  ;;  %v8824_v26 = vmul.f32 %v1077_v61, %v8672_v10 }
 0x2f9   : > { %11984 = vst [vmem:[#allocation13_spill] sm:$0xff] %v8791_v59  ;;  %11985 = vst [vmem:[#allocation14_spill] sm:$0xff] %v8794_v43  ;;  %v8827_v52 = vmul.f32 %v1077_v61, %v8679_v51  ;;  %v8830_v20 = vmul.f32 %v1077_v61, %v8689_v13  ;;  %v8833_v31 = vmul.f32 %v1077_v61, %v8686_v9 }
 0x2fa   : > { %11986 = vst [vmem:[#allocation15_spill] sm:$0xff] %v8797_v58  ;;  %11987 = vst [vmem:[#allocation16_spill] sm:$0xff] %v8800_v14  ;;  %v8836_v53 = vmul.f32 %v1077_v61, %v8692_v55  ;;  %v8839_v6 = vmul.f32 %v1077_v61, %v8699_v60  ;;  %v8842_v33 = vmul.f32 %v1077_v61, %v8704_v15 }
 0x2fb   : > { %11988 = vst [vmem:[#allocation17_spill] sm:$0xff] %v8803_v35  ;;  %11989 = vst [vmem:[#allocation18_spill] sm:$0xff] %v8806_v27  ;;  %v8845_v10 = vmul.f32 %v1077_v61, %v8707_v7  ;;  %v8848_v51 = vmul.f32 %v1077_v61, %v8714_v17  ;;  %v8851_v13 = vmul.f32 %v1077_v61, %v8719_v19 }
 0x2fc   : > { %11990 = vst [vmem:[#allocation19_spill] sm:$0xff] %v8809_v40  ;;  %11991 = vst [vmem:[#allocation20_spill] sm:$0xff] %v8812_v5  ;;  %v8854_v9 = vmul.f32 %v1077_v61, %v8724_v38  ;;  %v8857_v55 = vmul.f32 %v1077_v61, %v8727_v29  ;;  %v8860_v60 = vmul.f32 %v1077_v61, %v8734_v39 }
 0x2fd   : > { %11992 = vst [vmem:[#allocation21_spill] sm:$0xff] %v8815_v34  ;;  %11993 = vst [vmem:[#allocation22_spill] sm:$0xff] %v8818_v30  ;;  %v8864_v15 = vpack.c.bf16 %v8767_v11, %v8767_v11  ;;  %v8868_v7 = vpack.c.bf16 %v8770_v16, %v8770_v16  ;;  %v8872_v17 = vpack.c.bf16 %v8773_v21, %v8773_v21 }
 0x2fe   : > { %11994 = vst [vmem:[#allocation23_spill] sm:$0xff] %v8821_v54  ;;  %11995 = vst [vmem:[#allocation24_spill] sm:$0xff] %v8824_v26  ;;  %v8876_v19 = vpack.c.bf16 %v8776_v25, %v8776_v25  ;;  %v8880_v38 = vpack.c.bf16 %v8779_v12, %v8779_v12  ;;  %v8884_v29 = vpack.c.bf16 %v8782_v42, %v8782_v42 }
 0x2ff   : > { %11996 = vst [vmem:[#allocation25_spill] sm:$0xff] %v8827_v52  ;;  %11997 = vst [vmem:[#allocation26_spill] sm:$0xff] %v8830_v20  ;;  %v8888_v39 = vpack.c.bf16 %v8785_v22, %v8785_v22  ;;  %v8892_v24 = vpack.c.bf16 %v8788_v50, %v8788_v50  ;;  %v8896_v46 = vpack.c.bf16 %v8791_v59, %v8791_v59 }
 0x300   : > { %11998 = vst [vmem:[#allocation27_spill] sm:$0xff] %v8833_v31  ;;  %11999 = vst [vmem:[#allocation28_spill] sm:$0xff] %v8836_v53  ;;  %v8900_v37 = vpack.c.bf16 %v8794_v43, %v8794_v43  ;;  %v8904_v45 = vpack.c.bf16 %v8797_v58, %v8797_v58  ;;  %v8908_v49 = vpack.c.bf16 %v8800_v14, %v8800_v14 }
 0x301   : > { %12000 = vst [vmem:[#allocation29_spill] sm:$0xff] %v8839_v6  ;;  %12001 = vst [vmem:[#allocation30_spill] sm:$0xff] %v8842_v33  ;;  %v8912_v3 = vpack.c.bf16 %v8803_v35, %v8803_v35  ;;  %v8916_v48 = vpack.c.bf16 %v8806_v27, %v8806_v27  ;;  %v8920_v47 = vpack.c.bf16 %v8809_v40, %v8809_v40 }
 0x302   : > { %12002 = vst [vmem:[#allocation31_spill] sm:$0xff] %v8845_v10  ;;  %12003 = vst [vmem:[#allocation32_spill] sm:$0xff] %v8848_v51  ;;  %v8924_v28 = vpack.c.bf16 %v8812_v5, %v8812_v5  ;;  %v8933_v23 = vpack.c.bf16 %v8815_v34, %v8815_v34  ;;  %v8937_v41 = vpack.c.bf16 %v8818_v30, %v8818_v30  ;;  %v1300_v30 = vshrl.u32 %v8880_v38, 16 }
 0x303   : > { %12004 = vst [vmem:[#allocation33_spill] sm:$0xff] %v8851_v13  ;;  %12005 = vst [vmem:[#allocation34_spill] sm:$0xff] %v8854_v9  ;;  %v8941_v56 = vpack.c.bf16 %v8821_v54, %v8821_v54  ;;  %v8945_v44 = vpack.c.bf16 %v8824_v26, %v8824_v26  ;;  %v8949_v63 = vpack.c.bf16 %v8827_v52, %v8827_v52  ;;  %v1283_v52 = vshrl.u32 %v8872_v17, 16 }
 0x304   : > { %12006 = vst [vmem:[#allocation35_spill] sm:$0xff] %v8857_v55  ;;  %12007 = vst [vmem:[#allocation36_spill] sm:$0xff] %v8860_v60  ;;  %v8953_v0 = vpack.c.bf16 %v8830_v20, %v8830_v20  ;;  %v8957_v57 = vpack.c.bf16 %v8833_v31, %v8833_v31  ;;  %v8961_v36 = vpack.c.bf16 %v8836_v53, %v8836_v53  ;;  %v1274_v53 = vshrl.u32 %v8868_v7, 16 }
 0x305   : > { %v8966_v1 = vpack.c.bf16 %v8839_v6, %v8839_v6  ;;  %v8970_v2 = vpack.c.bf16 %v8842_v33, %v8842_v33  ;;  %v8974_v32 = vpack.c.bf16 %v8845_v10, %v8845_v10  ;;  %v8978_v8 = vpack.c.bf16 %v8848_v51, %v8848_v51 }
 0x306   : > { %12009 = vst [vmem:[#allocation38_spill] sm:$0xff] %v8953_v0  ;;  %12010 = vst [vmem:[#allocation39_spill] sm:$0xff] %v8957_v57  ;;  %v8982_v61 = vpack.c.bf16 %v8851_v13, %v8851_v13  ;;  %v8986_v6 = vpack.c.bf16 %v8854_v9, %v8854_v9  ;;  %v8990_v33 = vpack.c.bf16 %v8857_v55, %v8857_v55  ;;  %v1291_v31 = vshrl.u32 %v8876_v19, 16 }
 0x307   : > { %12011 = vst [vmem:[#allocation40_spill] sm:$0xff] %v8961_v36  ;;  %12012 = vst [vmem:[#allocation41_spill] sm:$0xff] %v8966_v1  ;;  %v8994_v10 = vpack.c.bf16 %v8860_v60, %v8860_v60  ;;  %v1308_v20 = vshrl.u32 %v8884_v29, 16  ;;  %v1317_v26 = vshrl.u32 %v8888_v39, 16  ;;  %v1325_v34 = vshrl.u32 %v8892_v24, 16 }
 0x308   : > { %12013 = vst [vmem:[#allocation42_spill] sm:$0xff] %v8970_v2  ;;  %12014 = vst [vmem:[#allocation43_spill] sm:$0xff] %v8974_v32  ;;  %v1334_v54 = vshrl.u32 %v8896_v46, 16  ;;  %v1342_v27 = vshrl.u32 %v8900_v37, 16  ;;  %v1351_v5 = vshrl.u32 %v8904_v45, 16  ;;  %v1359_v35 = vshrl.u32 %v8908_v49, 16 }
 0x309   : > { %12015 = vst [vmem:[#allocation44_spill] sm:$0xff] %v8978_v8  ;;  %12016 = vst [vmem:[#allocation45_spill] sm:$0xff] %v8982_v61  ;;  %v1368_v40 = vshrl.u32 %v8912_v3, 16  ;;  %v1376_v43 = vshrl.u32 %v8916_v48, 16  ;;  %v1385_v14 = vshrl.u32 %v8920_v47, 16  ;;  %v1393_v59 = vshrl.u32 %v8924_v28, 16 }
 0x30a   : > { %12017 = vst [vmem:[#allocation46_spill] sm:$0xff] %v8986_v6  ;;  %12018 = vst [vmem:[#allocation47_spill] sm:$0xff] %v8990_v33  ;;  %v1402_v58 = vshrl.u32 %v8933_v23, 16  ;;  %v1410_v42 = vshrl.u32 %v8937_v41, 16  ;;  %v1419_v50 = vshrl.u32 %v8941_v56, 16  ;;  %v1427_v12 = vshrl.u32 %v8945_v44, 16 }
 0x30b   : > { %v1436_v22 = vshrl.u32 %v8949_v63, 16  ;;  %v1444_v16 = vshrl.u32 %v8953_v0, 16  ;;  %v1453_v25 = vshrl.u32 %v8957_v57, 16  ;;  %v1461_v11 = vshrl.u32 %v8961_v36, 16 }
 0x30c   : > { %v1470_v21 = vshrl.u32 %v8966_v1, 16  ;;  %v1478_v18 = vshrl.u32 %v8970_v2, 16  ;;  %v1487_v4 = vshrl.u32 %v8974_v32, 16  ;;  %v1495_v62 = vshrl.u32 %v8978_v8, 16 }
 0x30d   : > { %v1504_v57 = vshrl.u32 %v8982_v61, 16  ;;  %v1512_v36 = vshrl.u32 %v8986_v6, 16  ;;  %v1521_v1 = vshrl.u32 %v8990_v33, 16  ;;  %v1529_v2 = vshrl.u32 %v8994_v10, 16 }
 0x30e   : > { %v12019_v32 = vshrl.u32 %v8864_v15, 16  ;;  %v9064_v9 = vrot.slane %v1274_v53, 7  ;;  %v9066_v8 = vrot.slane %v1283_v52, 7  ;;  %v9068_v55 = vrot.slane %v1291_v31, 7 }
 0x30f   : > { %v9070_v61 = vrot.slane %v1300_v30, 7  ;;  %v9072_v60 = vrot.slane %v1308_v20, 7  ;;  %v9074_v6 = vrot.slane %v1317_v26, 7  ;;  %v9076_v51 = vrot.slane %v1325_v34, 7 }
 0x310   : > { %v9062_v0 = vrot.slane %v12019_v32, 7  ;;  %v9078_v33 = vrot.slane %v1334_v54, 7  ;;  %v9080_v13 = vrot.slane %v1342_v27, 7  ;;  %v9082_v32 = vrot.slane %v1351_v5, 7 }
 0x311   : > { %v9084_v53 = vrot.slane %v1359_v35, 7  ;;  %v9086_v52 = vrot.slane %v1368_v40, 7  ;;  %v9088_v31 = vrot.slane %v1376_v43, 7  ;;  %v9090_v30 = vrot.slane %v1385_v14, 7 }
 0x312   : > { %v9092_v20 = vrot.slane %v1393_v59, 7  ;;  %v9094_v26 = vrot.slane %v1402_v58, 7  ;;  %v9096_v34 = vrot.slane %v1410_v42, 7  ;;  %v9098_v54 = vrot.slane %v1419_v50, 7 }
 0x313   : > { %v9100_v27 = vrot.slane %v1427_v12, 7  ;;  %v9102_v5 = vrot.slane %v1436_v22, 7  ;;  %v9104_v35 = vrot.slane %v1444_v16, 7  ;;  %v9106_v40 = vrot.slane %v1453_v25, 7 }
 0x314   : > { %12020 = vst [vmem:[#allocation48_spill] sm:$0xff] %v9092_v20  ;;  %12021 = vst [vmem:[#allocation49_spill] sm:$0xff] %v9096_v34  ;;  %v9108_v43 = vrot.slane %v1461_v11, 7  ;;  %v9110_v14 = vrot.slane %v1470_v21, 7  ;;  %v9112_v59 = vrot.slane %v1478_v18, 7  ;;  %v9114_v58 = vrot.slane %v1487_v4, 7 }
 0x315   : > { %12022 = vst [vmem:[#allocation50_spill] sm:$0xff] %v9100_v27  ;;  %12023 = vst [vmem:[#allocation51_spill] sm:$0xff] %v9104_v35  ;;  %v9116_v42 = vrot.slane %v1495_v62, 7  ;;  %v9118_v50 = vrot.slane %v1504_v57, 7  ;;  %v9120_v12 = vrot.slane %v1512_v36, 7  ;;  %v9122_v22 = vrot.slane %v1521_v1, 7 }
 0x316   : > { %12024 = vst [vmem:[#allocation52_spill] sm:$0xff] %v9108_v43  ;;  %12025 = vst [vmem:[#allocation53_spill] sm:$0xff] %v9112_v59  ;;  %v9124_v16 = vrot.slane %v1529_v2, 7  ;;  %v12029_v11 = vshll.u32 %v8864_v15, 16  ;;  %v12030_v4 = vshll.u32 %v8868_v7, 16  ;;  %v12031_v57 = vshll.u32 %v8872_v17, 16 }
 0x317   : > { %12026 = vst [vmem:[#allocation54_spill] sm:$0xff] %v9116_v42  ;;  %12027 = vst [vmem:[#allocation55_spill] sm:$0xff] %v9120_v12  ;;  %v12032_v15 = vshll.u32 %v8876_v19, 16  ;;  %v12033_v7 = vshll.u32 %v8880_v38, 16  ;;  %v12036_v38 = vshll.u32 %v8892_v24, 16  ;;  %v12039_v24 = vshll.u32 %v8904_v45, 16 }
 0x318   : > { %12028 = vst [vmem:[#allocation56_spill] sm:$0xff] %v9124_v16  ;;  %v9129_v25 = vor.u32 %v12029_v11, %v9062_v0  ;;  %v9135_v21 = vor.u32 %v12030_v4, %v9064_v9  ;;  %v9141_v36 = vor.u32 %v12031_v57, %v9066_v8  ;;  %v12034_v57 = vshll.u32 %v8884_v29, 16  ;;  %v12054_v17 = vld [vmem:[#allocation38_spill] sm:$0xff]  ;;  %v12059_v18 = vld [vmem:[#allocation40_spill] sm:$0xff] }
 0x319   : > { %v9147_v2 = vor.u32 %v12032_v15, %v9068_v55  ;;  %v9153_v4 = vor.u32 %v12033_v7, %v9070_v61  ;;  %v12035_v15 = vshll.u32 %v8888_v39, 16  ;;  %v9171_v7 = vor.u32 %v12036_v38, %v9076_v51 }
 0x31a   : > { %v9159_v62 = vor.u32 %v12034_v57, %v9072_v60  ;;  %v12037_v29 = vshll.u32 %v8896_v46, 16  ;;  %v12038_v39 = vshll.u32 %v8900_v37, 16  ;;  %v9189_v38 = vor.u32 %v12039_v24, %v9082_v32 }
 0x31b   : > { %v9165_v11 = vor.u32 %v12035_v15, %v9074_v6  ;;  %v12040_v46 = vshll.u32 %v8908_v49, 16  ;;  %v12041_v37 = vshll.u32 %v8912_v3, 16  ;;  %v1374_v1 = vrot.slane %v9086_v52, 4 }
 0x31c   : > { %v9177_v57 = vor.u32 %v12037_v29, %v9078_v33  ;;  %v9183_v15 = vor.u32 %v12038_v39, %v9080_v13  ;;  %v12042_v45 = vshll.u32 %v8916_v48, 16  ;;  %v12043_v49 = vshll.u32 %v8920_v47, 16 }
 0x31d   : > { %v9195_v29 = vor.u32 %v12040_v46, %v9084_v53  ;;  %v9201_v39 = vor.u32 %v12041_v37, %v9086_v52  ;;  %v12045_v3 = vshll.u32 %v8924_v28, 16  ;;  %v12046_v52 = vshll.u32 %v8933_v23, 16 }
 0x31e   : > { %v1381_v24 = vor.u32 %v12042_v45, %v9088_v31  ;;  %v9211_v46 = vor.u32 %v12043_v49, %v9090_v30  ;;  %v1408_v45 = vrot.slane %v9094_v26, 4  ;;  %v12048_v47 = vshll.u32 %v8937_v41, 16 }
 0x31f   : > { %v1398_v37 = vor.u32 %v12045_v3, %v9092_v20  ;;  %v9221_v48 = vor.u32 %v12046_v52, %v9094_v26  ;;  %v12049_v19 = vshll.u32 %v8941_v56, 16  ;;  %v1425_v3 = vrot.slane %v9098_v54, 4  ;;  %v12078_v20 = vld [vmem:[#allocation46_spill] sm:$0xff] }
 0x320   : > { %12044 = vst [vmem:[#allocation57_spill] sm:$0xff] %v9211_v46  ;;  %v1415_v49 = vor.u32 %v12048_v47, %v9096_v34  ;;  %v12051_v23 = vshll.u32 %v8945_v44, 16  ;;  %v12052_v26 = vshll.u32 %v8949_v63, 16  ;;  %v1442_v47 = vrot.slane %v9102_v5, 4 }
 0x321   : > { %12047 = vst [vmem:[#allocation58_spill] sm:$0xff] %v9221_v48  ;;  %v9231_v28 = vor.u32 %v12049_v19, %v9098_v54  ;;  %v12055_v56 = vshll.u32 %v12054_v17, 16  ;;  %v12056_v54 = vld [vmem:[#allocation39_spill] sm:$0xff]  ;;  %v12060_v63 = vshll.u32 %v12059_v18, 16  ;;  %v12063_v17 = vld [vmem:[#allocation41_spill] sm:$0xff]  ;;  %v1510_v48 = vrot.slane %v9118_v50, 4 }
 0x322   : > { %v1432_v52 = vor.u32 %v12051_v23, %v9100_v27  ;;  %v9241_v41 = vor.u32 %v12052_v26, %v9102_v5  ;;  %v12057_v34 = vshll.u32 %v12056_v54, 16  ;;  %v1459_v23 = vrot.slane %v9106_v40, 4 }
 0x323   : > { %12050 = vst [vmem:[#allocation59_spill] sm:$0xff] %v9231_v28  ;;  %v1449_v19 = vor.u32 %v12055_v56, %v9104_v35  ;;  %v1466_v26 = vor.u32 %v12060_v63, %v9108_v43  ;;  %v12064_v56 = vshll.u32 %v12063_v17, 16  ;;  %v1602_v63 = vld [vmem:[#allocation2 + $0x20] sm:$0x1]  ;;  %v12086_v46 = vrot.slane %v9062_v0, 4 }
 0x324   : > { %12053 = vst [vmem:[#allocation60_spill] sm:$0xff] %v9241_v41  ;;  %v9251_v44 = vor.u32 %v12057_v34, %v9106_v40  ;;  %v1476_v34 = vrot.slane %v9110_v14, 4  ;;  %v12066_v40 = vld [vmem:[#allocation42_spill] sm:$0xff]  ;;  %v1589_v41 = vld [vmem:[#allocation2 + $0xc] sm:$0xf] }
 0x325   : > { %v9267_v54 = vor.u32 %v12064_v56, %v9110_v14  ;;  %v12067_v28 = vshll.u32 %v12066_v40, 16  ;;  %v1493_v14 = vrot.slane %v9114_v58, 4  ;;  %v1616_v0 = vld [vmem:[#allocation2 + $0x38] sm:$0x1]  ;;  %v1651_v43 = vld [vmem:[#allocation2 + $0x74] sm:$0x1] }
 0x326   : > { %12058 = vst [vmem:[#allocation38_spill] sm:$0xff] %v9251_v44  ;;  %v12070_v44 = vld [vmem:[#allocation43_spill] sm:$0xff] }
 0x327   : > { %12065 = vst [vmem:[#allocation39_spill] sm:$0xff] %v9267_v54  ;;  %v1483_v18 = vor.u32 %v12067_v28, %v9112_v59  ;;  %v12071_v17 = vshll.u32 %v12070_v44, 16  ;;  %v12073_v54 = vld [vmem:[#allocation44_spill] sm:$0xff]  ;;  %v12075_v59 = vld [vmem:[#allocation45_spill] sm:$0xff]  ;;  %v12079_v44 = vshll.u32 %v12078_v20, 16  ;;  %v12085_v20 = vshll.u32 %v8994_v10, 16 }
 0x328   : > { %v12074_v40 = vshll.u32 %v12073_v54, 16  ;;  %v12076_v35 = vshll.u32 %v12075_v59, 16  ;;  %v12082_v59 = vld [vmem:[#allocation47_spill] sm:$0xff]  ;;  %v12087_v10 = vrot.slane %v9066_v8, 4 }
 0x329   : > { %v9283_v56 = vor.u32 %v12071_v17, %v9114_v58  ;;  %v1517_v17 = vor.u32 %v12079_v44, %v9120_v12  ;;  %v9300_v58 = vld [vmem:[#allocation2 + $0x18] sm:$0xf]  ;;  %v1534_v44 = vor.u32 %v12085_v20, %v9124_v16  ;;  %v1595_v12 = vld [vmem:[#allocation2 + $0x14] sm:$0x1]  ;;  %v12088_v20 = vrot.slane %v9070_v61, 4 }
 0x32a   : > { %v1500_v28 = vor.u32 %v12074_v40, %v9116_v42  ;;  %v9293_v27 = vor.u32 %v12076_v35, %v9118_v50  ;;  %v12083_v35 = vshll.u32 %v12082_v59, 16  ;;  %v1527_v50 = vrot.slane %v9122_v22, 4  ;;  %v9320_v42 = vld [vmem:[#allocation2 + $0x24] sm:$0xf]  ;;  %v1609_v16 = vld [vmem:[#allocation2 + $0x2c] sm:$0x1] }
 0x32b   : > { %12072 = vst [vmem:[#allocation40_spill] sm:$0xff] %v9283_v56  ;;  %v1280_v59 = vsel %vm9276_vm13, %v12086_v46, %v9135_v21  ;;  %v1314_v56 = vsel %vm9276_vm13, %v12088_v20, %v9159_v62  ;;  %v12090_v21 = vrot.slane %v9078_v33, 4  ;;  %v12091_v62 = vrot.slane %v9082_v32, 4  ;;  %v1623_v33 = vld [vmem:[#allocation2 + $0x44] sm:$0x1] }
 0x32c   : > { %12077 = vst [vmem:[#allocation41_spill] sm:$0xff] %v9293_v27  ;;  %v9311_v40 = vor.u32 %v12083_v35, %v9122_v22  ;;  %v9318_v27 = vld [vmem:[#allocation2 + $0x30] sm:$0xf]  ;;  %v1590_v22 = vsel %vm9260_vm12, %v9129_v25, %v1589_v41  ;;  %v1297_v35 = vsel %vm9276_vm13, %v12087_v10, %v9147_v2  ;;  %1592 = vst.msk [vmem:[#allocation2 + $0x10] sm:$0xf] %vm1110_vm1, %v1280_v59  ;;  %v12089_v25 = vrot.slane %v9074_v6, 4 }
 0x32d   : > { %1591 = vst [vmem:[#allocation2 + $0xc] sm:$0xf] %v1590_v22  ;;  %v1348_v61 = vsel %vm9276_vm13, %v12090_v21, %v9183_v15  ;;  %v1365_v2 = vsel %vm9276_vm13, %v12091_v62, %v9195_v29  ;;  %v1382_v46 = vsel %vm9276_vm13, %v1374_v1, %v1381_v24  ;;  %1601 = vst.msk [vmem:[#allocation2 + $0x1c] sm:$0xf] %vm1110_vm1, %v1297_v35  ;;  %v9362_v6 = vld [vmem:[#allocation2 + $0x3c] sm:$0xf] }
 0x32e   : > { %12084 = vst [vmem:[#allocation42_spill] sm:$0xff] %v9311_v40  ;;  %v9340_v40 = vld [vmem:[#allocation2 + $0x48] sm:$0xf]  ;;  %v1331_v8 = vsel %vm9276_vm13, %v12089_v25, %v9171_v7  ;;  %1608 = vst.msk [vmem:[#allocation2 + $0x28] sm:$0xf] %vm1110_vm1, %v1314_v56  ;;  %v12092_v41 = vrot.slane %v9090_v30, 4  ;;  %v1416_v32 = vsel %vm9276_vm13, %v1408_v45, %v1415_v49  ;;  %v1433_v29 = vsel %vm9276_vm13, %v1425_v3, %v1432_v52 }
 0x32f   : > { %v1630_v7 = vld [vmem:[#allocation2 + $0x50] sm:$0x1]  ;;  %v1450_v1 = vsel %vm9276_vm13, %v1442_v47, %v1449_v19  ;;  %1615 = vst.msk [vmem:[#allocation2 + $0x34] sm:$0xf] %vm1110_vm1, %v1331_v8  ;;  %1622 = vst.msk [vmem:[#allocation2 + $0x40] sm:$0xf] %vm1110_vm1, %v1348_v61  ;;  %v1467_v45 = vsel %vm9276_vm13, %v1459_v23, %v1466_v26  ;;  %v1484_v49 = vsel %vm9276_vm13, %v1476_v34, %v1483_v18 }
 0x330   : > { %v1399_v15 = vsel %vm9276_vm13, %v12092_v41, %v1398_v37  ;;  %1629 = vst.msk [vmem:[#allocation2 + $0x4c] sm:$0xf] %vm1110_vm1, %v1365_v2  ;;  %1636 = vst.msk [vmem:[#allocation2 + $0x58] sm:$0xf] %vm1110_vm1, %v1382_v46  ;;  %v9378_v30 = vld [vmem:[#allocation2 + $0x60] sm:$0xf]  ;;  %v1501_v3 = vsel %vm9276_vm13, %v1493_v14, %v1500_v28  ;;  %v1518_v52 = vsel %vm9276_vm13, %v1510_v48, %v1517_v17 }
 0x331   : > { %v9380_v24 = vld [vmem:[#allocation2 + $0x54] sm:$0xf]  ;;  %v1644_v37 = vld [vmem:[#allocation2 + $0x68] sm:$0x1]  ;;  %1643 = vst.msk [vmem:[#allocation2 + $0x64] sm:$0xf] %vm1110_vm1, %v1399_v15  ;;  %v1535_v26 = vsel %vm9276_vm13, %v1527_v50, %v1534_v44  ;;  %v1599_v48 = vsel %vm9260_vm12, %v9141_v36, %v9300_v58  ;;  %v1613_v28 = vsel %vm9260_vm12, %v9165_v11, %v9318_v27  ;;  %v1627_v11 = vsel %vm9260_vm12, %v9189_v38, %v9340_v40 }
 0x332   : > { %1650 = vst.msk [vmem:[#allocation2 + $0x70] sm:$0xf] %vm1110_vm1, %v1416_v32  ;;  %1657 = vst.msk [vmem:[#allocation2 + $0x7c] sm:$0xf] %vm1110_vm1, %v1433_v29  ;;  %v1637_v47 = vld [vmem:[#allocation2 + $0x5c] sm:$0x1]  ;;  %v1634_v10 = vsel %vm9260_vm12, %v9201_v39, %v9380_v24 }
 0x333   : > { %1664 = vst.msk [vmem:[#allocation2 + $0x88] sm:$0xf] %vm1110_vm1, %v1450_v1  ;;  %v1654_v19 = vld [vmem:[#allocation2 + $0x78] sm:$0xf]  ;;  %v1647_v23 = vld [vmem:[#allocation2 + $0x6c] sm:$0xf] }
 0x334   : > { %v12093_v34 = vrot.slane %v9064_v9, 4  ;;  %v12094_v56 = vrot.slane %v9068_v55, 4  ;;  %1671 = vst.msk [vmem:[#allocation2 + $0x94] sm:$0xf] %vm1110_vm1, %v1467_v45  ;;  %1678 = vst.msk [vmem:[#allocation2 + $0xa0] sm:$0xf] %vm1110_vm1, %v1484_v49  ;;  %v1606_v55 = vsel %vm9260_vm12, %v9153_v4, %v9320_v42 }
 0x335   : > { %1685 = vst.msk [vmem:[#allocation2 + $0xac] sm:$0xf] %vm1110_vm1, %v1501_v3  ;;  %1692 = vst.msk [vmem:[#allocation2 + $0xb8] sm:$0xf] %vm1110_vm1, %v1518_v52  ;;  %v1658_v9 = vld [vmem:[#allocation2 + $0x80] sm:$0x1] }
 0x336   : > { %v1596_v18 = vsel %vm9304_vm14, %v12093_v34, %v1595_v12  ;;  %v1603_v14 = vsel %vm9304_vm14, %v12094_v56, %v1602_v63  ;;  %v9412_v12 = vld [vmem:[#allocation2 + $0x90] sm:$0xf]  ;;  %v12095_v36 = vrot.slane %v9072_v60, 4  ;;  %v12096_v17 = vrot.slane %v9076_v51, 4  ;;  %1600 = vst [vmem:[#allocation2 + $0x18] sm:$0xf] %v1599_v48 }
 0x337   : > { %1597 = vst [vmem:[#allocation2 + $0x14] sm:$0x1] %v1596_v18  ;;  %1604 = vst [vmem:[#allocation2 + $0x20] sm:$0x1] %v1603_v14  ;;  %v1661_v42 = vld [vmem:[#allocation2 + $0x84] sm:$0xf] }
 0x338   : > { %v1610_v63 = vsel %vm9304_vm14, %v12095_v36, %v1609_v16  ;;  %v1617_v58 = vsel %vm9304_vm14, %v12096_v17, %v1616_v0  ;;  %1699 = vst.msk [vmem:[#allocation2 + $0xc4] sm:$0xf] %vm1110_vm1, %v1535_v26  ;;  %v1672_v60 = vld [vmem:[#allocation2 + $0x98] sm:$0x1]  ;;  %v1665_v4 = vld [vmem:[#allocation2 + $0x8c] sm:$0x1]  ;;  %v1620_v16 = vsel %vm9260_vm12, %v9177_v57, %v9362_v6 }
 0x339   : > { %v12097_v27 = vrot.slane %v9080_v13, 4  ;;  %v12098_v50 = vrot.slane %v9084_v53, 4  ;;  %1607 = vst [vmem:[#allocation2 + $0x24] sm:$0xf] %v1606_v55  ;;  %1611 = vst [vmem:[#allocation2 + $0x2c] sm:$0x1] %v1610_v63 }
 0x33a   : > { %1614 = vst [vmem:[#allocation2 + $0x30] sm:$0xf] %v1613_v28  ;;  %1618 = vst [vmem:[#allocation2 + $0x38] sm:$0x1] %v1617_v58  ;;  %v1682_v57 = vld [vmem:[#allocation2 + $0xa8] sm:$0xf] }
 0x33b   : > { %v1624_v51 = vsel %vm9304_vm14, %v12097_v27, %v1623_v33  ;;  %v1631_v44 = vsel %vm9304_vm14, %v12098_v50, %v1630_v7  ;;  %v1675_v59 = vld [vmem:[#allocation2 + $0x9c] sm:$0xf]  ;;  %v1686_v13 = vld [vmem:[#allocation2 + $0xb0] sm:$0x1]  ;;  %v1679_v22 = vld [vmem:[#allocation2 + $0xa4] sm:$0x1] }
 0x33c   : > { %v12099_v38 = vrot.slane %v9088_v31, 4  ;;  %v12100_v40 = vld [vmem:[#allocation57_spill] sm:$0xff]  ;;  %v12101_v20 = vld [vmem:[#allocation48_spill] sm:$0xff]  ;;  %1621 = vst [vmem:[#allocation2 + $0x3c] sm:$0xf] %v1620_v16  ;;  %v12103_v21 = vld [vmem:[#allocation58_spill] sm:$0xff] }
 0x33d   : > { %v1641_v35 = vsel %vm9260_vm12, %v12100_v40, %v9378_v30  ;;  %v12102_v0 = vrot.slane %v12101_v20, 4  ;;  %1625 = vst [vmem:[#allocation2 + $0x44] sm:$0x1] %v1624_v51  ;;  %1628 = vst [vmem:[#allocation2 + $0x48] sm:$0xf] %v1627_v11  ;;  %v1648_v61 = vsel %vm9260_vm12, %v12103_v21, %v1647_v23  ;;  %v12104_v62 = vld [vmem:[#allocation49_spill] sm:$0xff] }
 0x33e   : > { %v1638_v53 = vsel %vm9304_vm14, %v12099_v38, %v1637_v47  ;;  %1632 = vst [vmem:[#allocation2 + $0x50] sm:$0x1] %v1631_v44  ;;  %v1696_v39 = vld [vmem:[#allocation2 + $0xc0] sm:$0xf]  ;;  %v1705_v8 = vld [vmem:[#allocation2 + $0xc] sm:$0xf] }
 0x33f   : > { %v1645_v25 = vsel %vm9304_vm14, %v12102_v0, %v1644_v37  ;;  %v9463_v31 = vld [vmem:[#allocation2 + $0x10] sm:$0xf]  ;;  %v12105_v2 = vrot.slane %v12104_v62, 4  ;;  %v12106_v6 = vld [vmem:[#allocation59_spill] sm:$0xff]  ;;  %1635 = vst [vmem:[#allocation2 + $0x54] sm:$0xf] %v1634_v10 }
 0x340   : > { %v1655_v7 = vsel %vm9260_vm12, %v12106_v6, %v1654_v19  ;;  %v12107_v33 = vld [vmem:[#allocation50_spill] sm:$0xff]  ;;  %1639 = vst [vmem:[#allocation2 + $0x5c] sm:$0x1] %v1638_v53  ;;  %1642 = vst [vmem:[#allocation2 + $0x60] sm:$0xf] %v1641_v35  ;;  %v1781_v29 = vshrl.u32 %v1705_v8, 16  ;;  %v6951_v24 = vcombine.low %v1705_v8, %v9463_v31 }
 0x341   : > { %v1652_v46 = vsel %vm9304_vm14, %v12105_v2, %v1651_v43  ;;  %v12108_v41 = vrot.slane %v12107_v33, 4  ;;  %1646 = vst [vmem:[#allocation2 + $0x68] sm:$0x1] %v1645_v25  ;;  %v1689_v32 = vld [vmem:[#allocation2 + $0xb4] sm:$0xf]  ;;  %v1784_v1 = vshll.u32 %v1705_v8, 16 }
 0x342   : > { %v1794_v30 = vshrl.u32 %v9463_v31, 16  ;;  %1649 = vst [vmem:[#allocation2 + $0x6c] sm:$0xf] %v1648_v61  ;;  %1653 = vst [vmem:[#allocation2 + $0x74] sm:$0x1] %v1652_v46  ;;  %v2761_v49 = vrot.slane %v9463_v31, 5  ;;  %7667 = vmatmul.mubr.msk.bf16.vlgmr.msra.gmra.mxu0 %vm408_vm0, %v6951_v24 }
 0x343   : > { %v1659_v15 = vsel %vm9304_vm14, %v12108_v41, %v1658_v9  ;;  %1656 = vst [vmem:[#allocation2 + $0x78] sm:$0xf] %v1655_v7  ;;  %v1700_v37 = vld [vmem:[#allocation2 + $0xc8] sm:$0x1]  ;;  %v1693_v45 = vld [vmem:[#allocation2 + $0xbc] sm:$0x1] }
 0x344   : > { %1660 = vst [vmem:[#allocation2 + $0x80] sm:$0x1] %v1659_v15  ;;  %v12109_v3 = vld [vmem:[#allocation60_spill] sm:$0xff]  ;;  %v12110_v47 = vld [vmem:[#allocation51_spill] sm:$0xff]  ;;  %v12112_v26 = vld [vmem:[#allocation38_spill] sm:$0xff]  ;;  %v1783_v18 = vrot.slane %v1781_v29, 4 }
 0x345   : > { %v1662_v52 = vsel %vm9260_vm12, %v12109_v3, %v1661_v42  ;;  %v12111_v19 = vrot.slane %v12110_v47, 4  ;;  %v1669_v34 = vsel %vm9260_vm12, %v12112_v26, %v9412_v12  ;;  %v1786_v48 = vrot.slane %v1784_v1, 5  ;;  %v12113_v56 = vld [vmem:[#allocation52_spill] sm:$0xff]  ;;  %v12115_v43 = vld [vmem:[#allocation39_spill] sm:$0xff]  ;;  %v12116_v63 = vld [vmem:[#allocation53_spill] sm:$0xff] }
 0x346   : > { %v12114_v14 = vrot.slane %v12113_v56, 4  ;;  %v1676_v55 = vsel %vm9260_vm12, %v12115_v43, %v1675_v59  ;;  %v9501_v36 = vld [vmem:[#allocation2 + $0x1c] sm:$0xf]  ;;  %1663 = vst [vmem:[#allocation2 + $0x84] sm:$0xf] %v1662_v52  ;;  %v9505_v12 = vrot.slane %v2761_v49, 4 }
 0x347   : > { %v1666_v23 = vsel %vm9304_vm14, %v12111_v19, %v1665_v4  ;;  %1670 = vst [vmem:[#allocation2 + $0x90] sm:$0xf] %v1669_v34  ;;  %v12117_v28 = vrot.slane %v12116_v63, 4  ;;  %v12118_v58 = vld [vmem:[#allocation40_spill] sm:$0xff]  ;;  %v1707_v27 = vld [vmem:[#allocation2 + $0x18] sm:$0xf]  ;;  %v1787_v6 = vor.u32 %v1786_v48, %v1783_v18 }
 0x348   : > { %v1673_v9 = vsel %vm9304_vm14, %v12114_v14, %v1672_v60  ;;  %1667 = vst [vmem:[#allocation2 + $0x8c] sm:$0x1] %v1666_v23  ;;  %v1683_v42 = vsel %vm9260_vm12, %v12118_v58, %v1682_v57  ;;  %v12119_v60 = vld [vmem:[#allocation54_spill] sm:$0xff]  ;;  %1677 = vst [vmem:[#allocation2 + $0x9c] sm:$0xf] %v1676_v55  ;;  %v12121_v11 = vld [vmem:[#allocation37_spill] sm:$0xff]  ;;  %v6952_v8 = vcombine.low %v1707_v27, %v9501_v36 }
 0x349   : > { %v1680_v17 = vsel %vm9304_vm14, %v12117_v28, %v1679_v22  ;;  %v12120_v4 = vrot.slane %v12119_v60, 4  ;;  %1674 = vst [vmem:[#allocation2 + $0x98] sm:$0x1] %v1673_v9  ;;  %v9518_v51 = vld [vmem:[#allocation2 + $0x28] sm:$0xf]  ;;  %7733 = vmatpush3.bf16.msra.mxu0 %v12121_v11  ;;  %v12123_v59 = vld [vmem:[#allocation55_spill] sm:$0xff] }
 0x34a   : > { %v12122_v50 = vld [vmem:[#allocation41_spill] sm:$0xff]  ;;  %v12124_v22 = vrot.slane %v12123_v59, 4  ;;  %v12125_v10 = vld [vmem:[#allocation42_spill] sm:$0xff]  ;;  %v12126_v38 = vld [vmem:[#allocation56_spill] sm:$0xff]  ;;  %1681 = vst [vmem:[#allocation2 + $0xa4] sm:$0x1] %v1680_v17  ;;  %7670 = vmatprep.mubr.msk.bf16.mxu0 %vm408_vm0, %v6952_v8 }
 0x34b   : > { %v1687_v16 = vsel %vm9304_vm14, %v12120_v4, %v1686_v13  ;;  %v1690_v44 = vsel %vm9260_vm12, %v12122_v50, %v1689_v32  ;;  %v1697_v13 = vsel %vm9260_vm12, %v12125_v10, %v1696_v39  ;;  %v12127_v53 = vrot.slane %v12126_v38, 4  ;;  %1684 = vst [vmem:[#allocation2 + $0xa8] sm:$0xf] %v1683_v42  ;;  %v1709_v35 = vld [vmem:[#allocation2 + $0x24] sm:$0xf] }
 0x34c   : > { %v1694_v57 = vsel %vm9304_vm14, %v12124_v22, %v1693_v45  ;;  %1688 = vst [vmem:[#allocation2 + $0xb0] sm:$0x1] %v1687_v16  ;;  %v1805_v20 = vshrl.u32 %v1707_v27, 16  ;;  %v1808_v0 = vshll.u32 %v1707_v27, 16  ;;  %v1818_v25 = vshrl.u32 %v9501_v36, 16 }
 0x34d   : > { %v1701_v40 = vsel %vm9304_vm14, %v12127_v53, %v1700_v37  ;;  %1691 = vst [vmem:[#allocation2 + $0xb4] sm:$0xf] %v1690_v44  ;;  %1695 = vst [vmem:[#allocation2 + $0xbc] sm:$0x1] %v1694_v57  ;;  %v9537_v5 = vld [vmem:[#allocation2 + $0x14] sm:$0x1]  ;;  %v6953_v61 = vcombine.low %v1709_v35, %v9518_v51 }
 0x34e   : > { %1698 = vst [vmem:[#allocation2 + $0xc0] sm:$0xf] %v1697_v13  ;;  %1702 = vst [vmem:[#allocation2 + $0xc8] sm:$0x1] %v1701_v40  ;;  %v1829_v39 = vshrl.u32 %v1709_v35, 16  ;;  %v1832_v21 = vshll.u32 %v1709_v35, 16 }
 0x34f   : > { %v1842_v54 = vshrl.u32 %v9518_v51, 16  ;;  %v1711_v62 = vld [vmem:[#allocation2 + $0x30] sm:$0xf]  ;;  %v1807_v2 = vrot.slane %v1805_v20, 4  ;;  %v1810_v46 = vrot.slane %v1808_v0, 5  ;;  %v1790_v7 = vshll.u32 %v9463_v31, 16  ;;  %7671 = vmatmul.mubr.msk.bf16.gmra.mxu0 %vm408_vm0, %v6953_v61 }
 0x350   : > { %v9543_v33 = vld [vmem:[#allocation2 + $0x34] sm:$0xf]  ;;  %v1831_v41 = vrot.slane %v1829_v39, 4  ;;  %v1834_v15 = vrot.slane %v1832_v21, 5  ;;  %v1796_v32 = vrot.slane %v1794_v30, 4  ;;  %v1800_v29 = vshll.u32 %v9537_v5, 16 }
 0x351   : > { %v1788_v1 = vrot.slane %v1787_v6, 4  ;;  %v1792_v24 = vrot.slane %v1790_v7, 5  ;;  %v2764_v37 = vrot.slane %v9537_v5, 5  ;;  %v1853_v45 = vshrl.u32 %v1711_v62, 16  ;;  %v9547_v3 = vld [vmem:[#allocation2 + $0x20] sm:$0x1] }
 0x352   : > { %v1802_v52 = vrot.slane %v1800_v29, 5  ;;  %v1856_v47 = vshll.u32 %v1711_v62, 16  ;;  %v1866_v19 = vshrl.u32 %v9543_v33, 16  ;;  %v6954_v23 = vcombine.low %v1711_v62, %v9543_v33  ;;  %v1713_v26 = vld [vmem:[#allocation2 + $0x3c] sm:$0xf]  ;;  %v9573_v35 = vld [vmem:[%s11906_s5 + $0x20] sm:$0xff]  }
 0x353   : > { %v1793_v30 = vsel %vm8751_vm8, %v1788_v1, %v1792_v24  ;;  %v1797_v18 = vor.u32 %v1796_v32, %v1792_v24  ;;  %v1855_v48 = vrot.slane %v1853_v45, 4  ;;  %v1811_v56 = vor.u32 %v1810_v46, %v1807_v2  ;;  %v9554_v14 = vld [vmem:[#allocation2 + $0x40] sm:$0xf]  ;;  %v9559_v60 = vld [vmem:[#allocation2 + $0x2c] sm:$0x1] }
 0x354   : > { %v1858_v9 = vrot.slane %v1856_v47, 5  ;;  %7674 = vmatprep.mubr.msk.bf16.mxu0 %vm408_vm0, %v6954_v23  ;;  %v1814_v43 = vshll.u32 %v9501_v36, 16  ;;  %v1820_v55 = vrot.slane %v1818_v25, 4  ;;  %v1824_v63 = vshll.u32 %v9547_v3, 16  ;;  %v1715_v50 = vld [vmem:[#allocation2 + $0x48] sm:$0xf] }
 0x355   : > { %v1798_v28 = vrot.slane %v1797_v18, 4  ;;  %v1812_v17 = vrot.slane %v1811_v56, 4  ;;  %v1877_v58 = vshrl.u32 %v1713_v26, 16  ;;  %v1880_v42 = vshll.u32 %v1713_v26, 16  ;;  %v9565_v10 = vld [vmem:[#allocation2 + $0x4c] sm:$0xf] }
 0x356   : > { %v1816_v4 = vrot.slane %v1814_v43, 5  ;;  %v1826_v16 = vrot.slane %v1824_v63, 5  ;;  %v1890_v27 = vshrl.u32 %v9554_v14, 16  ;;  %v6955_v11 = vcombine.low %v1713_v26, %v9554_v14  ;;  %v12129_v2 = vld [vmem:[#allocation4_spill] sm:$0xff]  ;;  %v9587_v45 = vld [vmem:[#allocation2 + $0x58] sm:$0xf] }
 0x357   : > { %v1803_v44 = vsel %vm8751_vm8, %v1798_v28, %v1802_v52  ;;  %v1879_v59 = vrot.slane %v1877_v58, 4  ;;  %v1882_v22 = vrot.slane %v1880_v42, 5  ;;  %v1835_v57 = vor.u32 %v1834_v15, %v1831_v41  ;;  %v9581_v41 = vld [vmem:[#allocation2 + $0x38] sm:$0x1]  ;;  %v1717_v15 = vld [vmem:[#allocation2 + $0x54] sm:$0xf] }
 0x358   : > { %v6918_v13 = vcombine.low %v1793_v30, %v1803_v44  ;;  %v1817_v38 = vsel %vm8751_vm8, %v1812_v17, %v1816_v4  ;;  %v1821_v53 = vor.u32 %v1820_v55, %v1816_v4  ;;  %v1838_v40 = vshll.u32 %v9518_v51, 16  ;;  %7675 = vmatmul.mubr.msk.bf16.gmra.mxu0 %vm408_vm0, %v6955_v11  ;;  %v9596_v63 = vld [vmem:[#allocation2 + $0x44] sm:$0x1]  ;;  %v1719_v17 = vld [vmem:[#allocation2 + $0x60] sm:$0xf] }
 0x359   : > { %v1836_v20 = vrot.slane %v1835_v57, 4  ;;  %v1844_v0 = vrot.slane %v1842_v54, 4  ;;  %v1848_v25 = vshll.u32 %v9559_v60, 16  ;;  %v1901_v8 = vshrl.u32 %v1715_v50, 16  ;;  %v2706_v31 = vld [vmem:[#allocation2 + $0x3c] sm:$0xe] }
 0x35a   : > { %7633 = vmatmul.mubr.msk.bf16.vlgmr.msra.gmra.mxu1 %vm408_vm0, %v6918_v13  ;;  %v1822_v39 = vrot.slane %v1821_v53, 4  ;;  %v1840_v21 = vrot.slane %v1838_v40, 5  ;;  %v1904_v61 = vshll.u32 %v1715_v50, 16  ;;  %v1914_v62 = vshrl.u32 %v9565_v10, 16  ;;  %v9607_v53 = vld [vmem:[#allocation2 + $0x50] sm:$0x1] }
 0x35b   : > { %7699 = vmatpush3.bf16.msra.mxu1 %v12129_v2  ;;  %v1850_v46 = vrot.slane %v1848_v25, 5  ;;  %v1903_v6 = vrot.slane %v1901_v8, 4  ;;  %v6956_v7 = vcombine.low %v1715_v50, %v9565_v10  ;;  %v1859_v54 = vor.u32 %v1858_v9, %v1855_v48  ;;  %v1721_v40 = vld [vmem:[#allocation2 + $0x6c] sm:$0xf] }
 0x35c   : > { %v1827_v32 = vsel %vm8751_vm8, %v1822_v39, %v1826_v16  ;;  %v1841_v29 = vsel %vm8751_vm8, %v1836_v20, %v1840_v21  ;;  %v1845_v1 = vor.u32 %v1844_v0, %v1840_v21  ;;  %v1906_v24 = vrot.slane %v1904_v61, 5  ;;  %7766 = vmatprep.subr.bf16.mxu1 %v9573_v35  ;;  %v9600_v16 = vld [vmem:[#allocation2 + $0x64] sm:$0xf]  ;;  %v9612_v39 = vld [vmem:[#allocation2 + $0x70] sm:$0xf] }
 0x35d   : > { %v6919_v52 = vcombine.low %v1817_v38, %v1827_v32  ;;  %7678 = vmatprep.mubr.msk.bf16.mxu0 %vm408_vm0, %v6956_v7  ;;  %v1860_v47 = vrot.slane %v1859_v54, 4  ;;  %v1862_v23 = vshll.u32 %v9543_v33, 16  ;;  %v1868_v26 = vrot.slane %v1866_v19, 4 }
 0x35e   : > { %v1846_v30 = vrot.slane %v1845_v1, 4  ;;  %v1872_v18 = vshll.u32 %v9581_v41, 16  ;;  %v1925_v48 = vshrl.u32 %v1717_v15, 16  ;;  %v1928_v56 = vshll.u32 %v1717_v15, 16 }
 0x35f   : > { %7636 = vmatprep.mubr.msk.bf16.mxu1 %vm408_vm0, %v6919_v52  ;;  %v1864_v9 = vrot.slane %v1862_v23, 5  ;;  %v1938_v43 = vshrl.u32 %v9587_v45, 16  ;;  %v6957_v55 = vcombine.low %v1717_v15, %v9587_v45  ;;  %v1883_v28 = vor.u32 %v1882_v22, %v1879_v59 }
 0x360   : > { %v1851_v58 = vsel %vm8751_vm8, %v1846_v30, %v1850_v46  ;;  %v1874_v19 = vrot.slane %v1872_v18, 5  ;;  %v1927_v42 = vrot.slane %v1925_v48, 4  ;;  %v1930_v4 = vrot.slane %v1928_v56, 5  ;;  %v1723_v18 = vld [vmem:[#allocation2 + $0x78] sm:$0xf] }
 0x361   : > { %v6920_v11 = vcombine.low %v1841_v29, %v1851_v58  ;;  %v1865_v50 = vsel %vm8751_vm8, %v1860_v47, %v1864_v9  ;;  %v1869_v44 = vor.u32 %v1868_v26, %v1864_v9  ;;  %v1884_v57 = vrot.slane %v1883_v28, 4  ;;  %7679 = vmatmul.mubr.msk.bf16.gmra.mxu0 %vm408_vm0, %v6957_v55  ;;  %v9620_v47 = vld [vmem:[#allocation2 + $0x5c] sm:$0x1] }
 0x362   : > { %v1886_v13 = vshll.u32 %v9554_v14, 16  ;;  %v1892_v59 = vrot.slane %v1890_v27, 4  ;;  %v1896_v22 = vshll.u32 %v9596_v63, 16  ;;  %v1949_v38 = vshrl.u32 %v1719_v17, 16  ;;  %v9631_v55 = vld [vmem:[#allocation2 + $0x7c] sm:$0xf] }
 0x363   : > { %7637 = vmatmul.mubr.msk.bf16.gmra.mxu1 %vm408_vm0, %v6920_v11  ;;  %v1870_v20 = vrot.slane %v1869_v44, 4  ;;  %v1952_v0 = vshll.u32 %v1719_v17, 16  ;;  %v1962_v25 = vshrl.u32 %v9600_v16, 16  ;;  %v6958_v8 = vcombine.low %v1719_v17, %v9600_v16 }
 0x364   : > { %v1888_v21 = vrot.slane %v1886_v13, 5  ;;  %v1898_v61 = vrot.slane %v1896_v22, 5  ;;  %v1951_v2 = vrot.slane %v1949_v38, 4  ;;  %v1907_v27 = vor.u32 %v1906_v24, %v1903_v6  ;;  %v9625_v6 = vld [vmem:[%s11906_s5 + $0x28] sm:$0xff]   ;;  %v1725_v38 = vld [vmem:[#allocation2 + $0x84] sm:$0xf] }
 0x365   : > { %v1875_v46 = vsel %vm8751_vm8, %v1870_v20, %v1874_v19  ;;  %v1954_v7 = vrot.slane %v1952_v0, 5  ;;  %7682 = vmatprep.mubr.msk.bf16.mxu0 %vm408_vm0, %v6958_v8  ;;  %v1910_v54 = vshll.u32 %v9565_v10, 16  ;;  %v1916_v15 = vrot.slane %v1914_v62, 4  ;;  %7800 = vmatprep.subr.bf16.mxu0 %v9625_v6  ;;  %v9643_v22 = vld [vmem:[#allocation2 + $0x68] sm:$0x1] }
 0x366   : > { %v6921_v32 = vcombine.low %v1865_v50, %v1875_v46  ;;  %v1889_v29 = vsel %vm8751_vm8, %v1884_v57, %v1888_v21  ;;  %v1893_v1 = vor.u32 %v1892_v59, %v1888_v21  ;;  %v1908_v52 = vrot.slane %v1907_v27, 4 }
 0x367   : > { %v1912_v24 = vrot.slane %v1910_v54, 5  ;;  %v1920_v23 = vshll.u32 %v9607_v53, 16  ;;  %v1973_v26 = vshrl.u32 %v1721_v40, 16  ;;  %v1976_v30 = vshll.u32 %v1721_v40, 16 }
 0x368   : > { %7640 = vmatprep.mubr.msk.bf16.mxu1 %vm408_vm0, %v6921_v32  ;;  %v1894_v62 = vrot.slane %v1893_v1, 4  ;;  %v1986_v48 = vshrl.u32 %v9612_v39, 16  ;;  %v6959_v56 = vcombine.low %v1721_v40, %v9612_v39  ;;  %v1931_v9 = vor.u32 %v1930_v4, %v1927_v42 }
 0x369   : > { %v1913_v28 = vsel %vm8751_vm8, %v1908_v52, %v1912_v24  ;;  %v1917_v17 = vor.u32 %v1916_v15, %v1912_v24  ;;  %v1922_v58 = vrot.slane %v1920_v23, 5  ;;  %v1975_v19 = vrot.slane %v1973_v26, 4  ;;  %v9656_v26 = vld [vmem:[#allocation2 + $0x74] sm:$0x1] }
 0x36a   : > { %v1899_v11 = vsel %vm8751_vm8, %v1894_v62, %v1898_v61  ;;  %v1978_v50 = vrot.slane %v1976_v30, 5  ;;  %7683 = vmatmul.mubr.msk.bf16.gmra.mxu0 %vm408_vm0, %v6959_v56  ;;  %v1932_v44 = vrot.slane %v1931_v9, 4  ;;  %v1934_v57 = vshll.u32 %v9587_v45, 16  ;;  %v1727_v30 = vld [vmem:[#allocation2 + $0x90] sm:$0xf] }
 0x36b   : > { %v6922_v42 = vcombine.low %v1889_v29, %v1899_v11  ;;  %v1918_v4 = vrot.slane %v1917_v17, 4  ;;  %v1940_v13 = vrot.slane %v1938_v43, 4  ;;  %v1944_v59 = vshll.u32 %v9620_v47, 16  ;;  %v9650_v43 = vld [vmem:[#allocation2 + $0x88] sm:$0xf] }
 0x36c   : > { %v1936_v40 = vrot.slane %v1934_v57, 5  ;;  %v1997_v20 = vshrl.u32 %v1723_v18, 16  ;;  %v2000_v0 = vshll.u32 %v1723_v18, 16  ;;  %v2010_v8 = vshrl.u32 %v9631_v55, 16 }
 0x36d   : > { %7641 = vmatmul.mubr.msk.bf16.gmra.mxu1 %vm408_vm0, %v6922_v42  ;;  %v1923_v21 = vsel %vm8751_vm8, %v1918_v4, %v1922_v58  ;;  %v1946_v61 = vrot.slane %v1944_v59, 5  ;;  %v6960_v27 = vcombine.low %v1723_v18, %v9631_v55  ;;  %v1955_v46 = vor.u32 %v1954_v7, %v1951_v2  ;;  %v9662_v58 = vld [vmem:[#allocation2 + $0x94] sm:$0xf] }
 0x36e   : > { %v6923_v54 = vcombine.low %v1913_v28, %v1923_v21  ;;  %v1937_v15 = vsel %vm8751_vm8, %v1932_v44, %v1936_v40  ;;  %v1941_v32 = vor.u32 %v1940_v13, %v1936_v40  ;;  %v1999_v29 = vrot.slane %v1997_v20, 4  ;;  %v9671_v20 = vld [vmem:[#allocation2 + $0x80] sm:$0x1] }
 0x36f   : > { %v2002_v1 = vrot.slane %v2000_v0, 5  ;;  %7686 = vmatprep.mubr.msk.bf16.mxu0 %vm408_vm0, %v6960_v27  ;;  %v1956_v52 = vrot.slane %v1955_v46, 4  ;;  %v1958_v24 = vshll.u32 %v9600_v16, 16  ;;  %v1964_v23 = vrot.slane %v1962_v25, 4  ;;  %v1729_v0 = vld [vmem:[#allocation2 + $0x9c] sm:$0xf] }
 0x370   : > { %7644 = vmatprep.mubr.msk.bf16.mxu1 %vm408_vm0, %v6923_v54  ;;  %v1942_v2 = vrot.slane %v1941_v32, 4  ;;  %v1968_v7 = vshll.u32 %v9643_v22, 16  ;;  %v2021_v18 = vshrl.u32 %v1725_v38, 16  ;;  %v2024_v62 = vshll.u32 %v1725_v38, 16 }
 0x371   : > { %v1960_v56 = vrot.slane %v1958_v24, 5  ;;  %v2034_v9 = vshrl.u32 %v9650_v43, 16  ;;  %v6961_v28 = vcombine.low %v1725_v38, %v9650_v43  ;;  %v1979_v17 = vor.u32 %v1978_v50, %v1975_v19  ;;  %v9676_v24 = vld [vmem:[#allocation2 + $0xa0] sm:$0xf] }
 0x372   : > { %v1947_v25 = vsel %vm8751_vm8, %v1942_v2, %v1946_v61  ;;  %v1970_v11 = vrot.slane %v1968_v7, 5  ;;  %v2023_v44 = vrot.slane %v2021_v18, 4  ;;  %v2026_v57 = vrot.slane %v2024_v62, 5 }
 0x373   : > { %v6924_v42 = vcombine.low %v1937_v15, %v1947_v25  ;;  %v1961_v4 = vsel %vm8751_vm8, %v1956_v52, %v1960_v56  ;;  %v1965_v13 = vor.u32 %v1964_v23, %v1960_v56  ;;  %7687 = vmatmul.mubr.msk.bf16.gmra.mxu0 %vm408_vm0, %v6961_v28  ;;  %v1980_v59 = vrot.slane %v1979_v17, 4  ;;  %v9684_v28 = vld [vmem:[#allocation2 + $0x8c] sm:$0x1] }
 0x374   : > { %v1982_v40 = vshll.u32 %v9612_v39, 16  ;;  %v1988_v38 = vrot.slane %v1986_v48, 4  ;;  %v1992_v19 = vshll.u32 %v9656_v26, 16  ;;  %v2045_v50 = vshrl.u32 %v1727_v30, 16 }
 0x375   : > { %7645 = vmatmul.mubr.msk.bf16.gmra.mxu1 %vm408_vm0, %v6924_v42  ;;  %v1966_v21 = vrot.slane %v1965_v13, 4  ;;  %v2048_v61 = vshll.u32 %v1727_v30, 16  ;;  %v2058_v27 = vshrl.u32 %v9662_v58, 16  ;;  %v6962_v46 = vcombine.low %v1727_v30, %v9662_v58 }
 0x376   : > { %v1984_v54 = vrot.slane %v1982_v40, 5  ;;  %v1994_v15 = vrot.slane %v1992_v19, 5  ;;  %v2047_v32 = vrot.slane %v2045_v50, 4  ;;  %v2003_v52 = vor.u32 %v2002_v1, %v1999_v29  ;;  %v9690_v40 = vld [vmem:[#allocation2 + $0xac] sm:$0xf] }
 0x377   : > { %v1971_v48 = vsel %vm8751_vm8, %v1966_v21, %v1970_v11  ;;  %v2050_v23 = vrot.slane %v2048_v61, 5  ;;  %7690 = vmatprep.mubr.msk.bf16.mxu0 %vm408_vm0, %v6962_v46  ;;  %v2006_v2 = vshll.u32 %v9631_v55, 16  ;;  %v2012_v7 = vrot.slane %v2010_v8, 4  ;;  %v1731_v11 = vld [vmem:[#allocation2 + $0xa8] sm:$0xf] }
 0x378   : > { %v6925_v18 = vcombine.low %v1961_v4, %v1971_v48  ;;  %v1985_v62 = vsel %vm8751_vm8, %v1980_v59, %v1984_v54  ;;  %v1989_v30 = vor.u32 %v1988_v38, %v1984_v54  ;;  %v2004_v56 = vrot.slane %v2003_v52, 4  ;;  %v9699_v48 = vld [vmem:[#allocation2 + $0x98] sm:$0x1] }
 0x379   : > { %v2008_v29 = vrot.slane %v2006_v2, 5  ;;  %v2016_v1 = vshll.u32 %v9671_v20, 16  ;;  %v2069_v17 = vshrl.u32 %v1729_v0, 16  ;;  %v2072_v25 = vshll.u32 %v1729_v0, 16 }
 0x37a   : > { %7648 = vmatprep.mubr.msk.bf16.mxu1 %vm408_vm0, %v6925_v18  ;;  %v1990_v42 = vrot.slane %v1989_v30, 4  ;;  %v2082_v13 = vshrl.u32 %v9676_v24, 16  ;;  %v6963_v8 = vcombine.low %v1729_v0, %v9676_v24  ;;  %v2027_v4 = vor.u32 %v2026_v57, %v2023_v44 }
 0x37b   : > { %v2009_v59 = vsel %vm8751_vm8, %v2004_v56, %v2008_v29  ;;  %v2013_v38 = vor.u32 %v2012_v7, %v2008_v29  ;;  %v2018_v19 = vrot.slane %v2016_v1, 5  ;;  %v2071_v50 = vrot.slane %v2069_v17, 4  ;;  %v1733_v1 = vld [vmem:[#allocation2 + $0xb4] sm:$0xf] }
 0x37c   : > { %v1995_v21 = vsel %vm8751_vm8, %v1990_v42, %v1994_v15  ;;  %v2074_v61 = vrot.slane %v2072_v25, 5  ;;  %7691 = vmatmul.mubr.msk.bf16.gmra.mxu0 %vm408_vm0, %v6963_v8  ;;  %v2028_v46 = vrot.slane %v2027_v4, 4  ;;  %v2030_v54 = vshll.u32 %v9650_v43, 16  ;;  %v9708_v8 = vld [vmem:[#allocation2 + $0xb8] sm:$0xf] }
 0x37d   : > { %v6926_v52 = vcombine.low %v1985_v62, %v1995_v21  ;;  %v2014_v0 = vrot.slane %v2013_v38, 4  ;;  %v2036_v44 = vrot.slane %v2034_v9, 4  ;;  %v2040_v57 = vshll.u32 %v9684_v28, 16 }
 0x37e   : > { %v2032_v2 = vrot.slane %v2030_v54, 5  ;;  %v2093_v7 = vshrl.u32 %v1731_v11, 16  ;;  %v2096_v18 = vshll.u32 %v1731_v11, 16  ;;  %v2106_v30 = vshrl.u32 %v9690_v40, 16  ;;  %v9712_v54 = vld [vmem:[#allocation2 + $0xa4] sm:$0x1] }
 0x37f   : > { %7649 = vmatmul.mubr.msk.bf16.gmra.mxu1 %vm408_vm0, %v6926_v52  ;;  %v2019_v15 = vsel %vm8751_vm8, %v2014_v0, %v2018_v19  ;;  %v2042_v56 = vrot.slane %v2040_v57, 5  ;;  %v6964_v29 = vcombine.low %v1731_v11, %v9690_v40  ;;  %v2051_v62 = vor.u32 %v2050_v23, %v2047_v32  ;;  %v9718_v57 = vld [vmem:[#allocation2 + $0xb0] sm:$0x1] }
 0x380   : > { %v6927_v9 = vcombine.low %v2009_v59, %v2019_v15  ;;  %v2033_v17 = vsel %vm8751_vm8, %v2028_v46, %v2032_v2  ;;  %v2037_v25 = vor.u32 %v2036_v44, %v2032_v2  ;;  %v2095_v42 = vrot.slane %v2093_v7, 4  ;;  %v7983_v15 = vld [vmem:[#allocation2 + $0xc] sm:$0xff]  }
 0x381   : > { %v2098_v4 = vrot.slane %v2096_v18, 5  ;;  %7694 = vmatprep.mubr.msk.bf16.mxu0 %vm408_vm0, %v6964_v29  ;;  %v2052_v38 = vrot.slane %v2051_v62, 4  ;;  %v2054_v21 = vshll.u32 %v9662_v58, 16  ;;  %v2060_v19 = vrot.slane %v2058_v27, 4 }
 0x382   : > { %7652 = vmatprep.mubr.msk.bf16.mxu1 %vm408_vm0, %v6927_v9  ;;  %v2038_v32 = vrot.slane %v2037_v25, 4  ;;  %v2064_v23 = vshll.u32 %v9699_v48, 16  ;;  %v2117_v11 = vshrl.u32 %v1733_v1, 16  ;;  %v2120_v59 = vshll.u32 %v1733_v1, 16 }
 0x383   : > { %v2056_v46 = vrot.slane %v2054_v21, 5  ;;  %v2130_v52 = vshrl.u32 %v9708_v8, 16  ;;  %v6965_v0 = vcombine.low %v1733_v1, %v9708_v8  ;;  %v2075_v44 = vor.u32 %v2074_v61, %v2071_v50 }
 0x384   : > { %v2043_v27 = vsel %vm8751_vm8, %v2038_v32, %v2042_v56  ;;  %v2066_v2 = vrot.slane %v2064_v23, 5  ;;  %v2119_v7 = vrot.slane %v2117_v11, 4  ;;  %v2122_v18 = vrot.slane %v2120_v59, 5 }
 0x385   : > { %v6928_v29 = vcombine.low %v2033_v17, %v2043_v27  ;;  %v2057_v62 = vsel %vm8751_vm8, %v2052_v38, %v2056_v46  ;;  %v2061_v9 = vor.u32 %v2060_v19, %v2056_v46  ;;  %7695 = vmatmul.mubr.msk.bf16.gmra.mxu0 %vm408_vm0, %v6965_v0  ;;  %v2076_v25 = vrot.slane %v2075_v44, 4  ;;  %v9733_v44 = vld [vmem:[#allocation2 + $0xbc] sm:$0x1] }
 0x386   : > { %v2078_v1 = vshll.u32 %v9676_v24, 16  ;;  %v2084_v50 = vrot.slane %v2082_v13, 4  ;;  %v2088_v61 = vshll.u32 %v9712_v54, 16  ;;  %7734 = vmatprep.mubr.msk.bf16.mxu0 %vm408_vm0, %v7983_v15  ;;  %v2099_v56 = vor.u32 %v2098_v4, %v2095_v42 }
 0x387   : > { %7653 = vmatmul.mubr.msk.bf16.gmra.mxu1 %vm408_vm0, %v6928_v29  ;;  %v2062_v21 = vrot.slane %v2061_v9, 4  ;;  %v2102_v17 = vshll.u32 %v9690_v40, 16  ;;  %v2108_v32 = vrot.slane %v2106_v30, 4  ;;  %v2112_v38 = vshll.u32 %v9718_v57, 16  ;;  %v2701_v29 = vld [vmem:[#allocation2] sm:$0xe] }
 0x388   : > { %v2080_v19 = vrot.slane %v2078_v1, 5  ;;  %v2090_v23 = vrot.slane %v2088_v61, 5  ;;  %v2100_v11 = vrot.slane %v2099_v56, 4  ;;  %v2123_v59 = vor.u32 %v2122_v18, %v2119_v7  ;;  %v7985_v18 = vld [vmem:[#allocation2 + $0x18] sm:$0xff]   ;;  %v7986_v61 = vld [vmem:[#allocation2 + $0x24] sm:$0xff]  }
 0x389   : > { %v2067_v13 = vsel %vm8751_vm8, %v2062_v21, %v2066_v2  ;;  %v2104_v46 = vrot.slane %v2102_v17, 5  ;;  %v2114_v0 = vrot.slane %v2112_v38, 5  ;;  %v2126_v42 = vshll.u32 %v9708_v8, 16 }
 0x38a   : > { %v6929_v4 = vcombine.low %v2057_v62, %v2067_v13  ;;  %v2081_v27 = vsel %vm8751_vm8, %v2076_v25, %v2080_v19  ;;  %v2085_v30 = vor.u32 %v2084_v50, %v2080_v19  ;;  %v2124_v15 = vrot.slane %v2123_v59, 4  ;;  %v2702_v62 = vld [vmem:[#allocation2 + $0xc] sm:$0xe]  ;;  %v8282_v13 = vld [vmem:[#allocation2 + $0x8] sm:$0x1] }
 0x38b   : > { %v2105_v9 = vsel %vm8751_vm8, %v2100_v11, %v2104_v46  ;;  %v2109_v7 = vor.u32 %v2108_v32, %v2104_v46  ;;  %v2128_v1 = vrot.slane %v2126_v42, 5  ;;  %v2132_v2 = vrot.slane %v2130_v52, 4  ;;  %v8281_v11 = vld [vmem:[#allocation2 + $0x4] sm:$0xf]  ;;  %v2703_v42 = vld [vmem:[#allocation2 + $0x18] sm:$0xe] }
 0x38c   : > { %7656 = vmatprep.mubr.msk.bf16.mxu1 %vm408_vm0, %v6929_v4  ;;  %v2086_v56 = vrot.slane %v2085_v30, 4  ;;  %v2136_v21 = vshll.u32 %v9733_v44, 16  ;;  %v6983_v32 = vrot.slane %v2701_v29, 9  ;;  %v2754_v59 = vrot.slane %v8281_v11, 5 }
 0x38d   : > { %v2110_v25 = vrot.slane %v2109_v7, 4  ;;  %7735 = vmatmul.mubr.msk.bf16.vlgmr.msra.gmra.mxu0 %vm408_vm0, %v7985_v18  ;;  %v2129_v50 = vsel %vm8751_vm8, %v2124_v15, %v2128_v1  ;;  %v2133_v17 = vor.u32 %v2132_v2, %v2128_v1  ;;  %v2757_v46 = vrot.slane %v8282_v13, 5  ;;  %v2704_v2 = vld [vmem:[#allocation2 + $0x24] sm:$0xe] }
 0x38e   : > { %v2091_v52 = vsel %vm8751_vm8, %v2086_v56, %v2090_v23  ;;  %v2138_v38 = vrot.slane %v2136_v21, 5  ;;  %7738 = vmatprep.mubr.msk.bf16.mxu0 %vm408_vm0, %v7986_v61  ;;  %7801 = vmatpush3.bf16.msra.mxu0 %v9625_v6  ;;  %v6984_v23 = vrot.slane %v2702_v62, 9  ;;  %v2755_v7 = vsel %vm9748_vm3, %v6983_v32, %v2754_v59 }
 0x38f   : > { %v6930_v4 = vcombine.low %v2081_v27, %v2091_v52  ;;  %v2115_v30 = vsel %vm8751_vm8, %v2110_v25, %v2114_v0  ;;  %v2134_v15 = vrot.slane %v2133_v17, 4  ;;  %v2756_v18 = vrot.slane %v2754_v59, 4  ;;  %v7989_v17 = vld [vmem:[#allocation2 + $0x3c] sm:$0xff]  }
 0x390   : > { %v6931_v29 = vcombine.low %v2105_v9, %v2115_v30  ;;  %v9762_v1 = vsel %vm9748_vm3, %v9505_v12, %v2764_v37  ;;  %v9771_v0 = vsel %vm9748_vm3, %v6984_v23, %v2761_v49  ;;  %v6985_v27 = vrot.slane %v2703_v42, 9  ;;  %v2705_v9 = vld [vmem:[#allocation2 + $0x30] sm:$0xe]  ;;  %v9783_v49 = vld [vmem:[%s11906_s5 + $0x38] sm:$0xff]   ;;  %v2707_v42 = vld [vmem:[#allocation2 + $0x48] sm:$0xe] }
 0x391   : > { %7657 = vmatmul.mubr.msk.bf16.gmra.mxu1 %vm408_vm0, %v6930_v4  ;;  %v2139_v6 = vsel %vm8751_vm8, %v2134_v15, %v2138_v38  ;;  %v2768_v5 = vrot.slane %v9501_v36, 5  ;;  %v2758_v37 = vsel %vm9748_vm3, %v2756_v18, %v2757_v46  ;;  %v7002_v61 = vcombine.low %v9771_v0, %v9762_v1  ;;  %v7987_v36 = vld [vmem:[#allocation2 + $0x30] sm:$0xff]   ;;  %7868 = vmatprep.subr.bf16.mxu0 %v9783_v49 }
 0x392   : > { %7660 = vmatprep.mubr.msk.bf16.mxu1 %vm408_vm0, %v6931_v29  ;;  %v6932_v12 = vcombine.low %v2129_v50, %v2139_v6  ;;  %v2771_v56 = vrot.slane %v9547_v3, 5  ;;  %v7001_v21 = vcombine.low %v2755_v7, %v2758_v37  ;;  %v6986_v50 = vrot.slane %v2704_v2, 9  ;;  %v2708_v30 = vld [vmem:[#allocation2 + $0x54] sm:$0xe]  ;;  %v2709_v6 = vld [vmem:[#allocation2 + $0x60] sm:$0xe] }
 0x393   : > { %v9787_v62 = vsel %vm9748_vm3, %v6985_v27, %v2768_v5  ;;  %v2770_v25 = vrot.slane %v2768_v5, 4  ;;  %v2775_v32 = vrot.slane %v9518_v51, 5  ;;  %v2778_v52 = vrot.slane %v9559_v60, 5  ;;  %v2710_v37 = vld [vmem:[#allocation2 + $0x6c] sm:$0xe] }
 0x394   : > { %v6987_v3 = vrot.slane %v2705_v9, 9  ;;  %v2782_v38 = vrot.slane %v9543_v33, 5  ;;  %v2785_v59 = vrot.slane %v9581_v41, 5  ;;  %v6988_v13 = vrot.slane %v2706_v31, 9  ;;  %v7990_v31 = vld [vmem:[#allocation2 + $0x48] sm:$0xff]  }
 0x395   : > { %7739 = vmatmul.mubr.msk.bf16.gmra.mxu0 %vm408_vm0, %v7987_v36  ;;  %v9796_v11 = vsel %vm9748_vm3, %v2770_v25, %v2771_v56  ;;  %v2789_v46 = vrot.slane %v9554_v14, 5  ;;  %v9805_v33 = vsel %vm9748_vm3, %v6986_v50, %v2775_v32  ;;  %v2777_v60 = vrot.slane %v2775_v32, 4 }
 0x396   : > { %7742 = vmatprep.mubr.msk.bf16.mxu0 %vm408_vm0, %v7989_v17  ;;  %v7003_v51 = vcombine.low %v9787_v62, %v9796_v11  ;;  %v9809_v4 = vsel %vm9748_vm3, %v6987_v3, %v2782_v38  ;;  %v2784_v41 = vrot.slane %v2782_v38, 4  ;;  %v2792_v23 = vrot.slane %v9596_v63, 5  ;;  %v4254_v11 = vld [vmem:[#allocation2 + $0xc] sm:$0xe] }
 0x397   : > { %v9813_v14 = vsel %vm9748_vm3, %v6988_v13, %v2789_v46  ;;  %v2791_v15 = vrot.slane %v2789_v46, 4  ;;  %v9818_v29 = vsel %vm9748_vm3, %v2777_v60, %v2778_v52  ;;  %v6989_v7 = vrot.slane %v2707_v42, 9  ;;  %v2712_v46 = vld [vmem:[#allocation2 + $0x84] sm:$0xe] }
 0x398   : > { %v2796_v18 = vrot.slane %v9565_v10, 5  ;;  %v2799_v2 = vrot.slane %v9607_v53, 5  ;;  %v7004_v27 = vcombine.low %v9805_v33, %v9818_v29  ;;  %v9827_v5 = vsel %vm9748_vm3, %v2784_v41, %v2785_v59  ;;  %v2711_v59 = vld [vmem:[#allocation2 + $0x78] sm:$0xe] }
 0x399   : > { %7661 = vmatmul.mubr.msk.bf16.gmra.mxu1 %vm408_vm0, %v6932_v12  ;;  %v9831_v63 = vsel %vm9748_vm3, %v2791_v15, %v2792_v23  ;;  %v6990_v9 = vrot.slane %v2708_v30, 9  ;;  %v7005_v10 = vcombine.low %v9809_v4, %v9827_v5  ;;  %v2803_v36 = vrot.slane %v9587_v45, 5 }
 0x39a   : > { %7700 = vmatprep.mubr.msk.bf16.mxu1 %vm408_vm0, %v7001_v21  ;;  %v7006_v53 = vcombine.low %v9813_v14, %v9831_v63  ;;  %v9840_v12 = vsel %vm9748_vm3, %v6989_v7, %v2796_v18  ;;  %v2798_v56 = vrot.slane %v2796_v18, 4  ;;  %v2806_v25 = vrot.slane %v9620_v47, 5  ;;  %v7991_v21 = vld [vmem:[#allocation2 + $0x54] sm:$0xff]   ;;  %v2713_v7 = vld [vmem:[#allocation2 + $0x90] sm:$0xe] }
 0x39b   : > { %v6991_v50 = vrot.slane %v2709_v6, 9  ;;  %v2810_v17 = vrot.slane %v9600_v16, 5  ;;  %v2813_v52 = vrot.slane %v9643_v22, 5  ;;  %v6992_v3 = vrot.slane %v2710_v37, 9  ;;  %v9877_v18 = vld [vmem:[%s11906_s5 + $0x30] sm:$0xff]  }
 0x39c   : > { %v9847_v32 = vsel %vm9748_vm3, %v2798_v56, %v2799_v2  ;;  %v2817_v38 = vrot.slane %v9612_v39, 5  ;;  %v9856_v47 = vsel %vm9748_vm3, %v6990_v9, %v2803_v36  ;;  %v2805_v16 = vrot.slane %v2803_v36, 4  ;;  %v2714_v9 = vld [vmem:[#allocation2 + $0x9c] sm:$0xe]  ;;  %v9901_v36 = vld [vmem:[#allocation2 + $0x10] sm:$0xf] }
 0x39d   : > { %7743 = vmatmul.mubr.msk.bf16.gmra.mxu0 %vm408_vm0, %v7990_v31  ;;  %v7007_v45 = vcombine.low %v9840_v12, %v9847_v32  ;;  %v9860_v13 = vsel %vm9748_vm3, %v6991_v50, %v2810_v17  ;;  %v2812_v22 = vrot.slane %v2810_v17, 4  ;;  %v2820_v60 = vrot.slane %v9656_v26, 5  ;;  %v9911_v50 = vld [vmem:[#allocation2 + $0x14] sm:$0x1]  ;;  %v7992_v17 = vld [vmem:[#allocation2 + $0x60] sm:$0xff]  }
 0x39e   : > { %7746 = vmatprep.mubr.msk.bf16.mxu0 %vm408_vm0, %v7991_v21  ;;  %v9865_v39 = vsel %vm9748_vm3, %v6992_v3, %v2817_v38  ;;  %v2819_v42 = vrot.slane %v2817_v38, 4  ;;  %v9870_v30 = vsel %vm9748_vm3, %v2805_v16, %v2806_v25  ;;  %v6993_v41 = vrot.slane %v2711_v59, 9 }
 0x39f   : > { %v2824_v15 = vrot.slane %v9631_v55, 5  ;;  %v2827_v23 = vrot.slane %v9671_v20, 5  ;;  %v7008_v2 = vcombine.low %v9856_v47, %v9870_v30  ;;  %v9883_v26 = vsel %vm9748_vm3, %v2812_v22, %v2813_v52 }
 0x3a0   : > { %v9887_v6 = vsel %vm9748_vm3, %v2819_v42, %v2820_v60  ;;  %v6994_v55 = vrot.slane %v2712_v46, 9  ;;  %v7009_v20 = vcombine.low %v9860_v13, %v9883_v26  ;;  %v2831_v1 = vrot.slane %v9650_v43, 5  ;;  %v7993_v43 = vld [vmem:[#allocation2 + $0x6c] sm:$0xff]   ;;  %v9936_v46 = vld [vmem:[#allocation2 + $0x1c] sm:$0xf] }
 0x3a1   : > { %7701 = vmatmul.mubr.msk.bf16.vlgmr.msra.gmra.mxu1 %vm408_vm0, %v7002_v61  ;;  %v7010_v37 = vcombine.low %v9865_v39, %v9887_v6  ;;  %v9899_v56 = vsel %vm9748_vm3, %v6993_v41, %v2824_v15  ;;  %v2826_v31 = vrot.slane %v2824_v15, 4  ;;  %v2834_v0 = vrot.slane %v9684_v28, 5  ;;  %v4255_v15 = vld [vmem:[#allocation2 + $0x18] sm:$0xe]  ;;  %v4259_v26 = vld [vmem:[#allocation2 + $0x48] sm:$0xe] }
 0x3a2   : > { %7767 = vmatpush3.bf16.msra.mxu1 %v9573_v35  ;;  %7704 = vmatprep.mubr.msk.bf16.mxu1 %vm408_vm0, %v7003_v51  ;;  %v6995_v61 = vrot.slane %v2713_v7, 9  ;;  %v2838_v25 = vrot.slane %v9662_v58, 5  ;;  %v2841_v35 = vrot.slane %v9699_v48, 5  ;;  %v6996_v52 = vrot.slane %v2714_v9, 9  ;;  %v2715_v48 = vld [vmem:[#allocation2 + $0xa8] sm:$0xe] }
 0x3a3   : > { %v9915_v21 = vsel %vm9748_vm3, %v2826_v31, %v2827_v23  ;;  %v2845_v62 = vrot.slane %v9676_v24, 5  ;;  %7834 = vmatprep.subr.bf16.mxu1 %v9877_v18  ;;  %v9924_v58 = vsel %vm9748_vm3, %v6994_v55, %v2831_v1  ;;  %v2833_v51 = vrot.slane %v2831_v1, 4  ;;  %v9955_v9 = vld [vmem:[#allocation2 + $0x20] sm:$0x1]  ;;  %v2716_v31 = vld [vmem:[#allocation2 + $0xb4] sm:$0xe] }
 0x3a4   : > { %v7011_v28 = vcombine.low %v9899_v56, %v9915_v21  ;;  %v9928_v3 = vsel %vm9748_vm3, %v6995_v61, %v2838_v25  ;;  %v2840_v24 = vrot.slane %v2838_v25, 4  ;;  %v2848_v16 = vrot.slane %v9712_v54, 5  ;;  %v3530_v1 = vld [vmem:[#allocation2 + $0x24] sm:$0xf] }
 0x3a5   : > { %7747 = vmatmul.mubr.msk.bf16.gmra.mxu0 %vm408_vm0, %v7992_v17  ;;  %v9933_v38 = vsel %vm9748_vm3, %v6996_v52, %v2845_v62  ;;  %v2847_v59 = vrot.slane %v2845_v62, 4  ;;  %v9941_v22 = vsel %vm9748_vm3, %v2833_v51, %v2834_v0  ;;  %v7104_v42 = vrot.slane %v4254_v11, 9  ;;  %v9965_v17 = vld [vmem:[#allocation2 + $0x28] sm:$0xf] }
 0x3a6   : > { %7750 = vmatprep.mubr.msk.bf16.mxu0 %vm408_vm0, %v7993_v43  ;;  %v4320_v60 = vrot.slane %v9901_v36, 5  ;;  %v4323_v41 = vrot.slane %v9911_v50, 5  ;;  %v7012_v23 = vcombine.low %v9924_v58, %v9941_v22  ;;  %v9949_v54 = vsel %vm9748_vm3, %v2840_v24, %v2841_v35  ;;  %v9974_v43 = vld [vmem:[#allocation2 + $0x2c] sm:$0x1] }
 0x3a7   : > { %v9953_v7 = vsel %vm9748_vm3, %v2847_v59, %v2848_v16  ;;  %v6997_v55 = vrot.slane %v2715_v48, 9  ;;  %v2852_v35 = vrot.slane %v9690_v40, 5  ;;  %v2855_v52 = vrot.slane %v9718_v57, 5  ;;  %v4256_v57 = vld [vmem:[#allocation2 + $0x24] sm:$0xe] }
 0x3a8   : > { %v9963_v61 = vsel %vm9748_vm3, %v7104_v42, %v4320_v60  ;;  %v4322_v25 = vrot.slane %v4320_v60, 4  ;;  %v7105_v62 = vrot.slane %v4255_v15, 9  ;;  %v4327_v11 = vrot.slane %v9936_v46, 5  ;;  %v7995_v59 = vld [vmem:[#allocation2 + $0x84] sm:$0xff]  }
 0x3a9   : > { %7705 = vmatmul.mubr.msk.bf16.gmra.mxu1 %vm408_vm0, %v7004_v27  ;;  %v4330_v33 = vrot.slane %v9955_v9, 5  ;;  %v6998_v29 = vrot.slane %v2716_v31, 9  ;;  %v2859_v40 = vrot.slane %v9708_v8, 5  ;;  %v7994_v27 = vld [vmem:[#allocation2 + $0x78] sm:$0xff]   ;;  %v9990_v24 = vsel %vm9748_vm3, %v6997_v55, %v2852_v35 }
 0x3aa   : > { %7708 = vmatprep.mubr.msk.bf16.mxu1 %vm408_vm0, %v7005_v10  ;;  %v9982_v51 = vsel %vm9748_vm3, %v4322_v25, %v4323_v41  ;;  %v2854_v4 = vrot.slane %v2852_v35, 4  ;;  %v9994_v5 = vsel %vm9748_vm3, %v7105_v62, %v4327_v11  ;;  %v3524_v10 = vld [vmem:[#allocation2 + $0xc] sm:$0xf]  ;;  %v4329_v16 = vrot.slane %v4327_v11, 4  ;;  %v10019_v62 = vld [vmem:[#allocation2 + $0x34] sm:$0xf] }
 0x3ab   : > { %v7122_v48 = vcombine.low %v9963_v61, %v9982_v51  ;;  %v9998_v8 = vsel %vm9748_vm3, %v6998_v29, %v2859_v40  ;;  %v2861_v42 = vrot.slane %v2859_v40, 4  ;;  %v2862_v60 = vrot.slane %v9733_v44, 5  ;;  %v4257_v11 = vld [vmem:[#allocation2 + $0x30] sm:$0xe]  ;;  %v7997_v25 = vld [vmem:[#allocation2 + $0x9c] sm:$0xff]  }
 0x3ac   : > { %v10004_v41 = vsel %vm9748_vm3, %v2854_v4, %v2855_v52  ;;  %v7106_v15 = vrot.slane %v4256_v57, 9  ;;  %v4334_v55 = vrot.slane %v9965_v17, 5  ;;  %v4337_v31 = vrot.slane %v9974_v43, 5  ;;  %v7996_v40 = vld [vmem:[#allocation2 + $0x90] sm:$0xff]   ;;  %v10054_v29 = vld [vmem:[#allocation2 + $0x40] sm:$0xf] }
 0x3ad   : > { %7751 = vmatmul.mubr.msk.bf16.gmra.mxu0 %vm408_vm0, %v7994_v27  ;;  %v10013_v35 = vsel %vm9748_vm3, %v4329_v16, %v4330_v33  ;;  %v10017_v44 = vsel %vm9748_vm3, %v2861_v42, %v2862_v60  ;;  %v3573_v52 = vshrl.u32 %v3524_v10, 16  ;;  %v3576_v4 = vshll.u32 %v3524_v10, 16  ;;  %v10031_v42 = vld [vmem:[#allocation2 + $0x38] sm:$0x1]  ;;  %v4261_v61 = vld [vmem:[#allocation2 + $0x60] sm:$0xe] }
 0x3ae   : > { %7754 = vmatprep.mubr.msk.bf16.mxu0 %vm408_vm0, %v7995_v59  ;;  %v10027_v57 = vsel %vm9748_vm3, %v7106_v15, %v4334_v55  ;;  %v4336_v33 = vrot.slane %v4334_v55, 4  ;;  %v3582_v59 = vshll.u32 %v9901_v36, 16  ;;  %v3586_v16 = vshrl.u32 %v9901_v36, 16 }
 0x3af   : > { %v3575_v27 = vrot.slane %v3573_v52, 4  ;;  %v3592_v15 = vshll.u32 %v9911_v50, 16  ;;  %v7107_v55 = vrot.slane %v4257_v11, 9  ;;  %v4341_v10 = vrot.slane %v10019_v62, 5  ;;  %v3527_v52 = vld [vmem:[#allocation2 + $0x18] sm:$0xf] }
 0x3b0   : > { %v10039_v60 = vsel %vm9748_vm3, %v4336_v33, %v4337_v31  ;;  %v3578_v63 = vrot.slane %v3576_v4, 5  ;;  %v3588_v36 = vrot.slane %v3586_v16, 4  ;;  %v4344_v33 = vrot.slane %v10031_v42, 5 }
 0x3b1   : > { %7709 = vmatmul.mubr.msk.bf16.gmra.mxu1 %vm408_vm0, %v7006_v53  ;;  %v3584_v53 = vrot.slane %v3582_v59, 5  ;;  %v3594_v31 = vrot.slane %v3592_v15, 5  ;;  %v10051_v50 = vsel %vm9748_vm3, %v7107_v55, %v4341_v10  ;;  %v4343_v11 = vrot.slane %v4341_v10, 4  ;;  %v4258_v55 = vld [vmem:[#allocation2 + $0x3c] sm:$0xe] }
 0x3b2   : > { %7712 = vmatprep.mubr.msk.bf16.mxu1 %vm408_vm0, %v7007_v45  ;;  %v3579_v0 = vor.u32 %v3578_v63, %v3575_v27  ;;  %v3597_v32 = vshrl.u32 %v3527_v52, 16  ;;  %v3600_v45 = vshll.u32 %v3527_v52, 16  ;;  %v3606_v59 = vshll.u32 %v9936_v46, 16 }
 0x3b3   : > { %v3589_v12 = vor.u32 %v3588_v36, %v3584_v53  ;;  %v10059_v4 = vsel %vm9748_vm3, %v4343_v11, %v4344_v33  ;;  %v3610_v16 = vshrl.u32 %v9936_v46, 16  ;;  %v3616_v15 = vshll.u32 %v9955_v9, 16 }
 0x3b4   : > { %v3580_v27 = vrot.slane %v3579_v0, 4  ;;  %v7125_v52 = vcombine.low %v10051_v50, %v10059_v4  ;;  %v3599_v63 = vrot.slane %v3597_v32, 4  ;;  %v3602_v36 = vrot.slane %v3600_v45, 5 }
 0x3b5   : > { %7755 = vmatmul.mubr.msk.bf16.gmra.mxu0 %vm408_vm0, %v7996_v40  ;;  %v3590_v10 = vrot.slane %v3589_v12, 4  ;;  %v10067_v40 = vld [vmem:[#allocation2 + $0x44] sm:$0x1]  ;;  %v3608_v11 = vrot.slane %v3606_v59, 5  ;;  %v3612_v33 = vrot.slane %v3610_v16, 4  ;;  %v3618_v14 = vrot.slane %v3616_v15, 5 }
 0x3b6   : > { %7758 = vmatprep.mubr.msk.bf16.mxu0 %vm408_vm0, %v7997_v25  ;;  %v3585_v46 = vsel %vm8751_vm8, %v3580_v27, %v3584_v53  ;;  %v7108_v25 = vrot.slane %v4258_v55, 9  ;;  %v4348_v0 = vrot.slane %v10054_v29, 5  ;;  %v3603_v32 = vor.u32 %v3602_v36, %v3599_v63  ;;  %v7998_v53 = vld [vmem:[#allocation2 + $0xa8] sm:$0xff]   ;;  %v10091_v15 = vld [vmem:[#allocation2 + $0x50] sm:$0x1] }
 0x3b7   : > { %v3595_v9 = vsel %vm8751_vm8, %v3590_v10, %v3594_v31  ;;  %v3613_v45 = vor.u32 %v3612_v33, %v3608_v11  ;;  %v4351_v59 = vrot.slane %v10067_v40, 5  ;;  %v3621_v47 = vshrl.u32 %v3530_v1, 16 }
 0x3b8   : > { %v10078_v12 = vcombine.low %v3585_v46, %v3595_v9  ;;  %v10087_v31 = vsel %vm9748_vm3, %v7108_v25, %v4348_v0  ;;  %v4350_v16 = vrot.slane %v4348_v0, 4  ;;  %v3624_v30 = vshll.u32 %v3530_v1, 16  ;;  %v3533_v46 = vld [vmem:[#allocation2 + $0x30] sm:$0xf] }
 0x3b9   : > { %7713 = vmatmul.mubr.msk.bf16.gmra.mxu1 %vm408_vm0, %v7008_v2  ;;  %v10089_v2 = vld [vmem:[#allocation2 + $0x4c] sm:$0xf]  ;;  %v3604_v55 = vrot.slane %v3603_v32, 4  ;;  %v3614_v27 = vrot.slane %v3613_v45, 4  ;;  %v3630_v10 = vshll.u32 %v9965_v17, 16  ;;  %v3634_v13 = vshrl.u32 %v9965_v17, 16 }
 0x3ba   : > { %7716 = vmatprep.mubr.msk.bf16.mxu1 %vm408_vm0, %v7009_v20  ;;  %v7999_v20 = vld [vmem:[#allocation2 + $0xb4] sm:$0xff]   ;;  %v10097_v63 = vsel %vm9748_vm3, %v4350_v16, %v4351_v59  ;;  %v3623_v36 = vrot.slane %v3621_v47, 4  ;;  %v3626_v33 = vrot.slane %v3624_v30, 5  ;;  %v3640_v1 = vshll.u32 %v9974_v43, 16  ;;  %v10115_v17 = vld [vmem:[#allocation2 + $0x5c] sm:$0x1] }
 0x3bb   : > { %v3609_v9 = vsel %vm8751_vm8, %v3604_v55, %v3608_v11  ;;  %v3619_v25 = vsel %vm8751_vm8, %v3614_v27, %v3618_v14  ;;  %v3632_v0 = vrot.slane %v3630_v10, 5  ;;  %v3636_v59 = vrot.slane %v3634_v13, 4  ;;  %v10112_v30 = vld [vmem:[#allocation2 + $0x58] sm:$0xf] }
 0x3bc   : > { %v10108_v32 = vcombine.low %v3609_v9, %v3619_v25  ;;  %v3627_v45 = vor.u32 %v3626_v33, %v3623_v36  ;;  %v3642_v43 = vrot.slane %v3640_v1, 5  ;;  %v7109_v16 = vrot.slane %v4259_v26, 9 }
 0x3bd   : > { %7759 = vmatmul.mubr.msk.bf16.gmra.mxu0 %vm408_vm0, %v7998_v53  ;;  %v4355_v53 = vrot.slane %v10089_v2, 5  ;;  %v4358_v47 = vrot.slane %v10091_v15, 5  ;;  %v3645_v11 = vshrl.u32 %v3533_v46, 16  ;;  %v3637_v55 = vor.u32 %v3636_v59, %v3632_v0  ;;  %v3536_v59 = vld [vmem:[#allocation2 + $0x3c] sm:$0xf] }
 0x3be   : > { %7762 = vmatprep.mubr.msk.bf16.mxu0 %vm408_vm0, %v7999_v20  ;;  %v3628_v14 = vrot.slane %v3627_v45, 4  ;;  %v3648_v27 = vshll.u32 %v3533_v46, 16  ;;  %v3654_v10 = vshll.u32 %v10019_v62, 16  ;;  %v4260_v20 = vld [vmem:[#allocation2 + $0x54] sm:$0xe]  ;;  %v3658_v33 = vshrl.u32 %v10019_v62, 16 }
 0x3bf   : > { %v10123_v13 = vsel %vm9748_vm3, %v7109_v16, %v4355_v53  ;;  %v4357_v26 = vrot.slane %v4355_v53, 4  ;;  %v3647_v36 = vrot.slane %v3645_v11, 4  ;;  %v3638_v46 = vrot.slane %v3637_v55, 4 }
 0x3c0   : > { %v3633_v1 = vsel %vm8751_vm8, %v3628_v14, %v3632_v0  ;;  %v3650_v39 = vrot.slane %v3648_v27, 5  ;;  %v3656_v6 = vrot.slane %v3654_v10, 5  ;;  %v3660_v25 = vrot.slane %v3658_v33, 4  ;;  %v10154_v27 = vld [vmem:[#allocation2 + $0x64] sm:$0xf] }
 0x3c1   : > { %7717 = vmatmul.mubr.msk.bf16.gmra.mxu1 %vm408_vm0, %v7010_v37  ;;  %v8000_v37 = vld [vmem:[#allocation2 + $0xc0] sm:$0xff]   ;;  %v10134_v9 = vsel %vm9748_vm3, %v4357_v26, %v4358_v47  ;;  %v3664_v45 = vshll.u32 %v10031_v42, 16  ;;  %v7110_v62 = vrot.slane %v4260_v20, 9  ;;  %v3643_v56 = vsel %vm8751_vm8, %v3638_v46, %v3642_v43  ;;  %v10156_v10 = vld [vmem:[#allocation2 + $0x68] sm:$0x1] }
 0x3c2   : > { %7720 = vmatprep.mubr.msk.bf16.mxu1 %vm408_vm0, %v7011_v28  ;;  %v7127_v21 = vcombine.low %v10123_v13, %v10134_v9  ;;  %v3651_v28 = vor.u32 %v3650_v39, %v3647_v36  ;;  %v4362_v0 = vrot.slane %v10112_v30, 5  ;;  %v10143_v16 = vcombine.low %v3633_v1, %v3643_v56  ;;  %v3539_v39 = vld [vmem:[#allocation2 + $0x48] sm:$0xf] }
 0x3c3   : > { %v3661_v53 = vor.u32 %v3660_v25, %v3656_v6  ;;  %v3666_v47 = vrot.slane %v3664_v45, 5  ;;  %v4365_v11 = vrot.slane %v10115_v17, 5  ;;  %v3669_v55 = vshrl.u32 %v3536_v59, 16 }
 0x3c4   : > { %v3652_v42 = vrot.slane %v3651_v28, 4  ;;  %v10152_v43 = vsel %vm9748_vm3, %v7110_v62, %v4362_v0  ;;  %v4364_v14 = vrot.slane %v4362_v0, 4  ;;  %v3672_v26 = vshll.u32 %v3536_v59, 16  ;;  %v4262_v0 = vld [vmem:[#allocation2 + $0x6c] sm:$0xe] }
 0x3c5   : > { %7763 = vmatmul.mubr.msk.bf16.gmra.mxu0 %vm408_vm0, %v8000_v37  ;;  %v3662_v20 = vrot.slane %v3661_v53, 4  ;;  %v3678_v36 = vshll.u32 %v10054_v29, 16  ;;  %v3682_v33 = vshrl.u32 %v10054_v29, 16  ;;  %v3671_v1 = vrot.slane %v3669_v55, 4 }
 0x3c6   : > { %7802 = vmatprep.mubr.msk.bf16.mxu0 %vm408_vm0, %v7122_v48  ;;  %v3657_v51 = vsel %vm8751_vm8, %v3652_v42, %v3656_v6  ;;  %v10164_v48 = vsel %vm9748_vm3, %v4364_v14, %v4365_v11  ;;  %v3688_v46 = vshll.u32 %v10067_v40, 16  ;;  %v3674_v6 = vrot.slane %v3672_v26, 5 }
 0x3c7   : > { %v3667_v29 = vsel %vm8751_vm8, %v3662_v20, %v3666_v47  ;;  %v7128_v37 = vcombine.low %v10152_v43, %v10164_v48  ;;  %v3680_v25 = vrot.slane %v3678_v36, 5  ;;  %v12132_v45 = vcombine.low %v9928_v3, %v9949_v54  ;;  %v10185_v54 = vld [vmem:[#allocation2 + $0x70] sm:$0xf]  ;;  %v10308_v43 = vld [vmem:[%s11906_s5 + $0x40] sm:$0xff]  }
 0x3c8   : > { %v10179_v40 = vcombine.low %v3657_v51, %v3667_v29  ;;  %v3684_v62 = vrot.slane %v3682_v33, 4  ;;  %v3690_v59 = vrot.slane %v3688_v46, 5  ;;  %v7111_v58 = vrot.slane %v4261_v61, 9 }
 0x3c9   : > { %7721 = vmatmul.mubr.msk.bf16.gmra.mxu1 %vm408_vm0, %v7012_v23  ;;  %v3675_v22 = vor.u32 %v3674_v6, %v3671_v1  ;;  %v4369_v23 = vrot.slane %v10154_v27, 5  ;;  %v4372_v56 = vrot.slane %v10156_v10, 5  ;;  %v3693_v28 = vshrl.u32 %v3539_v39, 16  ;;  %v10199_v1 = vld [vmem:[#allocation2 + $0x74] sm:$0x1] }
 0x3ca   : > { %7724 = vmatprep.mubr.msk.bf16.mxu1 %vm408_vm0, %v12132_v45  ;;  %v3685_v53 = vor.u32 %v3684_v62, %v3680_v25  ;;  %v3696_v47 = vshll.u32 %v3539_v39, 16  ;;  %v3702_v11 = vshll.u32 %v10089_v2, 16  ;;  %v3706_v3 = vshrl.u32 %v10089_v2, 16 }
 0x3cb   : > { %v12133_v42 = vcombine.low %v9994_v5, %v10013_v35  ;;  %v3676_v14 = vrot.slane %v3675_v22, 4  ;;  %v10193_v55 = vsel %vm9748_vm3, %v7111_v58, %v4369_v23  ;;  %v4371_v20 = vrot.slane %v4369_v23, 4 }
 0x3cc   : > { %v3695_v26 = vrot.slane %v3693_v28, 4  ;;  %v12134_v36 = vcombine.low %v10027_v57, %v10039_v60  ;;  %v3686_v2 = vrot.slane %v3685_v53, 4  ;;  %v3698_v33 = vrot.slane %v3696_v47, 5  ;;  %v3542_v60 = vld [vmem:[#allocation2 + $0x54] sm:$0xf] }
 0x3cd   : > { %7803 = vmatmul.mubr.msk.bf16.vlgmr.msra.gmra.mxu0 %vm408_vm0, %v12133_v42  ;;  %v3704_v61 = vrot.slane %v3702_v11, 5  ;;  %v3708_v51 = vrot.slane %v3706_v3, 4  ;;  %v3681_v5 = vsel %vm8751_vm8, %v3676_v14, %v3680_v25  ;;  %v10206_v35 = vsel %vm9748_vm3, %v4371_v20, %v4372_v56  ;;  %v3545_v20 = vld [vmem:[#allocation2 + $0x60] sm:$0xf] }
 0x3ce   : > { %7806 = vmatprep.mubr.msk.bf16.mxu0 %vm408_vm0, %v12134_v36  ;;  %7869 = vmatpush3.bf16.msra.mxu0 %v9783_v49  ;;  %v3712_v46 = vshll.u32 %v10091_v15, 16  ;;  %v7112_v57 = vrot.slane %v4262_v0, 9  ;;  %v3691_v39 = vsel %vm8751_vm8, %v3686_v2, %v3690_v59  ;;  %v7129_v29 = vcombine.low %v10193_v55, %v10206_v35  ;;  %v10225_v0 = vld [vmem:[#allocation2 + $0x7c] sm:$0xf] }
 0x3cf   : > { %v3699_v6 = vor.u32 %v3698_v33, %v3695_v26  ;;  %v3709_v45 = vor.u32 %v3708_v51, %v3704_v61  ;;  %v12135_v49 = vcombine.low %v9933_v38, %v9953_v7  ;;  %v10217_v25 = vcombine.low %v3681_v5, %v3691_v39  ;;  %v10227_v38 = vld [vmem:[#allocation2 + $0x80] sm:$0x1]  ;;  %v4263_v7 = vld [vmem:[#allocation2 + $0x78] sm:$0xe] }
 0x3d0   : > { %v3714_v62 = vrot.slane %v3712_v46, 5  ;;  %v4376_v15 = vrot.slane %v10185_v54, 5  ;;  %v4379_v58 = vrot.slane %v10199_v1, 5  ;;  %v12136_v59 = vcombine.low %v9990_v24, %v10004_v41 }
 0x3d1   : > { %7725 = vmatmul.mubr.msk.bf16.gmra.mxu1 %vm408_vm0, %v12135_v49  ;;  %v3700_v22 = vrot.slane %v3699_v6, 4  ;;  %v3710_v23 = vrot.slane %v3709_v45, 4  ;;  %v3717_v56 = vshrl.u32 %v3542_v60, 16  ;;  %v3720_v28 = vshll.u32 %v3542_v60, 16  ;;  %v10261_v45 = vld [vmem:[#allocation2 + $0x8c] sm:$0x1] }
 0x3d2   : > { %7728 = vmatprep.mubr.msk.bf16.mxu1 %vm408_vm0, %v12136_v59  ;;  %v10231_v53 = vsel %vm9748_vm3, %v7112_v57, %v4376_v15  ;;  %v4378_v47 = vrot.slane %v4376_v15, 4  ;;  %v3726_v11 = vshll.u32 %v10112_v30, 16  ;;  %v3730_v24 = vshrl.u32 %v10112_v30, 16  ;;  %v4264_v49 = vld [vmem:[#allocation2 + $0x84] sm:$0xe] }
 0x3d3   : > { %v3705_v41 = vsel %vm8751_vm8, %v3700_v22, %v3704_v61  ;;  %v3715_v3 = vsel %vm8751_vm8, %v3710_v23, %v3714_v62  ;;  %v3719_v42 = vrot.slane %v3717_v56, 4  ;;  %v3722_v14 = vrot.slane %v3720_v28, 5  ;;  %v3548_v22 = vld [vmem:[#allocation2 + $0x6c] sm:$0xf] }
 0x3d4   : > { %v10243_v26 = vcombine.low %v3705_v41, %v3715_v3  ;;  %v10247_v36 = vsel %vm9748_vm3, %v4378_v47, %v4379_v58  ;;  %v3728_v30 = vrot.slane %v3726_v11, 5  ;;  %v3732_v2 = vrot.slane %v3730_v24, 4 }
 0x3d5   : > { %7807 = vmatmul.mubr.msk.bf16.gmra.mxu0 %vm408_vm0, %v7125_v52  ;;  %v12137_v33 = vcombine.low %v10087_v31, %v10097_v63  ;;  %v7130_v61 = vcombine.low %v10231_v53, %v10247_v36  ;;  %v3723_v51 = vor.u32 %v3722_v14, %v3719_v42  ;;  %v3736_v50 = vshll.u32 %v10115_v17, 16  ;;  %v10259_v63 = vld [vmem:[#allocation2 + $0x88] sm:$0xf]  ;;  %v4265_v42 = vld [vmem:[#allocation2 + $0x90] sm:$0xe] }
 0x3d6   : > { %v7113_v4 = vrot.slane %v4263_v7, 9  ;;  %v3733_v52 = vor.u32 %v3732_v2, %v3728_v30  ;;  %v4383_v5 = vrot.slane %v10225_v0, 5  ;;  %v4386_v46 = vrot.slane %v10227_v38, 5 }
 0x3d7   : > { %7810 = vmatprep.mubr.msk.bf16.mxu0 %vm408_vm0, %v12137_v33  ;;  %v3741_v57 = vshrl.u32 %v3545_v20, 16  ;;  %v3724_v60 = vrot.slane %v3723_v51, 4  ;;  %v3738_v39 = vrot.slane %v3736_v50, 5  ;;  %v3744_v6 = vshll.u32 %v3545_v20, 16 }
 0x3d8   : > { %v3750_v31 = vshll.u32 %v10154_v27, 16  ;;  %v12138_v17 = vcombine.low %v9998_v8, %v10017_v44  ;;  %v3734_v62 = vrot.slane %v3733_v52, 4  ;;  %v10269_v15 = vsel %vm9748_vm3, %v7113_v4, %v4383_v5  ;;  %v10303_v4 = vld [vmem:[#allocation2 + $0x94] sm:$0xf] }
 0x3d9   : > { %v4385_v58 = vrot.slane %v4383_v5, 4  ;;  %v3743_v59 = vrot.slane %v3741_v57, 4  ;;  %v3729_v23 = vsel %vm8751_vm8, %v3724_v60, %v3728_v30  ;;  %v3746_v56 = vrot.slane %v3744_v6, 5  ;;  %v3551_v6 = vld [vmem:[#allocation2 + $0x78] sm:$0xf] }
 0x3da   : > { %7729 = vmatmul.mubr.msk.bf16.gmra.mxu1 %vm408_vm0, %v12138_v17  ;;  %v3752_v28 = vrot.slane %v3750_v31, 5  ;;  %v3754_v8 = vshrl.u32 %v10154_v27, 16  ;;  %v3739_v44 = vsel %vm8751_vm8, %v3734_v62, %v3738_v39  ;;  %v3760_v47 = vshll.u32 %v10156_v10, 16 }
 0x3db   : > { %7768 = vmatprep.mubr.msk.bf16.mxu1 %vm408_vm0, %v10078_v12  ;;  %v10280_v7 = vsel %vm9748_vm3, %v4385_v58, %v4386_v46  ;;  %v7114_v11 = vrot.slane %v4264_v49, 9  ;;  %v10283_v24 = vcombine.low %v3729_v23, %v3739_v44  ;;  %v3747_v41 = vor.u32 %v3746_v56, %v3743_v59  ;;  %v10312_v46 = vld [vmem:[#allocation2 + $0x98] sm:$0x1]  ;;  %v3554_v44 = vld [vmem:[#allocation2 + $0x84] sm:$0xf] }
 0x3dc   : > { %v7131_v12 = vcombine.low %v10269_v15, %v10280_v7  ;;  %v3756_v3 = vrot.slane %v3754_v8, 4  ;;  %v3762_v27 = vrot.slane %v3760_v47, 5  ;;  %v4390_v14 = vrot.slane %v10259_v63, 5  ;;  %v10339_v8 = vld [vmem:[#allocation2 + $0xa4] sm:$0x1] }
 0x3dd   : > { %7811 = vmatmul.mubr.msk.bf16.gmra.mxu0 %vm408_vm0, %v7127_v21  ;;  %v4393_v20 = vrot.slane %v10261_v45, 5  ;;  %v3765_v10 = vshrl.u32 %v3548_v22, 16  ;;  %v3748_v30 = vrot.slane %v3747_v41, 4  ;;  %v3768_v33 = vshll.u32 %v3548_v22, 16  ;;  %v4266_v22 = vld [vmem:[#allocation2 + $0x9c] sm:$0xe] }
 0x3de   : > { %7814 = vmatprep.mubr.msk.bf16.mxu0 %vm408_vm0, %v7128_v37  ;;  %v3757_v2 = vor.u32 %v3756_v3, %v3752_v28  ;;  %v3774_v51 = vshll.u32 %v10185_v54, 16  ;;  %v10300_v13 = vsel %vm9748_vm3, %v7114_v11, %v4390_v14  ;;  %v4392_v9 = vrot.slane %v4390_v14, 4 }
 0x3df   : > { %v3767_v21 = vrot.slane %v3765_v10, 4  ;;  %v3778_v50 = vshrl.u32 %v10185_v54, 16  ;;  %v3753_v48 = vsel %vm8751_vm8, %v3748_v30, %v3752_v28  ;;  %v3770_v52 = vrot.slane %v3768_v33, 5  ;;  %v10337_v28 = vld [vmem:[#allocation2 + $0xa0] sm:$0xf] }
 0x3e0   : > { %v3758_v37 = vrot.slane %v3757_v2, 4  ;;  %v3776_v5 = vrot.slane %v3774_v51, 5  ;;  %v10318_v54 = vsel %vm9748_vm3, %v4392_v9, %v4393_v20  ;;  %v3784_v60 = vshll.u32 %v10199_v1, 16 }
 0x3e1   : > { %v3780_v57 = vrot.slane %v3778_v50, 4  ;;  %v7115_v39 = vrot.slane %v4265_v42, 9  ;;  %v3771_v49 = vor.u32 %v3770_v52, %v3767_v21  ;;  %v4397_v17 = vrot.slane %v10303_v4, 5  ;;  %v4267_v50 = vld [vmem:[#allocation2 + $0xa8] sm:$0xe] }
 0x3e2   : > { %7769 = vmatmul.mubr.msk.bf16.vlgmr.msra.gmra.mxu1 %vm408_vm0, %v10108_v32  ;;  %v3763_v31 = vsel %vm8751_vm8, %v3758_v37, %v3762_v27  ;;  %v7132_v32 = vcombine.low %v10300_v13, %v10318_v54  ;;  %v3786_v1 = vrot.slane %v3784_v60, 5  ;;  %v4400_v59 = vrot.slane %v10312_v46, 5 }
 0x3e3   : > { %7835 = vmatpush3.bf16.msra.mxu1 %v9877_v18  ;;  %7772 = vmatprep.mubr.msk.bf16.mxu1 %vm408_vm0, %v10143_v16  ;;  %v10329_v62 = vcombine.low %v3753_v48, %v3763_v31  ;;  %v3781_v58 = vor.u32 %v3780_v57, %v3776_v5  ;;  %v3772_v18 = vrot.slane %v3771_v49, 4  ;;  %v10335_v16 = vsel %vm9748_vm3, %v7115_v39, %v4397_v17 }
 0x3e4   : > { %7902 = vmatprep.subr.bf16.mxu1 %v10308_v43  ;;  %v4399_v23 = vrot.slane %v4397_v17, 4  ;;  %v3789_v56 = vshrl.u32 %v3551_v6, 16  ;;  %v3792_v11 = vshll.u32 %v3551_v6, 16  ;;  %v3798_v41 = vshll.u32 %v10225_v0, 16  ;;  %v3557_v17 = vld [vmem:[#allocation2 + $0x90] sm:$0xf] }
 0x3e5   : > { %7815 = vmatmul.mubr.msk.bf16.gmra.mxu0 %vm408_vm0, %v7129_v29  ;;  %v3782_v47 = vrot.slane %v3781_v58, 4  ;;  %v3802_v3 = vshrl.u32 %v10225_v0, 16  ;;  %v3777_v42 = vsel %vm8751_vm8, %v3772_v18, %v3776_v5  ;;  %v3808_v35 = vshll.u32 %v10227_v38, 16  ;;  %v10374_v5 = vld [vmem:[#allocation2 + $0xac] sm:$0xf] }
 0x3e6   : > { %7818 = vmatprep.mubr.msk.bf16.mxu0 %vm408_vm0, %v7130_v61  ;;  %v10355_v27 = vsel %vm9748_vm3, %v4399_v23, %v4400_v59  ;;  %v3791_v55 = vrot.slane %v3789_v56, 4  ;;  %v3794_v14 = vrot.slane %v3792_v11, 5  ;;  %v3800_v53 = vrot.slane %v3798_v41, 5 }
 0x3e7   : > { %v3787_v29 = vsel %vm8751_vm8, %v3782_v47, %v3786_v1  ;;  %v7133_v0 = vcombine.low %v10335_v16, %v10355_v27  ;;  %v3804_v61 = vrot.slane %v3802_v3, 4  ;;  %v3810_v20 = vrot.slane %v3808_v35, 5  ;;  %v10394_v47 = vld [vmem:[#allocation2 + $0xb8] sm:$0xf] }
 0x3e8   : > { %v10362_v36 = vcombine.low %v3777_v42, %v3787_v29  ;;  %v7116_v10 = vrot.slane %v4266_v22, 9  ;;  %v3795_v30 = vor.u32 %v3794_v14, %v3791_v55  ;;  %v4404_v2 = vrot.slane %v10337_v28, 5  ;;  %v4268_v42 = vld [vmem:[#allocation2 + $0xb4] sm:$0xe]  ;;  %v10408_v14 = vld [vmem:[#allocation2 + $0xbc] sm:$0x1] }
 0x3e9   : > { %v4407_v38 = vrot.slane %v10339_v8, 5  ;;  %v3813_v33 = vshrl.u32 %v3554_v44, 16  ;;  %v3805_v51 = vor.u32 %v3804_v61, %v3800_v53  ;;  %v3816_v13 = vshll.u32 %v3554_v44, 16 }
 0x3ea   : > { %7773 = vmatmul.mubr.msk.bf16.gmra.mxu1 %vm408_vm0, %v10179_v40  ;;  %v3822_v9 = vshll.u32 %v10259_v63, 16  ;;  %v3826_v21 = vshrl.u32 %v10259_v63, 16  ;;  %v3796_v48 = vrot.slane %v3795_v30, 4  ;;  %v4405_v40 = vsel %vm9748_vm3, %v7116_v10, %v4404_v2 }
 0x3eb   : > { %7776 = vmatprep.mubr.msk.bf16.mxu1 %vm408_vm0, %v10217_v25  ;;  %v4406_v37 = vrot.slane %v4404_v2, 4  ;;  %v3815_v52 = vrot.slane %v3813_v33, 4  ;;  %v3806_v54 = vrot.slane %v3805_v51, 4  ;;  %v3818_v57 = vrot.slane %v3816_v13, 5  ;;  %v10376_v25 = vld [vmem:[#allocation2 + $0xb0] sm:$0x1] }
 0x3ec   : > { %v3824_v60 = vrot.slane %v3822_v9, 5  ;;  %v3828_v39 = vrot.slane %v3826_v21, 4  ;;  %v3801_v63 = vsel %vm8751_vm8, %v3796_v48, %v3800_v53  ;;  %v3832_v31 = vshll.u32 %v10261_v45, 16  ;;  %v3560_v53 = vld [vmem:[#allocation2 + $0x9c] sm:$0xf] }
 0x3ed   : > { %7819 = vmatmul.mubr.msk.bf16.gmra.mxu0 %vm408_vm0, %v7131_v12  ;;  %v4408_v6 = vsel %vm9748_vm3, %v4406_v37, %v4407_v38  ;;  %v7117_v49 = vrot.slane %v4267_v50, 9  ;;  %v3811_v58 = vsel %vm8751_vm8, %v3806_v54, %v3810_v20  ;;  %v3819_v59 = vor.u32 %v3818_v57, %v3815_v52  ;;  %v4269_v37 = vld [vmem:[#allocation2 + $0xc0] sm:$0xe]  ;;  %v10427_v54 = vld [vmem:[#allocation2 + $0xc8] sm:$0x1] }
 0x3ee   : > { %7822 = vmatprep.mubr.msk.bf16.mxu0 %vm408_vm0, %v7132_v32  ;;  %v7134_v1 = vcombine.low %v4405_v40, %v4408_v6  ;;  %v3829_v15 = vor.u32 %v3828_v39, %v3824_v60  ;;  %v10390_v7 = vcombine.low %v3801_v63, %v3811_v58  ;;  %v3834_v12 = vrot.slane %v3832_v31, 5  ;;  %v3563_v6 = vld [vmem:[#allocation2 + $0xa8] sm:$0xf] }
 0x3ef   : > { %v4411_v22 = vrot.slane %v10374_v5, 5  ;;  %v4414_v18 = vrot.slane %v10376_v25, 5  ;;  %v3820_v23 = vrot.slane %v3819_v59, 4  ;;  %v3837_v45 = vshrl.u32 %v3557_v17, 16 }
 0x3f0   : > { %v3830_v56 = vrot.slane %v3829_v15, 4  ;;  %v3840_v44 = vshll.u32 %v3557_v17, 16  ;;  %v3846_v41 = vshll.u32 %v10303_v4, 16  ;;  %v3850_v3 = vshrl.u32 %v10303_v4, 16 }
 0x3f1   : > { %v4412_v32 = vsel %vm9748_vm3, %v7117_v49, %v4411_v22  ;;  %v4413_v11 = vrot.slane %v4411_v22, 4  ;;  %v3825_v55 = vsel %vm8751_vm8, %v3820_v23, %v3824_v60  ;;  %v3839_v29 = vrot.slane %v3837_v45, 4 }
 0x3f2   : > { %7777 = vmatmul.mubr.msk.bf16.gmra.mxu1 %vm408_vm0, %v10243_v26  ;;  %v3835_v35 = vsel %vm8751_vm8, %v3830_v56, %v3834_v12  ;;  %v3842_v26 = vrot.slane %v3840_v44, 5  ;;  %v3848_v20 = vrot.slane %v3846_v41, 5  ;;  %v3852_v10 = vrot.slane %v3850_v3, 4  ;;  %v5091_v44 = vld [vmem:[#allocation2 + $0x18] sm:$0xf] }
 0x3f3   : > { %7780 = vmatprep.mubr.msk.bf16.mxu1 %vm408_vm0, %v10283_v24  ;;  %v10410_v61 = vcombine.low %v3825_v55, %v3835_v35  ;;  %v4415_v4 = vsel %vm9748_vm3, %v4413_v11, %v4414_v18  ;;  %v3856_v2 = vshll.u32 %v10312_v46, 16  ;;  %v7118_v38 = vrot.slane %v4268_v42, 9  ;;  %v10423_v46 = vld [vmem:[#allocation2 + $0xc4] sm:$0xf] }
 0x3f4   : > { %v7135_v30 = vcombine.low %v4412_v32, %v4415_v4  ;;  %v3843_v24 = vor.u32 %v3842_v26, %v3839_v29  ;;  %v3853_v33 = vor.u32 %v3852_v10, %v3848_v20  ;;  %v4418_v51 = vrot.slane %v10394_v47, 5  ;;  %v10456_v4 = vld [vmem:[#allocation2 + $0x1c] sm:$0xf] }
 0x3f5   : > { %7823 = vmatmul.mubr.msk.bf16.gmra.mxu0 %vm408_vm0, %v7133_v0  ;;  %v4421_v13 = vrot.slane %v10408_v14, 5  ;;  %v3861_v9 = vshrl.u32 %v3560_v53, 16  ;;  %v3858_v50 = vrot.slane %v3856_v2, 5  ;;  %v3864_v48 = vshll.u32 %v3560_v53, 16 }
 0x3f6   : > { %7826 = vmatprep.mubr.msk.bf16.mxu0 %vm408_vm0, %v7134_v1  ;;  %v3844_v21 = vrot.slane %v3843_v24, 4  ;;  %v3870_v40 = vshll.u32 %v10337_v28, 16  ;;  %v3854_v52 = vrot.slane %v3853_v33, 4  ;;  %v4419_v16 = vsel %vm9748_vm3, %v7118_v38, %v4418_v51  ;;  %v10460_v24 = vld [vmem:[#allocation2 + $0x20] sm:$0x1] }
 0x3f7   : > { %v4420_v27 = vrot.slane %v4418_v51, 4  ;;  %v3863_v0 = vrot.slane %v3861_v9, 4  ;;  %v3866_v60 = vrot.slane %v3864_v48, 5  ;;  %v3874_v63 = vshrl.u32 %v10337_v28, 16  ;;  %v3566_v38 = vld [vmem:[#allocation2 + $0xb4] sm:$0xf] }
 0x3f8   : > { %v3849_v57 = vsel %vm8751_vm8, %v3844_v21, %v3848_v20  ;;  %v3872_v39 = vrot.slane %v3870_v40, 5  ;;  %v3859_v31 = vsel %vm8751_vm8, %v3854_v52, %v3858_v50  ;;  %v3880_v17 = vshll.u32 %v10339_v8, 16 }
 0x3f9   : > { %v4422_v49 = vsel %vm9748_vm3, %v4420_v27, %v4421_v13  ;;  %v7119_v58 = vrot.slane %v4269_v37, 9  ;;  %v10441_v1 = vcombine.low %v3849_v57, %v3859_v31  ;;  %v3867_v28 = vor.u32 %v3866_v60, %v3863_v0  ;;  %v5094_v60 = vld [vmem:[#allocation2 + $0x24] sm:$0xf] }
 0x3fa   : > { %7781 = vmatmul.mubr.msk.bf16.gmra.mxu1 %vm408_vm0, %v10329_v62  ;;  %v7136_v59 = vcombine.low %v4419_v16, %v4422_v49  ;;  %v3876_v15 = vrot.slane %v3874_v63, 4  ;;  %v3882_v12 = vrot.slane %v3880_v17, 5  ;;  %v4425_v62 = vrot.slane %v10423_v46, 5 }
 0x3fb   : > { %7784 = vmatprep.mubr.msk.bf16.mxu1 %vm408_vm0, %v10362_v36  ;;  %v4428_v22 = vrot.slane %v10427_v54, 5  ;;  %v3885_v18 = vshrl.u32 %v3563_v6, 16  ;;  %v3868_v23 = vrot.slane %v3867_v28, 4  ;;  %v3888_v45 = vshll.u32 %v3563_v6, 16 }
 0x3fc   : > { %v3877_v56 = vor.u32 %v3876_v15, %v3872_v39  ;;  %v3894_v8 = vshll.u32 %v10374_v5, 16  ;;  %v4426_v36 = vsel %vm9748_vm3, %v7119_v58, %v4425_v62  ;;  %v4427_v32 = vrot.slane %v4425_v62, 4 }
 0x3fd   : > { %7827 = vmatmul.mubr.msk.bf16.gmra.mxu0 %vm408_vm0, %v7135_v30  ;;  %v3887_v11 = vrot.slane %v3885_v18, 4  ;;  %v3898_v41 = vshrl.u32 %v10374_v5, 16  ;;  %v3873_v3 = vsel %vm8751_vm8, %v3868_v23, %v3872_v39  ;;  %v3890_v55 = vrot.slane %v3888_v45, 5 }
 0x3fe   : > { %7830 = vmatprep.mubr.msk.bf16.mxu0 %vm408_vm0, %v7136_v59  ;;  %v3878_v42 = vrot.slane %v3877_v56, 4  ;;  %v3896_v35 = vrot.slane %v3894_v8, 5  ;;  %v4429_v29 = vsel %vm9748_vm3, %v4427_v32, %v4428_v22  ;;  %v3904_v53 = vshll.u32 %v10376_v25, 16  ;;  %v10481_v56 = vld [vmem:[#allocation2 + $0x2c] sm:$0x1] }
 0x3ff   : > { %v3900_v26 = vrot.slane %v3898_v41, 4  ;;  %v5140_v20 = vshrl.u32 %v5091_v44, 16  ;;  %v7137_v10 = vcombine.low %v4426_v36, %v4429_v29  ;;  %v3891_v30 = vor.u32 %v3890_v55, %v3887_v11  ;;  %v3569_v32 = vld [vmem:[#allocation2 + $0xc0] sm:$0xf] }
 0x400   : > { %v3883_v5 = vsel %vm8751_vm8, %v3878_v42, %v3882_v12  ;;  %v5143_v2 = vshll.u32 %v5091_v44, 16  ;;  %v3906_v13 = vrot.slane %v3904_v53, 5  ;;  %v5149_v50 = vshll.u32 %v10456_v4, 16  ;;  %v10477_v12 = vld [vmem:[#allocation2 + $0x28] sm:$0xf] }
 0x401   : > { %v7083_v33 = vcombine.low %v3873_v3, %v3883_v5  ;;  %v3901_v51 = vor.u32 %v3900_v26, %v3896_v35  ;;  %v5142_v9 = vrot.slane %v5140_v20, 4  ;;  %v3892_v25 = vrot.slane %v3891_v30, 4 }
 0x402   : > { %7785 = vmatmul.mubr.msk.bf16.gmra.mxu1 %vm408_vm0, %v10390_v7  ;;  %v5145_v21 = vrot.slane %v5143_v2, 5  ;;  %v5153_v48 = vshrl.u32 %v10456_v4, 16  ;;  %v5159_v37 = vshll.u32 %v10460_v24, 16  ;;  %v3909_v52 = vshrl.u32 %v3566_v38, 16  ;;  %v10488_v11 = vpop.f32.mrf.mxu0 }
 0x403   : > { %7788 = vmatprep.mubr.msk.bf16.mxu1 %vm408_vm0, %v10410_v61  ;;  %v3902_v40 = vrot.slane %v3901_v51, 4  ;;  %v3912_v16 = vshll.u32 %v3566_v38, 16  ;;  %v3897_v7 = vsel %vm8751_vm8, %v3892_v25, %v3896_v35  ;;  %v5151_v0 = vrot.slane %v5149_v50, 5 }
 0x404   : > { %v5146_v27 = vor.u32 %v5145_v21, %v5142_v9  ;;  %v5155_v57 = vrot.slane %v5153_v48, 4  ;;  %v5161_v39 = vrot.slane %v5159_v37, 5  ;;  %v3911_v63 = vrot.slane %v3909_v52, 4  ;;  %v5097_v21 = vld [vmem:[#allocation2 + $0x30] sm:$0xf] }
 0x405   : > { %7831 = vmatmul.mubr.msk.bf16.gmra.mxu0 %vm408_vm0, %v7137_v10  ;;  %v3907_v61 = vsel %vm8751_vm8, %v3902_v40, %v3906_v13  ;;  %v3914_v6 = vrot.slane %v3912_v16, 5  ;;  %v3918_v58 = vshll.u32 %v10394_v47, 16  ;;  %v3922_v28 = vshrl.u32 %v10394_v47, 16  ;;  %v10495_v10 = vpop.f32.mrf.mxu0  ;;  %v10505_v16 = vld [vmem:[#allocation2 + $0x34] sm:$0xf] }
 0x406   : > { %v7084_v31 = vcombine.low %v3897_v7, %v3907_v61  ;;  %v5147_v49 = vrot.slane %v5146_v27, 4  ;;  %v5156_v17 = vor.u32 %v5155_v57, %v5151_v0  ;;  %v3928_v15 = vshll.u32 %v10408_v14, 16 }
 0x407   : > { %v3915_v59 = vor.u32 %v3914_v6, %v3911_v63  ;;  %v5164_v62 = vshrl.u32 %v5094_v60, 16  ;;  %v3920_v23 = vrot.slane %v3918_v58, 5  ;;  %v5167_v45 = vshll.u32 %v5094_v60, 16  ;;  %v10500_v50 = vpop.f32.mrf.mxu0 }
 0x408   : > { %v5152_v22 = vsel %vm8751_vm8, %v5147_v49, %v5151_v0  ;;  %v5157_v18 = vrot.slane %v5156_v17, 4  ;;  %v3924_v44 = vrot.slane %v3922_v28, 4  ;;  %v3930_v36 = vrot.slane %v3928_v15, 5  ;;  %v5100_v28 = vld [vmem:[#allocation2 + $0x3c] sm:$0xf] }
 0x409   : > { %v3916_v8 = vrot.slane %v3915_v59, 4  ;;  %v5166_v47 = vrot.slane %v5164_v62, 4  ;;  %v5169_v41 = vrot.slane %v5167_v45, 5  ;;  %v5173_v3 = vshll.u32 %v10477_v12, 16  ;;  %v10509_v60 = vpop.f32.mrf.mxu0 }
 0x40a   : > { %7789 = vmatmul.mubr.msk.bf16.gmra.mxu1 %vm408_vm0, %v10441_v1  ;;  %v5162_v14 = vsel %vm8751_vm8, %v5157_v18, %v5161_v39  ;;  %v5177_v42 = vshrl.u32 %v10477_v12, 16  ;;  %v3925_v35 = vor.u32 %v3924_v44, %v3920_v23  ;;  %v5183_v29 = vshll.u32 %v10481_v56, 16  ;;  %v10512_v39 = vld [vmem:[#allocation2 + $0x38] sm:$0x1]  ;;  %v10521_v18 = vld [vmem:[#allocation2 + $0x40] sm:$0xf] }
 0x40b   : > { %7792 = vmatprep.mubr.msk.bf16.mxu1 %vm408_vm0, %v7083_v33  ;;  %v7192_v55 = vcombine.low %v5152_v22, %v5162_v14  ;;  %v3921_v1 = vsel %vm8751_vm8, %v3916_v8, %v3920_v23  ;;  %v5170_v26 = vor.u32 %v5169_v41, %v5166_v47  ;;  %v5175_v53 = vrot.slane %v5173_v3, 5  ;;  %v10529_v14 = vld [vmem:[#allocation2 + $0x44] sm:$0x1] }
 0x40c   : > { %v5179_v20 = vrot.slane %v5177_v42, 4  ;;  %v3933_v5 = vshrl.u32 %v3569_v32, 16  ;;  %v3926_v30 = vrot.slane %v3925_v35, 4  ;;  %v5185_v2 = vrot.slane %v5183_v29, 5  ;;  %v5103_v29 = vld [vmem:[#allocation2 + $0x48] sm:$0xf] }
 0x40d   : > { %7870 = vmatprep.mubr.msk.bf16.mxu0 %vm408_vm0, %v7192_v55  ;;  %v3936_v38 = vshll.u32 %v3569_v32, 16  ;;  %v3942_v33 = vshll.u32 %v10423_v46, 16  ;;  %v5171_v51 = vrot.slane %v5170_v26, 4  ;;  %v3946_v25 = vshrl.u32 %v10423_v46, 16 }
 0x40e   : > { %v5180_v13 = vor.u32 %v5179_v20, %v5175_v53  ;;  %v3935_v9 = vrot.slane %v3933_v5, 4  ;;  %v3931_v48 = vsel %vm8751_vm8, %v3926_v30, %v3930_v36  ;;  %v3952_v52 = vshll.u32 %v10427_v54, 16 }
 0x40f   : > { %v3938_v40 = vrot.slane %v3936_v38, 5  ;;  %v3944_v37 = vrot.slane %v3942_v33, 5  ;;  %v7085_v7 = vcombine.low %v3921_v1, %v3931_v48  ;;  %v5176_v27 = vsel %vm8751_vm8, %v5171_v51, %v5175_v53  ;;  %v10519_v59 = vpop.f32.mrf.mxu0  ;;  %v8004_v33 = vld [vmem:[#allocation2 + $0x18] sm:$0xff]  }
 0x410   : > { %v5181_v0 = vrot.slane %v5180_v13, 4  ;;  %v3948_v57 = vrot.slane %v3946_v25, 4  ;;  %v3954_v61 = vrot.slane %v3952_v52, 5  ;;  %v5188_v63 = vshrl.u32 %v5097_v21, 16 }
 0x411   : > { %v3939_v46 = vor.u32 %v3938_v40, %v3935_v9  ;;  %v5191_v6 = vshll.u32 %v5097_v21, 16  ;;  %v5197_v17 = vshll.u32 %v10505_v16, 16  ;;  %v5201_v58 = vshrl.u32 %v10505_v16, 16  ;;  %v10524_v36 = vpop.f32.mrf.mxu0  ;;  %v10545_v40 = vld [vmem:[#allocation2 + $0x50] sm:$0x1] }
 0x412   : > { %7793 = vmatmul.mubr.msk.bf16.gmra.mxu1 %vm408_vm0, %v7084_v31  ;;  %v5186_v54 = vsel %vm8751_vm8, %v5181_v0, %v5185_v2  ;;  %v3949_v49 = vor.u32 %v3948_v57, %v3944_v37  ;;  %v5190_v62 = vrot.slane %v5188_v63, 4  ;;  %v5207_v44 = vshll.u32 %v10512_v39, 16  ;;  %v10536_v2 = vld [vmem:[#allocation2 + $0x4c] sm:$0xf]  ;;  %v5106_v63 = vld [vmem:[#allocation2 + $0x54] sm:$0xf] }
 0x413   : > { %7796 = vmatprep.mubr.msk.bf16.mxu1 %vm408_vm0, %v7085_v7  ;;  %v7193_v31 = vcombine.low %v5176_v27, %v5186_v54  ;;  %v3940_v15 = vrot.slane %v3939_v46, 4  ;;  %v5193_v22 = vrot.slane %v5191_v6, 5  ;;  %v5199_v45 = vrot.slane %v5197_v17, 5  ;;  %v10534_v26 = vpop.f32.mrf.mxu0 }
 0x414   : > { %v3950_v23 = vrot.slane %v3949_v49, 4  ;;  %v5203_v8 = vrot.slane %v5201_v58, 4  ;;  %v5212_v41 = vshrl.u32 %v5100_v28, 16  ;;  %v5215_v3 = vshll.u32 %v5100_v28, 16 }
 0x415   : > { %7871 = vmatmul.mubr.msk.bf16.vlgmr.msra.gmra.mxu0 %vm408_vm0, %v7193_v31  ;;  %v3945_v47 = vsel %vm8751_vm8, %v3940_v15, %v3944_v37  ;;  %v5194_v32 = vor.u32 %v5193_v22, %v5190_v62  ;;  %v5209_v1 = vrot.slane %v5207_v44, 5  ;;  %v5221_v35 = vshll.u32 %v10521_v18, 16  ;;  %v10540_v25 = vpop.f32.mrf.mxu0  ;;  %v10557_v22 = vld [vmem:[#allocation2 + $0x58] sm:$0xf] }
 0x416   : > { %v3955_v42 = vsel %vm8751_vm8, %v3950_v23, %v3954_v61  ;;  %v5204_v55 = vor.u32 %v5203_v8, %v5199_v45  ;;  %v5214_v5 = vrot.slane %v5212_v41, 4  ;;  %v5217_v30 = vrot.slane %v5215_v3, 5 }
 0x417   : > { %v7086_v53 = vcombine.low %v3945_v47, %v3955_v42  ;;  %v5195_v20 = vrot.slane %v5194_v32, 4  ;;  %v5223_v51 = vrot.slane %v5221_v35, 5  ;;  %v5225_v13 = vshrl.u32 %v10521_v18, 16  ;;  %v8006_v32 = vld [vmem:[#allocation2 + $0x24] sm:$0xff]  }
 0x418   : > { %v5205_v38 = vrot.slane %v5204_v55, 4  ;;  %v5231_v9 = vshll.u32 %v10529_v14, 16  ;;  %v5218_v48 = vor.u32 %v5217_v30, %v5214_v5  ;;  %v5236_v37 = vshrl.u32 %v5103_v29, 16  ;;  %v10551_v61 = vpop.f32.mrf.mxu0 }
 0x419   : > { %v5200_v21 = vsel %vm8751_vm8, %v5195_v20, %v5199_v45  ;;  %v5239_v52 = vshll.u32 %v5103_v29, 16  ;;  %v5227_v27 = vrot.slane %v5225_v13, 4  ;;  %v5245_v46 = vshll.u32 %v10536_v2, 16  ;;  %v8007_v29 = vld [vmem:[#allocation2 + $0x30] sm:$0xff]   ;;  %v10573_v20 = vld [vmem:[#allocation2 + $0x5c] sm:$0x1] }
 0x41a   : > { %7797 = vmatmul.mubr.msk.bf16.gmra.mxu1 %vm408_vm0, %v7086_v53  ;;  %v5210_v7 = vsel %vm8751_vm8, %v5205_v38, %v5209_v1  ;;  %v5233_v0 = vrot.slane %v5231_v9, 5  ;;  %v7634_v57 = vpop.f32.mrf.mxu1  ;;  %v5219_v54 = vrot.slane %v5218_v48, 4  ;;  %v5238_v17 = vrot.slane %v5236_v37, 4  ;;  %v10559_v23 = vpop.f32.mrf.mxu0  ;;  %v5109_v9 = vld [vmem:[#allocation2 + $0x60] sm:$0xf] }
 0x41b   : > { %7836 = vmatprep.mubr.msk.bf16.mxu1 %vm408_vm0, %v8004_v33  ;;  %v7194_v6 = vcombine.low %v5200_v21, %v5210_v7  ;;  %v10554_v49 = vadd.f32 %v10488_v11, %v7634_v57  ;;  %v5228_v58 = vor.u32 %v5227_v27, %v5223_v51  ;;  %v5241_v28 = vrot.slane %v5239_v52, 5  ;;  %v10578_v21 = vld [vmem:[#allocation2 + $0x64] sm:$0xf] }
 0x41c   : > { %v5247_v31 = vrot.slane %v5245_v46, 5  ;;  %v5249_v15 = vshrl.u32 %v10536_v2, 16  ;;  %v2279_v62 = vpop.f32.mrf.mxu1  ;;  %v5224_v45 = vsel %vm8751_vm8, %v5219_v54, %v5223_v51  ;;  %v5255_v8 = vshll.u32 %v10545_v40, 16  ;;  %v10568_v1 = vpop.f32.mrf.mxu0  ;;  %v10595_v54 = vld [vmem:[#allocation2 + $0x68] sm:$0x1] }
 0x41d   : > { %7874 = vmatprep.mubr.msk.bf16.mxu0 %vm408_vm0, %v7194_v6  ;;  %v10566_v11 = vadd.f32 %v10495_v10, %v2279_v62  ;;  %v5260_v44 = vshrl.u32 %v5106_v63, 16  ;;  %v5229_v47 = vrot.slane %v5228_v58, 4  ;;  %v5242_v41 = vor.u32 %v5241_v28, %v5238_v17 }
 0x41e   : > { %v5251_v3 = vrot.slane %v5249_v15, 4  ;;  %v7635_v42 = vpop.f32.mrf.mxu1  ;;  %v5263_v55 = vshll.u32 %v5106_v63, 16  ;;  %v5257_v35 = vrot.slane %v5255_v8, 5  ;;  %v5269_v10 = vshll.u32 %v10557_v22, 16  ;;  %v10580_v48 = vpop.f32.mrf.mxu0 }
 0x41f   : > { %v10571_v53 = vadd.f32 %v10500_v50, %v7635_v42  ;;  %v5262_v5 = vrot.slane %v5260_v44, 4  ;;  %v5234_v30 = vsel %vm8751_vm8, %v5229_v47, %v5233_v0  ;;  %v5243_v38 = vrot.slane %v5242_v41, 4 }
 0x420   : > { %v5252_v33 = vor.u32 %v5251_v3, %v5247_v31  ;;  %v2282_v51 = vpop.f32.mrf.mxu1  ;;  %v5265_v13 = vrot.slane %v5263_v55, 5  ;;  %v7195_v37 = vcombine.low %v5224_v45, %v5234_v30  ;;  %v5271_v52 = vrot.slane %v5269_v10, 5  ;;  %v5112_v45 = vld [vmem:[#allocation2 + $0x6c] sm:$0xf]  ;;  %v8008_v30 = vld [vmem:[#allocation2 + $0x3c] sm:$0xff]  }
 0x421   : > { %v10584_v50 = vadd.f32 %v10509_v60, %v2282_v51  ;;  %v5273_v7 = vshrl.u32 %v10557_v22, 16  ;;  %v5248_v27 = vsel %vm8751_vm8, %v5243_v38, %v5247_v31  ;;  %v5279_v46 = vshll.u32 %v10573_v20, 16  ;;  %v10592_v63 = vpop.f32.mrf.mxu0 }
 0x422   : > { %7837 = vmatmul.mubr.msk.bf16.vlgmr.msra.gmra.mxu1 %vm408_vm0, %v8006_v32  ;;  %v5253_v0 = vrot.slane %v5252_v33, 4  ;;  %v5266_v57 = vor.u32 %v5265_v13, %v5262_v5  ;;  %7875 = vmatmul.mubr.msk.bf16.gmra.mxu0 %vm408_vm0, %v7195_v37  ;;  %v5284_v17 = vshrl.u32 %v5109_v9, 16  ;;  %v5287_v58 = vshll.u32 %v5109_v9, 16  ;;  %v10609_v5 = vld [vmem:[#allocation2 + $0x70] sm:$0xf] }
 0x423   : > { %7903 = vmatpush3.bf16.msra.mxu1 %v10308_v43  ;;  %7840 = vmatprep.mubr.msk.bf16.mxu1 %vm408_vm0, %v8007_v29  ;;  %v5275_v60 = vrot.slane %v5273_v7, 4  ;;  %v7638_v6 = vpop.f32.mrf.mxu1  ;;  %v5293_v28 = vshll.u32 %v10578_v21, 16  ;;  %v5281_v15 = vrot.slane %v5279_v46, 5  ;;  %v10603_v8 = vpop.f32.mrf.mxu0  ;;  %v5297_v29 = vshrl.u32 %v10578_v21, 16 }
 0x424   : > { %v5258_v43 = vsel %vm8751_vm8, %v5253_v0, %v5257_v35  ;;  %v5267_v31 = vrot.slane %v5266_v57, 4  ;;  %v10601_v62 = vadd.f32 %v10519_v59, %v7638_v6  ;;  %v5286_v32 = vrot.slane %v5284_v17, 4 }
 0x425   : > { %v7196_v44 = vcombine.low %v5248_v27, %v5258_v43  ;;  %v5276_v47 = vor.u32 %v5275_v60, %v5271_v52  ;;  %v5289_v41 = vrot.slane %v5287_v58, 5  ;;  %v2295_v3 = vpop.f32.mrf.mxu1  ;;  %v5295_v55 = vrot.slane %v5293_v28, 5  ;;  %v10611_v59 = vpop.f32.mrf.mxu0  ;;  %v10620_v27 = vld [vmem:[#allocation2 + $0x74] sm:$0x1]  ;;  %v5115_v58 = vld [vmem:[#allocation2 + $0x78] sm:$0xf] }
 0x426   : > { %12139 = vst [vmem:[#allocation43_spill] sm:$0xff] %v10601_v62  ;;  %v5272_v42 = vsel %vm8751_vm8, %v5267_v31, %v5271_v52  ;;  %v5303_v35 = vshll.u32 %v10595_v54, 16  ;;  %v10615_v33 = vadd.f32 %v10524_v36, %v2295_v3  ;;  %v5308_v13 = vshrl.u32 %v5112_v45, 16  ;;  %v8009_v52 = vld [vmem:[#allocation2 + $0x48] sm:$0xff]  }
 0x427   : > { %7878 = vmatprep.mubr.msk.bf16.mxu0 %vm408_vm0, %v7196_v44  ;;  %v5277_v10 = vrot.slane %v5276_v47, 4  ;;  %v5290_v38 = vor.u32 %v5289_v41, %v5286_v32  ;;  %v7639_v51 = vpop.f32.mrf.mxu1  ;;  %v5299_v9 = vrot.slane %v5297_v29, 4  ;;  %v5311_v0 = vshll.u32 %v5112_v45, 16  ;;  %v10622_v57 = vpop.f32.mrf.mxu0  ;;  %v10632_v45 = vld [vmem:[#allocation2 + $0x7c] sm:$0xf] }
 0x428   : > { %12140 = vst [vmem:[#allocation44_spill] sm:$0xff] %v10615_v33  ;;  %v5305_v37 = vrot.slane %v5303_v35, 5  ;;  %v10618_v7 = vadd.f32 %v10534_v26, %v7639_v51  ;;  %v5310_v6 = vrot.slane %v5308_v13, 4  ;;  %v5317_v17 = vshll.u32 %v10609_v5, 16  ;;  %v10643_v51 = vld [vmem:[#allocation2 + $0x80] sm:$0x1] }
 0x429   : > { %v5282_v46 = vsel %vm8751_vm8, %v5277_v10, %v5281_v15  ;;  %v5291_v36 = vrot.slane %v5290_v38, 4  ;;  %v2298_v60 = vpop.f32.mrf.mxu1  ;;  %v5300_v43 = vor.u32 %v5299_v9, %v5295_v55  ;;  %v5313_v31 = vrot.slane %v5311_v0, 5  ;;  %v10719_v33 = vld [vmem:[#allocation2 + $0xa4] sm:$0x1] }
 0x42a   : > { %12141 = vst [vmem:[#allocation45_spill] sm:$0xff] %v10618_v7  ;;  %7841 = vmatmul.mubr.msk.bf16.gmra.mxu1 %vm408_vm0, %v8008_v30  ;;  %v7197_v28 = vcombine.low %v5272_v42, %v5282_v46  ;;  %v10630_v26 = vadd.f32 %v10540_v25, %v2298_v60  ;;  %v10634_v44 = vpop.f32.mrf.mxu0  ;;  %v5319_v47 = vrot.slane %v5317_v17, 5  ;;  %v5321_v32 = vshrl.u32 %v10609_v5, 16  ;;  %12153 = vst [vmem:[#allocation52_spill] sm:$0xff] %v10719_v33 }
 0x42b   : > { %7844 = vmatprep.mubr.msk.bf16.mxu1 %vm408_vm0, %v8009_v52  ;;  %v5296_v15 = vsel %vm8751_vm8, %v5291_v36, %v5295_v55  ;;  %v5327_v41 = vshll.u32 %v10620_v27, 16  ;;  %v5301_v3 = vrot.slane %v5300_v43, 4  ;;  %v5314_v42 = vor.u32 %v5313_v31, %v5310_v6  ;;  %v5118_v36 = vld [vmem:[#allocation2 + $0x84] sm:$0xf] }
 0x42c   : > { %12142 = vst [vmem:[#allocation46_spill] sm:$0xff] %v10630_v26  ;;  %7879 = vmatmul.mubr.msk.bf16.gmra.mxu0 %vm408_vm0, %v7197_v28  ;;  %v5332_v29 = vshrl.u32 %v5115_v58, 16  ;;  %v5335_v25 = vshll.u32 %v5115_v58, 16  ;;  %v10641_v35 = vpop.f32.mrf.mxu0  ;;  %v5323_v10 = vrot.slane %v5321_v32, 4  ;;  %v5341_v55 = vshll.u32 %v10632_v45, 16  ;;  %v8010_v58 = vld [vmem:[#allocation2 + $0x54] sm:$0xff]  }
 0x42d   : > { %v5329_v30 = vrot.slane %v5327_v41, 5  ;;  %v7642_v38 = vpop.f32.mrf.mxu1  ;;  %v5345_v13 = vshrl.u32 %v10632_v45, 16  ;;  %v5306_v9 = vsel %vm8751_vm8, %v5301_v3, %v5305_v37  ;;  %v5315_v52 = vrot.slane %v5314_v42, 4  ;;  %v10654_v32 = vld [vmem:[#allocation2 + $0x88] sm:$0xf] }
 0x42e   : > { %v10650_v0 = vadd.f32 %v10551_v61, %v7642_v38  ;;  %v5334_v46 = vrot.slane %v5332_v29, 4  ;;  %v10652_v60 = vpop.f32.mrf.mxu0  ;;  %v7198_v6 = vcombine.low %v5296_v15, %v5306_v9  ;;  %v5324_v17 = vor.u32 %v5323_v10, %v5319_v47  ;;  %v8011_v61 = vld [vmem:[#allocation2 + $0x60] sm:$0xff]  }
 0x42f   : > { %v5337_v28 = vrot.slane %v5335_v25, 5  ;;  %v5343_v43 = vrot.slane %v5341_v55, 5  ;;  %v2311_v31 = vpop.f32.mrf.mxu1  ;;  %v5320_v41 = vsel %vm8751_vm8, %v5315_v52, %v5319_v47  ;;  %v5347_v37 = vrot.slane %v5345_v13, 4 }
 0x430   : > { %12143 = vst [vmem:[#allocation47_spill] sm:$0xff] %v10650_v0  ;;  %v5351_v3 = vshll.u32 %v10643_v51, 16  ;;  %v10660_v42 = vadd.f32 %v10559_v23, %v2311_v31  ;;  %v10662_v29 = vpop.f32.mrf.mxu0  ;;  %7882 = vmatprep.mubr.msk.bf16.mxu0 %vm408_vm0, %v7198_v6  ;;  %v5325_v15 = vrot.slane %v5324_v17, 4  ;;  %v5356_v38 = vshrl.u32 %v5118_v36, 16  ;;  %v10670_v23 = vld [vmem:[#allocation2 + $0x8c] sm:$0x1] }
 0x431   : > { %v5338_v25 = vor.u32 %v5337_v28, %v5334_v46  ;;  %v7643_v10 = vpop.f32.mrf.mxu1  ;;  %v5359_v55 = vshll.u32 %v5118_v36, 16  ;;  %v5348_v9 = vor.u32 %v5347_v37, %v5343_v43  ;;  %v5365_v52 = vshll.u32 %v10654_v32, 16  ;;  %v5121_v31 = vld [vmem:[#allocation2 + $0x90] sm:$0xf] }
 0x432   : > { %12144 = vst [vmem:[#allocation57_spill] sm:$0xff] %v10660_v42  ;;  %7845 = vmatmul.mubr.msk.bf16.gmra.mxu1 %vm408_vm0, %v8010_v58  ;;  %v5353_v47 = vrot.slane %v5351_v3, 5  ;;  %v10668_v13 = vadd.f32 %v10568_v1, %v7643_v10  ;;  %v5330_v6 = vsel %vm8751_vm8, %v5325_v15, %v5329_v30  ;;  %v5358_v46 = vrot.slane %v5356_v38, 4 }
 0x433   : > { %7848 = vmatprep.mubr.msk.bf16.mxu1 %vm408_vm0, %v8011_v61  ;;  %v5339_v17 = vrot.slane %v5338_v25, 4  ;;  %v2314_v58 = vpop.f32.mrf.mxu1  ;;  %v5361_v28 = vrot.slane %v5359_v55, 5  ;;  %v10675_v36 = vpop.f32.mrf.mxu0  ;;  %v7199_v37 = vcombine.low %v5320_v41, %v5330_v6  ;;  %v5349_v3 = vrot.slane %v5348_v9, 4  ;;  %v10684_v25 = vld [vmem:[#allocation2 + $0x94] sm:$0xf] }
 0x434   : > { %12145 = vst [vmem:[#allocation48_spill] sm:$0xff] %v10668_v13  ;;  %v10678_v61 = vadd.f32 %v10580_v48, %v2314_v58  ;;  %v5367_v1 = vrot.slane %v5365_v52, 5  ;;  %v5369_v42 = vshrl.u32 %v10654_v32, 16  ;;  %v5375_v30 = vshll.u32 %v10670_v23, 16  ;;  %v10694_v55 = vld [vmem:[#allocation2 + $0x98] sm:$0x1] }
 0x435   : > { %v5344_v10 = vsel %vm8751_vm8, %v5339_v17, %v5343_v43  ;;  %v5362_v13 = vor.u32 %v5361_v28, %v5358_v46  ;;  %v7646_v15 = vpop.f32.mrf.mxu1  ;;  %v10686_v38 = vpop.f32.mrf.mxu0  ;;  %7883 = vmatmul.mubr.msk.bf16.gmra.mxu0 %vm408_vm0, %v7199_v37  ;;  %v5354_v48 = vsel %vm8751_vm8, %v5349_v3, %v5353_v47  ;;  %12148 = vst [vmem:[#allocation59_spill] sm:$0xff] %v10694_v55  ;;  %v5380_v43 = vshrl.u32 %v5121_v31, 16  ;;  %v8012_v46 = vld [vmem:[#allocation2 + $0x6c] sm:$0xff]   ;;  %v8013_v28 = vld [vmem:[#allocation2 + $0x78] sm:$0xff]  }
 0x436   : > { %12146 = vst [vmem:[#allocation58_spill] sm:$0xff] %v10678_v61  ;;  %v10692_v41 = vadd.f32 %v10592_v63, %v7646_v15  ;;  %v5383_v9 = vshll.u32 %v5121_v31, 16  ;;  %v7200_v52 = vcombine.low %v5344_v10, %v5354_v48  ;;  %v5371_v17 = vrot.slane %v5369_v42, 4  ;;  %v5124_v3 = vld [vmem:[#allocation2 + $0x9c] sm:$0xf] }
 0x437   : > { %v5363_v6 = vrot.slane %v5362_v13, 4  ;;  %v5377_v58 = vrot.slane %v5375_v30, 5  ;;  %v2327_v61 = vpop.f32.mrf.mxu1  ;;  %v10696_v0 = vpop.f32.mrf.mxu0  ;;  %v5382_v37 = vrot.slane %v5380_v43, 4  ;;  %v5389_v47 = vshll.u32 %v10684_v25, 16  ;;  %v10708_v15 = vld [vmem:[#allocation2 + $0xa0] sm:$0xf] }
 0x438   : > { %12147 = vst [vmem:[#allocation49_spill] sm:$0xff] %v10692_v41  ;;  %v5385_v26 = vrot.slane %v5383_v9, 5  ;;  %v5393_v63 = vshrl.u32 %v10684_v25, 16  ;;  %7886 = vmatprep.mubr.msk.bf16.mxu0 %vm408_vm0, %v7200_v52  ;;  %v5372_v13 = vor.u32 %v5371_v17, %v5367_v1  ;;  %v5399_v42 = vshll.u32 %v10694_v55, 16  ;;  %12150 = vst [vmem:[#allocation60_spill] sm:$0xff] %v10708_v15 }
 0x439   : > { %v5368_v31 = vsel %vm8751_vm8, %v5363_v6, %v5367_v1  ;;  %v10706_v10 = vadd.f32 %v10603_v8, %v2327_v61  ;;  %v7647_v30 = vpop.f32.mrf.mxu1  ;;  %v10710_v48 = vpop.f32.mrf.mxu0  ;;  %v5391_v9 = vrot.slane %v5389_v47, 5  ;;  %v5407_v7 = vshll.u32 %v5124_v3, 16 }
 0x43a   : > { %7849 = vmatmul.mubr.msk.bf16.gmra.mxu1 %vm408_vm0, %v8012_v46  ;;  %v5386_v43 = vor.u32 %v5385_v26, %v5382_v37  ;;  %v5395_v41 = vrot.slane %v5393_v63, 4  ;;  %v10714_v52 = vadd.f32 %v10611_v59, %v7647_v30  ;;  %v5373_v1 = vrot.slane %v5372_v13, 4  ;;  %v5127_v37 = vld [vmem:[#allocation2 + $0xa8] sm:$0xf] }
 0x43b   : > { %12149 = vst [vmem:[#allocation50_spill] sm:$0xff] %v10706_v10  ;;  %7852 = vmatprep.mubr.msk.bf16.mxu1 %vm408_vm0, %v8013_v28  ;;  %v5401_v6 = vrot.slane %v5399_v42, 5  ;;  %v2330_v17 = vpop.f32.mrf.mxu1  ;;  %v5404_v46 = vshrl.u32 %v5124_v3, 16  ;;  %v5413_v26 = vshll.u32 %v10708_v15, 16  ;;  %v5409_v63 = vrot.slane %v5407_v7, 5 }
 0x43c   : > { %12151 = vst [vmem:[#allocation51_spill] sm:$0xff] %v10714_v52  ;;  %v5387_v8 = vrot.slane %v5386_v43, 4  ;;  %v5396_v61 = vor.u32 %v5395_v41, %v5391_v9  ;;  %v10717_v10 = vadd.f32 %v10622_v57, %v2330_v17  ;;  %v10722_v47 = vpop.f32.mrf.mxu0  ;;  %v5378_v59 = vsel %vm8751_vm8, %v5373_v1, %v5377_v58  ;;  %v10727_v3 = vld [vmem:[#allocation2 + $0xac] sm:$0xf]  ;;  %v8014_v58 = vld [vmem:[#allocation2 + $0x84] sm:$0xff]  }
 0x43d   : > { %v5406_v28 = vrot.slane %v5404_v46, 4  ;;  %v5417_v13 = vshrl.u32 %v10708_v15, 16  ;;  %12154 = vst [vmem:[#allocation39_spill] sm:$0xff] %v10727_v3  ;;  %v7201_v41 = vcombine.low %v5368_v31, %v5378_v59  ;;  %v5415_v30 = vrot.slane %v5413_v26, 5  ;;  %v10764_v15 = vld [vmem:[#allocation2 + $0xbc] sm:$0x1] }
 0x43e   : > { %12152 = vst [vmem:[#allocation38_spill] sm:$0xff] %v10717_v10  ;;  %v5392_v57 = vsel %vm8751_vm8, %v5387_v8, %v5391_v9  ;;  %v5397_v42 = vrot.slane %v5396_v61, 4  ;;  %v10731_v43 = vpop.f32.mrf.mxu0  ;;  %v5423_v52 = vshll.u32 %v10719_v33, 16  ;;  %v5428_v1 = vshrl.u32 %v5127_v37, 16  ;;  %v10740_v9 = vld [vmem:[#allocation2 + $0xb0] sm:$0x1] }
 0x43f   : > { %v5410_v17 = vor.u32 %v5409_v63, %v5406_v28  ;;  %v5419_v10 = vrot.slane %v5417_v13, 4  ;;  %v7650_v55 = vpop.f32.mrf.mxu1  ;;  %7887 = vmatmul.mubr.msk.bf16.gmra.mxu0 %vm408_vm0, %v7201_v41  ;;  %12156 = vst [vmem:[#allocation40_spill] sm:$0xff] %v10740_v9  ;;  %v5431_v46 = vshll.u32 %v5127_v37, 16  ;;  %v5437_v8 = vshll.u32 %v10727_v3, 16  ;;  %v8015_v61 = vld [vmem:[#allocation2 + $0x90] sm:$0xff]   ;;  %12160 = vst [vmem:[#allocation55_spill] sm:$0xff] %v10764_v15 }
 0x440   : > { %v5402_v7 = vsel %vm8751_vm8, %v5397_v42, %v5401_v6  ;;  %v10738_v31 = vadd.f32 %v10634_v44, %v7650_v55  ;;  %v10743_v26 = vpop.f32.mrf.mxu0  ;;  %v5425_v13 = vrot.slane %v5423_v52, 5  ;;  %v5130_v33 = vld [vmem:[#allocation2 + $0xb4] sm:$0xf]  ;;  %v5430_v6 = vrot.slane %v5428_v1, 4  ;;  %v10748_v37 = vld [vmem:[#allocation2 + $0xb8] sm:$0xf] }
 0x441   : > { %v7202_v59 = vcombine.low %v5392_v57, %v5402_v7  ;;  %v5411_v28 = vrot.slane %v5410_v17, 4  ;;  %v5420_v63 = vor.u32 %v5419_v10, %v5415_v30  ;;  %v2343_v41 = vpop.f32.mrf.mxu1  ;;  %v5433_v42 = vrot.slane %v5431_v46, 5  ;;  %12157 = vst [vmem:[#allocation54_spill] sm:$0xff] %v10748_v37 }
 0x442   : > { %12155 = vst [vmem:[#allocation53_spill] sm:$0xff] %v10738_v31  ;;  %7853 = vmatmul.mubr.msk.bf16.gmra.mxu1 %vm408_vm0, %v8014_v58  ;;  %v5439_v44 = vrot.slane %v5437_v8, 5  ;;  %v5441_v55 = vshrl.u32 %v10727_v3, 16  ;;  %v10750_v31 = vpop.f32.mrf.mxu0  ;;  %v5447_v57 = vshll.u32 %v10740_v9, 16  ;;  %v10757_v17 = vadd.f32 %v10641_v35, %v2343_v41 }
 0x443   : > { %7856 = vmatprep.mubr.msk.bf16.mxu1 %vm408_vm0, %v8015_v61  ;;  %7890 = vmatprep.mubr.msk.bf16.mxu0 %vm408_vm0, %v7202_v59  ;;  %v5416_v10 = vsel %vm8751_vm8, %v5411_v28, %v5415_v30  ;;  %v5421_v52 = vrot.slane %v5420_v63, 4  ;;  %v7651_v58 = vpop.f32.mrf.mxu1  ;;  %v5434_v1 = vor.u32 %v5433_v42, %v5430_v6  ;;  %v5452_v8 = vshrl.u32 %v5130_v33, 16 }
 0x444   : > { %12158 = vst [vmem:[#allocation37_spill] sm:$0xff] %v10757_v17  ;;  %v5443_v7 = vrot.slane %v5441_v55, 4  ;;  %v10760_v46 = vadd.f32 %v10652_v60, %v7651_v58  ;;  %v5449_v59 = vrot.slane %v5447_v57, 5  ;;  %v5455_v30 = vshll.u32 %v5130_v33, 16  ;;  %v8016_v60 = vld [vmem:[#allocation2 + $0x9c] sm:$0xff]  }
 0x445   : > { %v5426_v61 = vsel %vm8751_vm8, %v5421_v52, %v5425_v13  ;;  %v2346_v3 = vpop.f32.mrf.mxu1  ;;  %v5461_v28 = vshll.u32 %v10748_v37, 16  ;;  %v10767_v63 = vpop.f32.mrf.mxu0  ;;  %v5435_v41 = vrot.slane %v5434_v1, 4  ;;  %v5133_v55 = vld [vmem:[#allocation2 + $0xc0] sm:$0xf]  ;;  %v5454_v58 = vrot.slane %v5452_v8, 4 }
 0x446   : > { %12159 = vst [vmem:[#allocation41_spill] sm:$0xff] %v10760_v46  ;;  %v7203_v35 = vcombine.low %v5416_v10, %v5426_v61  ;;  %v5444_v6 = vor.u32 %v5443_v7, %v5439_v44  ;;  %v10770_v42 = vadd.f32 %v10662_v29, %v2346_v3  ;;  %v5457_v46 = vrot.slane %v5455_v30, 5  ;;  %v10773_v17 = vld [vmem:[#allocation2 + $0xc4] sm:$0xf]  ;;  %v8017_v7 = vld [vmem:[#allocation2 + $0xa8] sm:$0xff]  }
 0x447   : > { %v5463_v13 = vrot.slane %v5461_v28, 5  ;;  %v5465_v52 = vshrl.u32 %v10748_v37, 16  ;;  %v7654_v57 = vpop.f32.mrf.mxu1  ;;  %v10775_v33 = vpop.f32.mrf.mxu0  ;;  %v5440_v10 = vsel %vm8751_vm8, %v5435_v41, %v5439_v44  ;;  %v5471_v29 = vshll.u32 %v10764_v15, 16  ;;  %v10785_v30 = vld [vmem:[#allocation2 + $0xc8] sm:$0x1] }
 0x448   : > { %12161 = vst [vmem:[#allocation42_spill] sm:$0xff] %v10770_v42  ;;  %7891 = vmatmul.mubr.msk.bf16.gmra.mxu0 %vm408_vm0, %v7203_v35  ;;  %v5445_v1 = vrot.slane %v5444_v6, 4  ;;  %v10782_v3 = vadd.f32 %v10675_v36, %v7654_v57  ;;  %v5458_v8 = vor.u32 %v5457_v46, %v5454_v58  ;;  %v5476_v28 = vshrl.u32 %v5133_v55, 16 }
 0x449   : > { %v5467_v61 = vrot.slane %v5465_v52, 4  ;;  %v5479_v42 = vshll.u32 %v5133_v55, 16  ;;  %v2359_v9 = vpop.f32.mrf.mxu1  ;;  %v10787_v35 = vpop.f32.mrf.mxu0  ;;  %v5473_v41 = vrot.slane %v5471_v29, 5  ;;  %v5485_v6 = vshll.u32 %v10773_v17, 16 }
 0x44a   : > { %12162 = vst [vmem:[#allocation56_spill] sm:$0xff] %v10782_v3  ;;  %7857 = vmatmul.mubr.msk.bf16.gmra.mxu1 %vm408_vm0, %v8016_v60  ;;  %v5450_v44 = vsel %vm8751_vm8, %v5445_v1, %v5449_v59  ;;  %v5489_v36 = vshrl.u32 %v10773_v17, 16  ;;  %v5459_v58 = vrot.slane %v5458_v8, 4  ;;  %v5478_v52 = vrot.slane %v5476_v28, 4  ;;  %v5821_v59 = vld [vmem:[#allocation2 + $0x18] sm:$0xe] }
 0x44b   : > { %7860 = vmatprep.mubr.msk.bf16.mxu1 %vm408_vm0, %v8017_v7  ;;  %v7204_v46 = vcombine.low %v5440_v10, %v5450_v44  ;;  %v5468_v60 = vor.u32 %v5467_v61, %v5463_v13  ;;  %v7655_v57 = vpop.f32.mrf.mxu1  ;;  %v10794_v3 = vpop.f32.mrf.mxu0  ;;  %v5481_v55 = vrot.slane %v5479_v42, 5  ;;  %v5487_v15 = vrot.slane %v5485_v6, 5  ;;  %v5136_v42 = vld [vmem:[#allocation2 + $0xcc] sm:$0xf] }
 0x44c   : > { %v5491_v37 = vrot.slane %v5489_v36, 4  ;;  %v5495_v62 = vshll.u32 %v10785_v30, 16  ;;  %v5464_v1 = vsel %vm8751_vm8, %v5459_v58, %v5463_v13  ;;  %v10801_v10 = vadd.f32 %v10686_v38, %v2359_v9  ;;  %v10811_v36 = vld [vmem:[#allocation2 + $0xd0] sm:$0xf]  ;;  %v8018_v38 = vld [vmem:[#allocation2 + $0xb4] sm:$0xff]  }
 0x44d   : > { %7894 = vmatprep.mubr.msk.bf16.mxu0 %vm408_vm0, %v7204_v46  ;;  %v5469_v29 = vrot.slane %v5468_v60, 4  ;;  %v10804_v7 = vadd.f32 %v10696_v0, %v7655_v57  ;;  %v2362_v8 = vpop.f32.mrf.mxu1  ;;  %v10806_v61 = vpop.f32.mrf.mxu0  ;;  %v5482_v28 = vor.u32 %v5481_v55, %v5478_v52  ;;  %v7225_v0 = vrot.slane %v5821_v59, 9  ;;  %v8019_v52 = vld [vmem:[#allocation2 + $0xc0] sm:$0xff]  }
 0x44e   : > { %12163 = vst [vmem:[#allocation3_spill] sm:$0xff] %v10801_v10  ;;  %v5492_v44 = vor.u32 %v5491_v37, %v5487_v15  ;;  %v10809_v6 = vadd.f32 %v10710_v48, %v2362_v8  ;;  %v5497_v46 = vrot.slane %v5495_v62, 5  ;;  %v5887_v58 = vrot.slane %v10456_v4, 5 }
 0x44f   : > { %12164 = vst [vmem:[#allocation4_spill] sm:$0xff] %v10804_v7  ;;  %v5474_v13 = vsel %vm8751_vm8, %v5469_v29, %v5473_v41  ;;  %v10815_v9 = vpop.f32.mrf.mxu0  ;;  %v5483_v57 = vrot.slane %v5482_v28, 4  ;;  %v5500_v37 = vshrl.u32 %v5136_v42, 16  ;;  %v5890_v8 = vrot.slane %v10460_v24, 5  ;;  %v5822_v28 = vld [vmem:[#allocation2 + $0x24] sm:$0xe] }
 0x450   : > { %12165 = vst [vmem:[#allocation61_spill] sm:$0xff] %v10809_v6  ;;  %v7205_v60 = vcombine.low %v5464_v1, %v5474_v13  ;;  %v5493_v7 = vrot.slane %v5492_v44, 4  ;;  %v5889_v48 = vrot.slane %v5887_v58, 4  ;;  %v10820_v6 = vld [vmem:[#allocation2 + $0xd4] sm:$0x1]  ;;  %v5503_v62 = vshll.u32 %v5136_v42, 16 }
 0x451   : > { %v7658_v55 = vpop.f32.mrf.mxu1  ;;  %12166 = vst [vmem:[#allocation62_spill] sm:$0xff] %v10820_v6  ;;  %v5509_v41 = vshll.u32 %v10811_v36, 16  ;;  %v10823_v29 = vpop.f32.mrf.mxu0  ;;  %v5488_v4 = vsel %vm8751_vm8, %v5483_v57, %v5487_v15  ;;  %v5502_v24 = vrot.slane %v5500_v37, 4  ;;  %v8020_v37 = vld [vmem:[#allocation2 + $0xcc] sm:$0xff]   ;;  %v5922_v34 = vrot.slane %v10557_v22, 5 }
 0x452   : > { %7861 = vmatmul.mubr.msk.bf16.gmra.mxu1 %vm408_vm0, %v8018_v38  ;;  %7895 = vmatmul.mubr.msk.bf16.gmra.mxu0 %vm408_vm0, %v7205_v60  ;;  %v5498_v59 = vsel %vm8751_vm8, %v5493_v7, %v5497_v46  ;;  %v10831_v1 = vadd.f32 %v10722_v47, %v7658_v55  ;;  %v5891_v13 = vsel %vm9748_vm3, %v5889_v48, %v5890_v8  ;;  %v5505_v38 = vrot.slane %v5503_v62, 5  ;;  %v5823_v46 = vld [vmem:[#allocation2 + $0x30] sm:$0xe] }
 0x453   : > { %7864 = vmatprep.mubr.msk.bf16.mxu1 %vm408_vm0, %v8019_v52  ;;  %v7206_v42 = vcombine.low %v5488_v4, %v5498_v59  ;;  %v2375_v44 = vpop.f32.mrf.mxu1  ;;  %v10836_v60 = vpop.f32.mrf.mxu0  ;;  %v5511_v57 = vrot.slane %v5509_v41, 5  ;;  %v5513_v7 = vshrl.u32 %v10811_v36, 16  ;;  %v5519_v47 = vshll.u32 %v10820_v6, 16 }
 0x454   : > { %12167 = vst [vmem:[#allocation63_spill] sm:$0xff] %v10831_v1  ;;  %v10839_v15 = vadd.f32 %v10731_v43, %v2375_v44  ;;  %v5888_v55 = vsel %vm9748_vm3, %v7225_v0, %v5887_v58  ;;  %v5506_v48 = vor.u32 %v5505_v38, %v5502_v24  ;;  %v7226_v62 = vrot.slane %v5822_v28, 9 }
 0x455   : > { %7898 = vmatprep.mubr.msk.bf16.mxu0 %vm408_vm0, %v7206_v42  ;;  %v7659_v52 = vpop.f32.mrf.mxu1  ;;  %v10846_v8 = vpop.f32.mrf.mxu0  ;;  %v5894_v43 = vrot.slane %v10477_v12, 5  ;;  %v7243_v4 = vcombine.low %v5888_v55, %v5891_v13  ;;  %v5515_v59 = vrot.slane %v5513_v7, 4  ;;  %v5897_v44 = vrot.slane %v10481_v56, 5  ;;  %v5825_v13 = vld [vmem:[#allocation2 + $0x48] sm:$0xe] }
 0x456   : > { %12168 = vst [vmem:[#allocation64_spill] sm:$0xff] %v10839_v15  ;;  %v10850_v41 = vadd.f32 %v10743_v26, %v7659_v52  ;;  %v5824_v15 = vld [vmem:[#allocation2 + $0x3c] sm:$0xe]  ;;  %v5507_v1 = vrot.slane %v5506_v48, 4  ;;  %v7227_v0 = vrot.slane %v5823_v46, 9  ;;  %v5901_v58 = vrot.slane %v10505_v16, 5 }
 0x457   : > { %v2378_v42 = vpop.f32.mrf.mxu1  ;;  %v5896_v6 = vrot.slane %v5894_v43, 4  ;;  %v10853_v10 = vpop.f32.mrf.mxu0  ;;  %v5516_v12 = vor.u32 %v5515_v59, %v5511_v57  ;;  %v5521_v28 = vrot.slane %v5519_v47, 5  ;;  %v5895_v26 = vsel %vm9748_vm3, %v7226_v62, %v5894_v43  ;;  %v5826_v43 = vld [vmem:[#allocation2 + $0x54] sm:$0xe] }
 0x458   : > { %v10857_v24 = vadd.f32 %v10750_v31, %v2378_v42  ;;  %v5903_v7 = vrot.slane %v5901_v58, 4  ;;  %v5904_v46 = vrot.slane %v10512_v39, 5  ;;  %v7228_v16 = vrot.slane %v5824_v15, 9 }
 0x459   : > { %v7662_v38 = vpop.f32.mrf.mxu1  ;;  %v5898_v56 = vsel %vm9748_vm3, %v5896_v6, %v5897_v44  ;;  %v10865_v52 = vpop.f32.mrf.mxu0  ;;  %v5512_v47 = vsel %vm8751_vm8, %v5507_v1, %v5511_v57  ;;  %v5517_v55 = vrot.slane %v5516_v12, 4  ;;  %v5902_v6 = vsel %vm9748_vm3, %v7227_v0, %v5901_v58 }
 0x45a   : > { %7865 = vmatmul.mubr.msk.bf16.gmra.mxu1 %vm408_vm0, %v8020_v37  ;;  %v10868_v31 = vadd.f32 %v10767_v63, %v7662_v38  ;;  %v5908_v37 = vrot.slane %v10521_v18, 5  ;;  %v5905_v39 = vsel %vm9748_vm3, %v5903_v7, %v5904_v46  ;;  %v7229_v15 = vrot.slane %v5825_v13, 9  ;;  %v5827_v13 = vld [vmem:[#allocation2 + $0x60] sm:$0xe] }
 0x45b   : > { %7904 = vmatprep.mubr.msk.bf16.mxu1 %vm408_vm0, %v7243_v4  ;;  %v2391_v48 = vpop.f32.mrf.mxu1  ;;  %v10878_v62 = vpop.f32.mrf.mxu0  ;;  %v5915_v63 = vrot.slane %v10536_v2, 5  ;;  %v5522_v1 = vsel %vm8751_vm8, %v5517_v55, %v5521_v28  ;;  %v7244_v18 = vcombine.low %v5895_v26, %v5898_v56  ;;  %v5911_v57 = vrot.slane %v10529_v14, 5  ;;  %v5829_v55 = vld [vmem:[#allocation2 + $0x78] sm:$0xe] }
 0x45c   : > { %v10882_v4 = vadd.f32 %v10775_v33, %v2391_v48  ;;  %v7207_v59 = vcombine.low %v5512_v47, %v5522_v1  ;;  %v7245_v42 = vcombine.low %v5902_v6, %v5905_v39  ;;  %v5910_v58 = vrot.slane %v5908_v37, 4 }
 0x45d   : > { %v7663_v44 = vpop.f32.mrf.mxu1  ;;  %v10887_v0 = vpop.f32.mrf.mxu0  ;;  %v5917_v12 = vrot.slane %v5915_v63, 4  ;;  %v5918_v33 = vrot.slane %v10545_v40, 5  ;;  %v7230_v38 = vrot.slane %v5826_v43, 9  ;;  %v5909_v14 = vsel %vm9748_vm3, %v7228_v16, %v5908_v37  ;;  %v5828_v40 = vld [vmem:[#allocation2 + $0x6c] sm:$0xe] }
 0x45e   : > { %v10890_v2 = vadd.f32 %v10787_v35, %v7663_v44  ;;  %7899 = vmatmul.mubr.msk.bf16.gmra.mxu0 %vm408_vm0, %v7207_v59  ;;  %v5912_v26 = vsel %vm9748_vm3, %v5910_v58, %v5911_v57  ;;  %v5916_v35 = vsel %vm9748_vm3, %v7229_v15, %v5915_v63  ;;  %v5929_v7 = vrot.slane %v10578_v21, 5 }
 0x45f   : > { %v2394_v28 = vpop.f32.mrf.mxu1  ;;  %v10899_v56 = vpop.f32.mrf.mxu0  ;;  %v5919_v22 = vsel %vm9748_vm3, %v5917_v12, %v5918_v33  ;;  %v5925_v47 = vrot.slane %v10573_v20, 5  ;;  %v7231_v16 = vrot.slane %v5827_v13, 9  ;;  %v7246_v48 = vcombine.low %v5909_v14, %v5912_v26  ;;  %v5830_v12 = vld [vmem:[#allocation2 + $0x84] sm:$0xe] }
 0x460   : > { %v10905_v46 = vadd.f32 %v10794_v3, %v2394_v28  ;;  %v10915_v21 = vsel %vm9748_vm3, %v7230_v38, %v5922_v34  ;;  %v5924_v39 = vrot.slane %v5922_v34, 4  ;;  %v5931_v3 = vrot.slane %v5929_v7, 4  ;;  %v5831_v28 = vld [vmem:[#allocation2 + $0x90] sm:$0xe] }
 0x461   : > { %v7702_v37 = vpop.f32.mrf.mxu1  ;;  %v10911_v6 = vpop.f32.mrf.mxu0  ;;  %v5932_v20 = vrot.slane %v10595_v54, 5  ;;  %v7232_v63 = vrot.slane %v5828_v40, 9  ;;  %v5936_v43 = vrot.slane %v10609_v5, 5  ;;  %v7233_v44 = vrot.slane %v5829_v55, 9 }
 0x462   : > { %7905 = vmatmul.mubr.msk.bf16.vlgmr.msra.gmra.mxu1 %vm408_vm0, %v7244_v18  ;;  %v10918_v15 = vadd.f32 %v7702_v37, %v10554_v49  ;;  %v7247_v18 = vcombine.low %v5916_v35, %v5919_v22  ;;  %v10927_v59 = vsel %vm9748_vm3, %v5924_v39, %v5925_v47  ;;  %v5943_v58 = vrot.slane %v10632_v45, 5 }
 0x463   : > { %7908 = vmatprep.mubr.msk.bf16.mxu1 %vm408_vm0, %v7245_v42  ;;  %v3003_v1 = vpop.f32.mrf.mxu1  ;;  %v10923_v57 = vpop.f32.mrf.mxu0  ;;  %v7248_v54 = vcombine.low %v10915_v21, %v10927_v59  ;;  %v10937_v5 = vsel %vm9748_vm3, %v7231_v16, %v5929_v7  ;;  %v10941_v42 = vsel %vm9748_vm3, %v5931_v3, %v5932_v20  ;;  %v5939_v38 = vrot.slane %v10620_v27, 5  ;;  %v5832_v21 = vld [vmem:[#allocation2 + $0x9c] sm:$0xe] }
 0x464   : > { %v10931_v49 = vadd.f32 %v3003_v1, %v10566_v11  ;;  %v7249_v45 = vcombine.low %v10937_v5, %v10941_v42  ;;  %v5938_v11 = vrot.slane %v5936_v43, 4  ;;  %v5945_v34 = vrot.slane %v5943_v58, 4  ;;  %v12170_v59 = vld [vmem:[#allocation59_spill] sm:$0xff] }
 0x465   : > { %v7703_v13 = vpop.f32.mrf.mxu1  ;;  %v10943_v33 = vpop.f32.mrf.mxu0  ;;  %v10953_v26 = vsel %vm9748_vm3, %v7232_v63, %v5936_v43  ;;  %v5946_v35 = vrot.slane %v10643_v51, 5  ;;  %v5950_v7 = vrot.slane %v10654_v32, 5  ;;  %v10965_v27 = vsel %vm9748_vm3, %v7233_v44, %v5943_v58  ;;  %v12169_v43 = vld [vmem:[#allocation43_spill] sm:$0xff]  ;;  %v12171_v58 = vld [vmem:[#allocation60_spill] sm:$0xff] }
 0x466   : > { %v10949_v14 = vadd.f32 %v7703_v13, %v10571_v53  ;;  %v10961_v47 = vsel %vm9748_vm3, %v5938_v11, %v5939_v38  ;;  %v7234_v53 = vrot.slane %v5830_v12, 9  ;;  %v5957_v16 = vrot.slane %v10684_v25, 5  ;;  %v12172_v11 = vld [vmem:[#allocation44_spill] sm:$0xff] }
 0x467   : > { %v3006_v40 = vpop.f32.mrf.mxu1  ;;  %v10957_v22 = vpop.f32.mrf.mxu0  ;;  %v7250_v51 = vcombine.low %v10953_v26, %v10961_v47  ;;  %v10973_v32 = vsel %vm9748_vm3, %v5945_v34, %v5946_v35  ;;  %v7235_v37 = vrot.slane %v5831_v28, 9  ;;  %v5952_v25 = vrot.slane %v5950_v7, 4  ;;  %v5834_v35 = vld [vmem:[#allocation2 + $0xb4] sm:$0xe] }
 0x468   : > { %v3131_v55 = vadd.f32 %v3006_v40, %v10584_v50  ;;  %v5953_v50 = vrot.slane %v10670_v23, 5  ;;  %v5959_v63 = vrot.slane %v5957_v16, 4  ;;  %v5960_v44 = vrot.slane %v12170_v59, 5  ;;  %v12175_v59 = vld [vmem:[#allocation54_spill] sm:$0xff] }
 0x469   : > { %v7706_v39 = vpop.f32.mrf.mxu1  ;;  %v10976_v3 = vpop.f32.mrf.mxu0  ;;  %v5964_v5 = vrot.slane %v12171_v58, 5  ;;  %v7236_v23 = vrot.slane %v5832_v21, 9  ;;  %v11000_v34 = vsel %vm9748_vm3, %v7235_v37, %v5957_v16  ;;  %v5978_v58 = vrot.slane %v12175_v59, 5 }
 0x46a   : > { %7909 = vmatmul.mubr.msk.bf16.gmra.mxu1 %vm408_vm0, %v7246_v48  ;;  %v3136_v1 = vadd.f32 %v7706_v39, %v12169_v43  ;;  %v10989_v48 = vsel %vm9748_vm3, %v7234_v53, %v5950_v7  ;;  %v10993_v13 = vsel %vm9748_vm3, %v5952_v25, %v5953_v50  ;;  %v11004_v28 = vsel %vm9748_vm3, %v5959_v63, %v5960_v44  ;;  %v12173_v39 = vld [vmem:[#allocation52_spill] sm:$0xff]  ;;  %v12174_v50 = vld [vmem:[#allocation45_spill] sm:$0xff] }
 0x46b   : > { %7912 = vmatprep.mubr.msk.bf16.mxu1 %vm408_vm0, %v7247_v18  ;;  %v3019_v42 = vpop.f32.mrf.mxu1  ;;  %v10985_v12 = vpop.f32.mrf.mxu0  ;;  %v5966_v21 = vrot.slane %v5964_v5, 4  ;;  %v5967_v25 = vrot.slane %v12173_v39, 5  ;;  %v11017_v63 = vsel %vm9748_vm3, %v7236_v23, %v5964_v5  ;;  %v5980_v59 = vrot.slane %v5978_v58, 4  ;;  %v12177_v18 = vld [vmem:[#allocation55_spill] sm:$0xff] }
 0x46c   : > { %v3134_v38 = vadd.f32 %v3019_v42, %v12172_v11  ;;  %v7238_v42 = vrot.slane %v5834_v35, 9  ;;  %v12176_v11 = vld [vmem:[#allocation46_spill] sm:$0xff]  ;;  %v5981_v20 = vrot.slane %v12177_v18, 5  ;;  %v12178_v5 = vld [vmem:[#allocation47_spill] sm:$0xff]  ;;  %v11048_v18 = vadd.f32 %v10815_v9, %v10931_v49 }
 0x46d   : > { %v7707_v7 = vpop.f32.mrf.mxu1  ;;  %v11006_v40 = vpop.f32.mrf.mxu0  ;;  %v11021_v44 = vsel %vm9748_vm3, %v5966_v21, %v5967_v25  ;;  %v11064_v9 = vadd.f32 %v10846_v8, %v3136_v1  ;;  %v12181_v8 = vld [vmem:[#allocation58_spill] sm:$0xff] }
 0x46e   : > { %v3137_v43 = vadd.f32 %v7707_v7, %v12174_v50  ;;  %v7254_v39 = vcombine.low %v11017_v63, %v11021_v44  ;;  %v11036_v35 = vsel %vm9748_vm3, %v7238_v42, %v5978_v58  ;;  %v11060_v42 = vadd.f32 %v10836_v60, %v3131_v55  ;;  %v12196_v44 = vld [vmem:[#allocation3_spill] sm:$0xff] }
 0x46f   : > { %v3022_v16 = vpop.f32.mrf.mxu1  ;;  %v11013_v37 = vpop.f32.mrf.mxu0  ;;  %v11067_v49 = vadd.f32 %v10853_v10, %v3134_v38 }
 0x470   : > { %v3135_v53 = vadd.f32 %v3022_v16, %v12176_v11  ;;  %v11040_v16 = vsel %vm9748_vm3, %v5980_v59, %v5981_v20  ;;  %v11057_v20 = vadd.f32 %v10823_v29, %v10949_v14  ;;  %v11070_v59 = vadd.f32 %v10865_v52, %v3137_v43  ;;  %v12184_v43 = vld [vmem:[#allocation50_spill] sm:$0xff] }
 0x471   : > { %v7710_v7 = vpop.f32.mrf.mxu1  ;;  %v11027_v50 = vpop.f32.mrf.mxu0 }
 0x472   : > { %7913 = vmatmul.mubr.msk.bf16.gmra.mxu1 %vm408_vm0, %v7248_v54  ;;  %v3140_v23 = vadd.f32 %v7710_v7, %v12178_v5  ;;  %v11044_v54 = vadd.f32 %v10806_v61, %v10918_v15  ;;  %v7256_v7 = vcombine.low %v11036_v35, %v11040_v16  ;;  %v12180_v61 = vld [vmem:[#allocation48_spill] sm:$0xff]  ;;  %v11075_v29 = vadd.f32 %v10878_v62, %v3135_v53  ;;  %v12182_v62 = vld [vmem:[#allocation49_spill] sm:$0xff] }
 0x473   : > { %7916 = vmatprep.mubr.msk.bf16.mxu1 %vm408_vm0, %v7249_v45  ;;  %v3035_v21 = vpop.f32.mrf.mxu1  ;;  %v11032_v25 = vpop.f32.mrf.mxu0  ;;  %v12179_v45 = vld [vmem:[#allocation57_spill] sm:$0xff]  ;;  %v12201_v35 = vld [vmem:[#allocation64_spill] sm:$0xff] }
 0x474   : > { %v3138_v11 = vadd.f32 %v3035_v21, %v12179_v45  ;;  %v11078_v60 = vadd.f32 %v10887_v0, %v3140_v23  ;;  %v12183_v0 = vcombine.low %v10965_v27, %v10973_v32 }
 0x475   : > { %v7711_v5 = vpop.f32.mrf.mxu1  ;;  %v11053_v58 = vpop.f32.mrf.mxu0 }
 0x476   : > { %v3141_v15 = vadd.f32 %v7711_v5, %v12180_v61  ;;  %v11081_v14 = vadd.f32 %v10899_v56, %v3138_v11  ;;  %v12185_v11 = vld [vmem:[#allocation39_spill] sm:$0xff] }
 0x477   : > { %v3038_v21 = vpop.f32.mrf.mxu1  ;;  %v11072_v45 = vpop.f32.mrf.mxu0  ;;  %v5971_v5 = vrot.slane %v12185_v11, 5  ;;  %v12186_v61 = vld [vmem:[#allocation51_spill] sm:$0xff]  ;;  %v12191_v11 = vld [vmem:[#allocation40_spill] sm:$0xff] }
 0x478   : > { %v3139_v55 = vadd.f32 %v3038_v21, %v12181_v8  ;;  %v11085_v10 = vadd.f32 %v10911_v6, %v3141_v15  ;;  %v12187_v21 = vld [vmem:[#allocation38_spill] sm:$0xff] }
 0x479   : > { %v7714_v1 = vpop.f32.mrf.mxu1  ;;  %v11091_v52 = vpop.f32.mrf.mxu0 }
 0x47a   : > { %7917 = vmatmul.mubr.msk.bf16.gmra.mxu1 %vm408_vm0, %v7250_v51  ;;  %v3144_v38 = vadd.f32 %v7714_v1, %v12182_v62  ;;  %v11099_v56 = vadd.f32 %v10923_v57, %v3139_v55  ;;  %v5833_v55 = vld [vmem:[#allocation2 + $0xa8] sm:$0xe]  ;;  %v12188_v62 = vcombine.low %v10989_v48, %v10993_v13 }
 0x47b   : > { %7920 = vmatprep.mubr.msk.bf16.mxu1 %vm408_vm0, %v12183_v0  ;;  %v3051_v6 = vpop.f32.mrf.mxu1  ;;  %v11101_v53 = vpop.f32.mrf.mxu0  ;;  %v12192_v13 = vld [vmem:[#allocation37_spill] sm:$0xff] }
 0x47c   : > { %v3142_v23 = vadd.f32 %v3051_v6, %v12184_v43  ;;  %v11105_v26 = vadd.f32 %v10943_v33, %v3144_v38  ;;  %v5973_v38 = vrot.slane %v5971_v5, 4  ;;  %v12190_v43 = vcombine.low %v11000_v34, %v11004_v28 }
 0x47d   : > { %v7715_v47 = vpop.f32.mrf.mxu1  ;;  %v11107_v51 = vpop.f32.mrf.mxu0 }
 0x47e   : > { %v3145_v27 = vadd.f32 %v7715_v47, %v12186_v61  ;;  %v11112_v32 = vadd.f32 %v10957_v22, %v3142_v23  ;;  %v12189_v22 = vld [vmem:[#allocation53_spill] sm:$0xff]  ;;  %v7237_v47 = vrot.slane %v5833_v55, 9  ;;  %v5974_v61 = vrot.slane %v12191_v11, 5  ;;  %v5835_v11 = vld [vmem:[#allocation2 + $0xc0] sm:$0xe] }
 0x47f   : > { %v3054_v57 = vpop.f32.mrf.mxu1  ;;  %v11114_v15 = vpop.f32.mrf.mxu0 }
 0x480   : > { %v3143_v8 = vadd.f32 %v3054_v57, %v12187_v21  ;;  %v11118_v1 = vadd.f32 %v10976_v3, %v3145_v27  ;;  %v5975_v34 = vsel %vm9748_vm3, %v5973_v38, %v5974_v61 }
 0x481   : > { %v7718_v33 = vpop.f32.mrf.mxu1  ;;  %v11124_v0 = vpop.f32.mrf.mxu0 }
 0x482   : > { %7921 = vmatmul.mubr.msk.bf16.gmra.mxu1 %vm408_vm0, %v12188_v62  ;;  %v3148_v6 = vadd.f32 %v7718_v33, %v12189_v22  ;;  %v11132_v23 = vadd.f32 %v10985_v12, %v3143_v8  ;;  %v5985_v12 = vrot.slane %v10773_v17, 5  ;;  %v12193_v8 = vld [vmem:[#allocation41_spill] sm:$0xff]  ;;  %v5972_v22 = vsel %vm9748_vm3, %v7237_v47, %v5971_v5 }
 0x483   : > { %7924 = vmatprep.mubr.msk.bf16.mxu1 %vm408_vm0, %v12190_v43  ;;  %v3067_v3 = vpop.f32.mrf.mxu1  ;;  %v11135_v48 = vpop.f32.mrf.mxu0  ;;  %v5836_v47 = vld [vmem:[#allocation2 + $0xcc] sm:$0xe] }
 0x484   : > { %v3146_v27 = vadd.f32 %v3067_v3, %v12192_v13  ;;  %v11139_v57 = vadd.f32 %v11006_v40, %v3148_v6  ;;  %v12194_v40 = vld [vmem:[#allocation42_spill] sm:$0xff]  ;;  %v7255_v3 = vcombine.low %v5972_v22, %v5975_v34  ;;  %v5987_v17 = vrot.slane %v5985_v12, 4  ;;  %v12195_v13 = vld [vmem:[#allocation56_spill] sm:$0xff] }
 0x485   : > { %v7719_v21 = vpop.f32.mrf.mxu1  ;;  %v11143_v28 = vpop.f32.mrf.mxu0  ;;  %v7239_v34 = vrot.slane %v5835_v11, 9 }
 0x486   : > { %v3149_v33 = vadd.f32 %v7719_v21, %v12193_v8  ;;  %v11148_v55 = vadd.f32 %v11013_v37, %v3146_v27  ;;  %v5992_v27 = vrot.slane %v10811_v36, 5  ;;  %v5988_v8 = vrot.slane %v10785_v30, 5 }
 0x487   : > { %v3070_v62 = vpop.f32.mrf.mxu1  ;;  %v11152_v43 = vpop.f32.mrf.mxu0  ;;  %v7240_v36 = vrot.slane %v5836_v47, 9 }
 0x488   : > { %v3147_v6 = vadd.f32 %v3070_v62, %v12194_v40  ;;  %v11156_v38 = vadd.f32 %v11027_v50, %v3149_v33  ;;  %v5989_v22 = vsel %vm9748_vm3, %v5987_v17, %v5988_v8 }
 0x489   : > { %v7722_v61 = vpop.f32.mrf.mxu1  ;;  %v11162_v37 = vpop.f32.mrf.mxu0 }
 0x48a   : > { %7925 = vmatmul.mubr.msk.bf16.gmra.mxu1 %vm408_vm0, %v7254_v39  ;;  %v3152_v5 = vadd.f32 %v7722_v61, %v12195_v13  ;;  %v11168_v21 = vadd.f32 %v11032_v25, %v3147_v6  ;;  %v5994_v6 = vrot.slane %v5992_v27, 4  ;;  %v12198_v61 = vld [vmem:[#allocation62_spill] sm:$0xff] }
 0x48b   : > { %7928 = vmatprep.mubr.msk.bf16.mxu1 %vm408_vm0, %v7255_v3  ;;  %v3083_v50 = vpop.f32.mrf.mxu1  ;;  %v3480_v63 = vpop.f32.mrf.mxu0  ;;  %v12197_v3 = vld [vmem:[#allocation4_spill] sm:$0xff]  ;;  %v5995_v11 = vrot.slane %v12198_v61, 5 }
 0x48c   : > { %v3150_v39 = vadd.f32 %v3083_v50, %v12196_v44  ;;  %v11173_v33 = vadd.f32 %v11053_v58, %v3152_v5  ;;  %v5986_v58 = vsel %vm9748_vm3, %v7239_v34, %v5985_v12  ;;  %v12199_v50 = vld [vmem:[#allocation61_spill] sm:$0xff]  ;;  %v5993_v12 = vsel %vm9748_vm3, %v7240_v36, %v5992_v27 }
 0x48d   : > { %v7723_v62 = vpop.f32.mrf.mxu1  ;;  %v11177_v40 = vpop.f32.mrf.mxu0  ;;  %v7257_v17 = vcombine.low %v5986_v58, %v5989_v22  ;;  %v5996_v34 = vsel %vm9748_vm3, %v5994_v6, %v5995_v11 }
 0x48e   : > { %v3153_v25 = vadd.f32 %v7723_v62, %v12197_v3  ;;  %v11182_v30 = vadd.f32 %v11072_v45, %v3150_v39  ;;  %v12200_v39 = vld [vmem:[#allocation63_spill] sm:$0xff]  ;;  %v7258_v61 = vcombine.low %v5993_v12, %v5996_v34 }
 0x48f   : > { %v3086_v13 = vpop.f32.mrf.mxu1  ;;  %v11186_v5 = vpop.f32.mrf.mxu0 }
 0x490   : > { %v3151_v44 = vadd.f32 %v3086_v13, %v12199_v50  ;;  %v11190_v8 = vadd.f32 %v11091_v52, %v3153_v25 }
 0x491   : > { %v7726_v47 = vpop.f32.mrf.mxu1  ;;  %v11196_v45 = vpop.f32.mrf.mxu0 }
 0x492   : > { %7929 = vmatmul.mubr.msk.bf16.gmra.mxu1 %vm408_vm0, %v7256_v7  ;;  %v3156_v62 = vadd.f32 %v7726_v47, %v12200_v39  ;;  %v11205_v52 = vadd.f32 %v11101_v53, %v3151_v44 }
 0x493   : > { %7932 = vmatprep.mubr.msk.bf16.mxu1 %vm408_vm0, %v7257_v17  ;;  %v3099_v22 = vpop.f32.mrf.mxu1  ;;  %v11207_v3 = vpop.f32.mrf.mxu0 }
 0x494   : > { %v3154_v16 = vadd.f32 %v3099_v22, %v12201_v35  ;;  %v11211_v7 = vadd.f32 %v11107_v51, %v3156_v62 }
 0x495   : > { %v7727_v25 = vpop.f32.mrf.mxu1  ;;  %v11213_v13 = vpop.f32.mrf.mxu0 }
 0x496   : > { %v3157_v27 = vadd.f32 %v7727_v25, %v10850_v41  ;;  %v11217_v19 = vadd.f32 %v11114_v15, %v3154_v16 }
 0x497   : > { %v3102_v36 = vpop.f32.mrf.mxu1  ;;  %v11219_v53 = vpop.f32.mrf.mxu0 }
 0x498   : > { %v3155_v6 = vadd.f32 %v3102_v36, %v10857_v24  ;;  %v11223_v11 = vadd.f32 %v11124_v0, %v3157_v27 }
 0x499   : > { %v11226_v51 = vpop.f32.mrf.mxu0 }
 0x49a   : > { %v7730_v58 = vpop.f32.mrf.mxu1  ;;  %7933 = vmatmul.mubr.msk.bf16.gmra.mxu1 %vm408_vm0, %v7258_v61  ;;  %v11230_v41 = vadd.f32 %v11135_v48, %v3155_v6 }
 0x49b   : > { %v3160_v50 = vadd.f32 %v7730_v58, %v10868_v31  ;;  %v11232_v44 = vpop.f32.mrf.mxu0 }
 0x49c   : > { %v3115_v15 = vpop.f32.mrf.mxu1 }
 0x49d   : > { %v3158_v17 = vadd.f32 %v3115_v15, %v10882_v4  ;;  %v11236_v24 = vadd.f32 %v11143_v28, %v3160_v50  ;;  %v11238_v47 = vpop.f32.mrf.mxu0 }
 0x49e   : > { %v7731_v0 = vpop.f32.mrf.mxu1 }
 0x49f   : > { %v3161_v39 = vadd.f32 %v7731_v0, %v10890_v2  ;;  %v11242_v62 = vadd.f32 %v11152_v43, %v3158_v17  ;;  %v11244_v12 = vpop.f32.mrf.mxu0 }
 0x4a0   : > { %v3118_v31 = vpop.f32.mrf.mxu1 }
 0x4a1   : > { %v3159_v48 = vadd.f32 %v3118_v31, %v10905_v46  ;;  %v11248_v34 = vadd.f32 %v11162_v37, %v3161_v39  ;;  %v11250_v22 = vpop.f32.mrf.mxu0 }
 0x4a2   : > { %v7770_v4 = vpop.f32.mrf.mxu1 }
 0x4a3   : > { %v11253_v28 = vadd.f32 %v7770_v4, %v11044_v54  ;;  %v11255_v35 = vadd.f32 %v3480_v63, %v3159_v48  ;;  %v11257_v16 = vpop.f32.mrf.mxu0 }
 0x4a4   : > { %v4095_v2 = vpop.f32.mrf.mxu1 }
 0x4a5   : > { %v11260_v43 = vadd.f32 %v4095_v2, %v11048_v18  ;;  %v11262_v61 = vpop.f32.mrf.mxu0 }
 0x4a6   : > { %v7771_v25 = vpop.f32.mrf.mxu1 }
 0x4a7   : > { %v11265_v46 = vadd.f32 %v7771_v25, %v11057_v20  ;;  %v11267_v27 = vpop.f32.mrf.mxu0 }
 0x4a8   : > { %v4098_v37 = vpop.f32.mrf.mxu1  ;;  %12202 = vst [vmem:[#allocation43_spill] sm:$0xff] %v11267_v27 }
 0x4a9   : > { %v11270_v54 = vadd.f32 %v4098_v37, %v11060_v42  ;;  %v11272_v36 = vpop.f32.mrf.mxu0 }
 0x4aa   : > { %v7774_v63 = vpop.f32.mrf.mxu1  ;;  %12203 = vst [vmem:[#allocation59_spill] sm:$0xff] %v11272_v36 }
 0x4ab   : > { %v11275_v6 = vadd.f32 %v7774_v63, %v11064_v9  ;;  %v11277_v58 = vpop.f32.mrf.mxu0 }
 0x4ac   : > { %v4111_v18 = vpop.f32.mrf.mxu1  ;;  %12204 = vst [vmem:[#allocation60_spill] sm:$0xff] %v11277_v58 }
 0x4ad   : > { %v11280_v50 = vadd.f32 %v4111_v18, %v11067_v49  ;;  %v11282_v15 = vpop.f32.mrf.mxu0 }
 0x4ae   : > { %v7775_v20 = vpop.f32.mrf.mxu1  ;;  %12205 = vst [vmem:[#allocation44_spill] sm:$0xff] %v11282_v15 }
 0x4af   : > { %v11285_v17 = vadd.f32 %v7775_v20, %v11070_v59  ;;  %v11287_v0 = vpop.f32.mrf.mxu0 }
 0x4b0   : > { %v4114_v42 = vpop.f32.mrf.mxu1  ;;  %12206 = vst [vmem:[#allocation52_spill] sm:$0xff] %v11287_v0 }
 0x4b1   : > { %v11290_v39 = vadd.f32 %v4114_v42, %v11075_v29  ;;  %v11292_v31 = vpop.f32.mrf.mxu0 }
 0x4b2   : > { %v7778_v9 = vpop.f32.mrf.mxu1  ;;  %12207 = vst [vmem:[#allocation45_spill] sm:$0xff] %v11292_v31 }
 0x4b3   : > { %v11295_v48 = vadd.f32 %v7778_v9, %v11078_v60  ;;  %v11297_v4 = vpop.f32.mrf.mxu0 }
 0x4b4   : > { %v4127_v49 = vpop.f32.mrf.mxu1  ;;  %12208 = vst [vmem:[#allocation54_spill] sm:$0xff] %v11297_v4 }
 0x4b5   : > { %v11300_v2 = vadd.f32 %v4127_v49, %v11081_v14  ;;  %v7824_v25 = vpop.f32.mrf.mxu0 }
 0x4b6   : > { %v7779_v59 = vpop.f32.mrf.mxu1 }
 0x4b7   : > { %v11303_v37 = vadd.f32 %v7779_v59, %v11085_v10  ;;  %v4649_v29 = vpop.f32.mrf.mxu0 }
 0x4b8   : > { %v4130_v63 = vpop.f32.mrf.mxu1 }
 0x4b9   : > { %v11306_v18 = vadd.f32 %v4130_v63, %v11099_v56  ;;  %v7825_v42 = vpop.f32.mrf.mxu0 }
 0x4ba   : > { %v7782_v20 = vpop.f32.mrf.mxu1 }
 0x4bb   : > { %v11309_v60 = vadd.f32 %v7782_v20, %v11105_v26  ;;  %v4652_v4 = vpop.f32.mrf.mxu0 }
 0x4bc   : > { %v4143_v9 = vpop.f32.mrf.mxu1 }
 0x4bd   : > { %v11312_v14 = vadd.f32 %v4143_v9, %v11112_v32  ;;  %v7828_v31 = vpop.f32.mrf.mxu0 }
 0x4be   : > { %v7783_v49 = vpop.f32.mrf.mxu1 }
 0x4bf   : > { %v11315_v10 = vadd.f32 %v7783_v49, %v11118_v1  ;;  %v4665_v0 = vpop.f32.mrf.mxu0 }
 0x4c0   : > { %v4146_v59 = vpop.f32.mrf.mxu1 }
 0x4c1   : > { %12209 = vst [vmem:[#allocation46_spill] sm:$0xff] %v11315_v10  ;;  %v11318_v56 = vadd.f32 %v4146_v59, %v11132_v23  ;;  %v7829_v15 = vpop.f32.mrf.mxu0 }
 0x4c2   : > { %v7786_v63 = vpop.f32.mrf.mxu1 }
 0x4c3   : > { %12210 = vst [vmem:[#allocation55_spill] sm:$0xff] %v11318_v56  ;;  %v11321_v26 = vadd.f32 %v7786_v63, %v11139_v57  ;;  %v4668_v58 = vpop.f32.mrf.mxu0 }
 0x4c4   : > { %v4159_v20 = vpop.f32.mrf.mxu1 }
 0x4c5   : > { %12211 = vst [vmem:[#allocation47_spill] sm:$0xff] %v11321_v26  ;;  %v11324_v32 = vadd.f32 %v4159_v20, %v11148_v55  ;;  %v7832_v36 = vpop.f32.mrf.mxu0 }
 0x4c6   : > { %v7787_v9 = vpop.f32.mrf.mxu1 }
 0x4c7   : > { %12212 = vst [vmem:[#allocation57_spill] sm:$0xff] %v11324_v32  ;;  %v11327_v1 = vadd.f32 %v7787_v9, %v11156_v38  ;;  %v4681_v59 = vpop.f32.mrf.mxu0 }
 0x4c8   : > { %v4162_v49 = vpop.f32.mrf.mxu1 }
 0x4c9   : > { %12213 = vst [vmem:[#allocation48_spill] sm:$0xff] %v11327_v1  ;;  %v11330_v10 = vadd.f32 %v4162_v49, %v11168_v21  ;;  %v7833_v20 = vpop.f32.mrf.mxu0 }
 0x4ca   : > { %v7790_v23 = vpop.f32.mrf.mxu1 }
 0x4cb   : > { %12214 = vst [vmem:[#allocation58_spill] sm:$0xff] %v11330_v10  ;;  %v4244_v56 = vadd.f32 %v7790_v23, %v11173_v33  ;;  %v4684_v10 = vpop.f32.mrf.mxu0 }
 0x4cc   : > { %v4175_v57 = vpop.f32.mrf.mxu1 }
 0x4cd   : > { %v4242_v63 = vadd.f32 %v4175_v57, %v11182_v30  ;;  %v11334_v26 = vadd.f32 %v7824_v25, %v4244_v56 }
 0x4ce   : > { %v7791_v55 = vpop.f32.mrf.mxu1 }
 0x4cf   : > { %v4245_v32 = vadd.f32 %v7791_v55, %v11190_v8  ;;  %v11337_v27 = vadd.f32 %v4649_v29, %v4242_v63 }
 0x4d0   : > { %v4178_v38 = vpop.f32.mrf.mxu1 }
 0x4d1   : > { %v4243_v9 = vadd.f32 %v4178_v38, %v11205_v52  ;;  %v11340_v21 = vadd.f32 %v7825_v42, %v4245_v32 }
 0x4d2   : > { %v7794_v49 = vpop.f32.mrf.mxu1 }
 0x4d3   : > { %v4248_v33 = vadd.f32 %v7794_v49, %v11211_v7  ;;  %v11343_v23 = vadd.f32 %v4652_v4, %v4243_v9 }
 0x4d4   : > { %v4191_v30 = vpop.f32.mrf.mxu1 }
 0x4d5   : > { %v4246_v25 = vadd.f32 %v4191_v30, %v11217_v19  ;;  %v11346_v56 = vadd.f32 %v7828_v31, %v4248_v33  ;;  %v11348_v8 = vpop.f32.mrf.mxu0 }
 0x4d6   : > { %v7795_v57 = vpop.f32.mrf.mxu1 }
 0x4d7   : > { %v4249_v29 = vadd.f32 %v7795_v57, %v11223_v11  ;;  %v11351_v63 = vadd.f32 %v4665_v0, %v4246_v25  ;;  %v11353_v42 = vpop.f32.mrf.mxu0 }
 0x4d8   : > { %v4194_v52 = vpop.f32.mrf.mxu1 }
 0x4d9   : > { %v4247_v32 = vadd.f32 %v4194_v52, %v11230_v41  ;;  %v11356_v7 = vadd.f32 %v7829_v15, %v4249_v29  ;;  %v11361_v38 = vpop.f32.mrf.mxu0 }
 0x4da   : > { %v7798_v4 = vpop.f32.mrf.mxu1 }
 0x4db   : > { %v4252_v55 = vadd.f32 %v7798_v4, %v11236_v24  ;;  %v11359_v19 = vadd.f32 %v4668_v58, %v4247_v32  ;;  %v11369_v41 = vpop.f32.mrf.mxu0 }
 0x4dc   : > { %v4207_v31 = vpop.f32.mrf.mxu1 }
 0x4dd   : > { %v4250_v9 = vadd.f32 %v4207_v31, %v11242_v62  ;;  %v11364_v11 = vadd.f32 %v7832_v36, %v4252_v55 }
 0x4de   : > { %v7799_v0 = vpop.f32.mrf.mxu1 }
 0x4df   : > { %v4253_v49 = vadd.f32 %v7799_v0, %v11248_v34  ;;  %v11367_v33 = vadd.f32 %v4681_v59, %v4250_v9 }
 0x4e0   : > { %v4210_v15 = vpop.f32.mrf.mxu1 }
 0x4e1   : > { %v4251_v30 = vadd.f32 %v4210_v15, %v11255_v35  ;;  %v11372_v24 = vadd.f32 %v7833_v20, %v4253_v49 }
 0x4e2   : > { %v7838_v58 = vpop.f32.mrf.mxu1  ;;  %v11376_v57 = vpop.f32.mrf.mxu0 }
 0x4e3   : > { %v11374_v25 = vadd.f32 %v4684_v10, %v4251_v30 }
 0x4e4   : > { %v4932_v62 = vpop.f32.mrf.mxu1  ;;  %v11378_v36 = vpop.f32.mrf.mxu0 }
 0x4e6   : > { %v7839_v29 = vpop.f32.mrf.mxu1  ;;  %v11380_v52 = vpop.f32.mrf.mxu0 }
 0x4e7   : > { %12215 = vst [vmem:[#allocation49_spill] sm:$0xff] %v11380_v52 }
 0x4e8   : > { %v11382_v34 = vpop.f32.mrf.mxu1  ;;  %v11384_v59 = vpop.f32.mrf.mxu0 }
 0x4e9   : > { %12216 = vst [vmem:[#allocation50_spill] sm:$0xff] %v11384_v59 }
 0x4ea   : > { %v11386_v32 = vpop.f32.mrf.mxu1 }
 0x4ec   : > { %v11388_v35 = vpop.f32.mrf.mxu1  ;;  %v11390_v20 = vpop.f32.mrf.mxu0 }
 0x4ed   : > { %12217 = vst [vmem:[#allocation39_spill] sm:$0xff] %v11390_v20 }
 0x4ee   : > { %v11392_v10 = vpop.f32.mrf.mxu1  ;;  %v11396_v55 = vpop.f32.mrf.mxu0 }
 0x4ef   : > { %12218 = vst [vmem:[#allocation51_spill] sm:$0xff] %v11396_v55 }
 0x4f0   : > { %v11394_v4 = vpop.f32.mrf.mxu1  ;;  %v11402_v0 = vpop.f32.mrf.mxu0 }
 0x4f1   : > { %12221 = vst [vmem:[#allocation40_spill] sm:$0xff] %v11402_v0 }
 0x4f2   : > { %v11398_v31 = vpop.f32.mrf.mxu1  ;;  %v11408_v30 = vpop.f32.mrf.mxu0 }
 0x4f3   : > { %12219 = vst [vmem:[#allocation38_spill] sm:$0xff] %v11398_v31  ;;  %12224 = vst [vmem:[#allocation42_spill] sm:$0xff] %v11408_v30 }
 0x4f4   : > { %v11400_v9 = vpop.f32.mrf.mxu1 }
 0x4f5   : > { %12220 = vst [vmem:[#allocation53_spill] sm:$0xff] %v11400_v9  ;;  %v11414_v1 = vpop.f32.mrf.mxu0 }
 0x4f6   : > { %v11404_v49 = vpop.f32.mrf.mxu1  ;;  %12227 = vst [vmem:[#allocation4_spill] sm:$0xff] %v11414_v1 }
 0x4f7   : > { %12222 = vst [vmem:[#allocation37_spill] sm:$0xff] %v11404_v49  ;;  %v11420_v31 = vpop.f32.mrf.mxu0 }
 0x4f8   : > { %v11406_v15 = vpop.f32.mrf.mxu1  ;;  %12230 = vst [vmem:[#allocation63_spill] sm:$0xff] %v11420_v31 }
 0x4f9   : > { %12223 = vst [vmem:[#allocation41_spill] sm:$0xff] %v11406_v15  ;;  %v11426_v49 = vpop.f32.mrf.mxu0 }
 0x4fa   : > { %v11410_v59 = vpop.f32.mrf.mxu1  ;;  %12233 = vst [vmem:[#allocation66_spill] sm:$0xff] %v11426_v49 }
 0x4fb   : > { %12225 = vst [vmem:[#allocation56_spill] sm:$0xff] %v11410_v59  ;;  %v11432_v59 = vpop.f32.mrf.mxu0 }
 0x4fc   : > { %v11412_v20 = vpop.f32.mrf.mxu1  ;;  %12236 = vst [vmem:[#allocation69_spill] sm:$0xff] %v11432_v59 }
 0x4fd   : > { %12226 = vst [vmem:[#allocation3_spill] sm:$0xff] %v11412_v20 }
 0x4fe   : > { %v11416_v52 = vpop.f32.mrf.mxu1 }
 0x4ff   : > { %12228 = vst [vmem:[#allocation62_spill] sm:$0xff] %v11416_v52 }
 0x500   : > { %v11418_v55 = vpop.f32.mrf.mxu1 }
 0x501   : > { %12229 = vst [vmem:[#allocation61_spill] sm:$0xff] %v11418_v55  ;;  %v11437_v55 = vpop.f32.mrf.mxu0 }
 0x502   : > { %v11422_v9 = vpop.f32.mrf.mxu1 }
 0x503   : > { %12231 = vst [vmem:[#allocation64_spill] sm:$0xff] %v11422_v9 }
 0x504   : > { %v11424_v0 = vpop.f32.mrf.mxu1 }
 0x505   : > { %12232 = vst [vmem:[#allocation65_spill] sm:$0xff] %v11424_v0 }
 0x506   : > { %v11428_v15 = vpop.f32.mrf.mxu1 }
 0x507   : > { %12234 = vst [vmem:[#allocation67_spill] sm:$0xff] %v11428_v15  ;;  %v11445_v15 = vpop.f32.mrf.mxu0 }
 0x508   : > { %v11430_v30 = vpop.f32.mrf.mxu1 }
 0x509   : > { %12235 = vst [vmem:[#allocation68_spill] sm:$0xff] %v11430_v30 }
 0x50a   : > { %v7858_v20 = vpop.f32.mrf.mxu1 }
 0x50b   : > { %v11435_v1 = vadd.f32 %v7858_v20, %v11334_v26 }
 0x50c   : > { %v5012_v52 = vpop.f32.mrf.mxu1 }
 0x50d   : > { %12237 = vst [vmem:[#allocation70_spill] sm:$0xff] %v11435_v1  ;;  %v11440_v31 = vadd.f32 %v5012_v52, %v11337_v27  ;;  %v11453_v1 = vpop.f32.mrf.mxu0 }
 0x50e   : > { %v7859_v9 = vpop.f32.mrf.mxu1 }
 0x50f   : > { %v11443_v0 = vadd.f32 %v7859_v9, %v11340_v21 }
 0x510   : > { %v5015_v49 = vpop.f32.mrf.mxu1 }
 0x511   : > { %12238 = vst [vmem:[#allocation71_spill] sm:$0xff] %v11443_v0  ;;  %v11448_v30 = vadd.f32 %v5015_v49, %v11343_v23  ;;  %v11461_v0 = vpop.f32.mrf.mxu0 }
 0x512   : > { %v7862_v59 = vpop.f32.mrf.mxu1 }
 0x513   : > { %v11451_v26 = vadd.f32 %v7862_v59, %v11346_v56  ;;  %v4698_v56 = vadd.f32 %v11177_v40, %v11253_v28 }
 0x514   : > { %v5028_v20 = vpop.f32.mrf.mxu1 }
 0x515   : > { %12239 = vst [vmem:[#allocation72_spill] sm:$0xff] %v11451_v26  ;;  %v11456_v27 = vadd.f32 %v5028_v20, %v11351_v63  ;;  %v5061_v63 = vadd.f32 %v7838_v58, %v4698_v56  ;;  %v4696_v20 = vadd.f32 %v11186_v5, %v11260_v43  ;;  %v4697_v58 = vadd.f32 %v11207_v3, %v11270_v54 }
 0x516   : > { %v7863_v52 = vpop.f32.mrf.mxu1 }
 0x517   : > { %v11459_v21 = vadd.f32 %v7863_v52, %v11356_v7  ;;  %v11473_v7 = vpop.f32.mrf.mxu0  ;;  %v5791_v43 = vadd.f32 %v11348_v8, %v5061_v63  ;;  %v4703_v8 = vadd.f32 %v11226_v51, %v11285_v17  ;;  %v4704_v51 = vadd.f32 %v11244_v12, %v11300_v2  ;;  %v12241_v63 = vld [vmem:[#allocation43_spill] sm:$0xff] }
 0x518   : > { %v5031_v9 = vpop.f32.mrf.mxu1  ;;  %v4710_v12 = vadd.f32 %v11262_v61, %v11309_v60 }
 0x519   : > { %12240 = vst [vmem:[#allocation73_spill] sm:$0xff] %v11459_v21  ;;  %v11464_v23 = vadd.f32 %v5031_v9, %v11359_v19  ;;  %v5059_v19 = vadd.f32 %v4932_v62, %v4696_v20  ;;  %v4699_v9 = vadd.f32 %v11196_v45, %v11265_v46  ;;  %v11496_v45 = vld [vmem:[%s11907_s6] ss:$0 sm:$0xff]  ;;  %v12243_v20 = vld [vmem:[#allocation59_spill] sm:$0xff] }
 0x51a   : > { %v7866_v49 = vpop.f32.mrf.mxu1 }
 0x51b   : > { %v11469_v59 = vadd.f32 %v7866_v49, %v11364_v11  ;;  %v5062_v11 = vadd.f32 %v7839_v29, %v4699_v9  ;;  %v11485_v49 = vpop.f32.mrf.mxu0  ;;  %v5789_v3 = vadd.f32 %v11353_v42, %v5059_v19 }
 0x51c   : > { %v5044_v26 = vpop.f32.mrf.mxu1 }
 0x51d   : > { %v11476_v52 = vadd.f32 %v5044_v26, %v11367_v33  ;;  %v4702_v33 = vadd.f32 %v11213_v13, %v11275_v6  ;;  %v4701_v6 = vadd.f32 %v11232_v44, %v11290_v39  ;;  %v11507_v29 = vpop.f32.mrf.mxu0  ;;  %v5792_v42 = vadd.f32 %v11361_v38, %v5062_v11  ;;  %v12244_v11 = vld [vmem:[#allocation38_spill] sm:$0xff] }
 0x51e   : > { %v7867_v21 = vpop.f32.mrf.mxu1 }
 0x51f   : > { %v11481_v40 = vadd.f32 %v7867_v21, %v11372_v24  ;;  %v5060_v24 = vadd.f32 %v11382_v34, %v4697_v58  ;;  %v5065_v54 = vadd.f32 %v11386_v32, %v4702_v33  ;;  %v11531_v2 = vpop.f32.mrf.mxu0 }
 0x520   : > { %v5047_v28 = vpop.f32.mrf.mxu1 }
 0x521   : > { %v11488_v5 = vadd.f32 %v5047_v28, %v11374_v25  ;;  %v4700_v25 = vadd.f32 %v11219_v53, %v11280_v50  ;;  %v4706_v53 = vadd.f32 %v11238_v47, %v11295_v48  ;;  %v4707_v50 = vadd.f32 %v11250_v22, %v11303_v37 }
 0x522   : > { %v7906_v46 = vpop.f32.mrf.mxu1  ;;  %v5790_v38 = vadd.f32 %v11369_v41, %v5060_v24  ;;  %v4705_v47 = vadd.f32 %v11257_v16, %v11306_v18  ;;  %v5795_v22 = vadd.f32 %v11376_v57, %v5065_v54  ;;  %v4708_v16 = vadd.f32 %v12241_v63, %v11312_v14  ;;  %v12242_v18 = vld [vmem:[#allocation46_spill] sm:$0xff]  ;;  %v12248_v14 = vld [vmem:[#allocation44_spill] sm:$0xff]  ;;  %v12256_v63 = vld [vmem:[#allocation37_spill] sm:$0xff] }
 0x523   : > { %v6265_v62 = vadd.f32 %v7906_v46, %v5791_v43  ;;  %v5063_v32 = vadd.f32 %v11388_v35, %v4700_v25  ;;  %v5066_v35 = vadd.f32 %v11392_v10, %v4703_v8  ;;  %v5064_v10 = vadd.f32 %v11394_v4, %v4701_v6  ;;  %v12245_v43 = vld [vmem:[#allocation55_spill] sm:$0xff]  ;;  %v12246_v4 = vld [vmem:[#allocation60_spill] sm:$0xff]  ;;  %v11553_v25 = vpop.f32.mrf.mxu0  ;;  %v12250_v6 = vld [vmem:[#allocation53_spill] sm:$0xff] }
 0x524   : > { %v6136_v13 = vpop.f32.mrf.mxu1  ;;  %v4711_v61 = vadd.f32 %v12243_v20, %v12242_v18  ;;  %v5069_v58 = vadd.f32 %v12244_v11, %v4706_v53  ;;  %v4709_v33 = vadd.f32 %v12246_v4, %v12245_v43  ;;  %v12247_v46 = vld [vmem:[#allocation47_spill] sm:$0xff]  ;;  %v5070_v18 = vadd.f32 %v12256_v63, %v4707_v50  ;;  %v12257_v20 = vld [vmem:[#allocation41_spill] sm:$0xff] }
 0x525   : > { %v11510_v26 = vadd.f32 %v11496_v45, %v6265_v62  ;;  %v6263_v34 = vadd.f32 %v6136_v13, %v5789_v3  ;;  %v5793_v57 = vadd.f32 %v11378_v36, %v5063_v32  ;;  %v4714_v24 = vadd.f32 %v12248_v14, %v12247_v46  ;;  %v12249_v3 = vld [vmem:[#allocation49_spill] sm:$0xff]  ;;  %v12252_v32 = vld [vmem:[#allocation52_spill] sm:$0xff]  ;;  %v11573_v43 = vpop.f32.mrf.mxu0  ;;  %v12260_v14 = vld [vmem:[#allocation3_spill] sm:$0xff] }
 0x526   : > { %v7907_v44 = vpop.f32.mrf.mxu1  ;;  %v5796_v54 = vadd.f32 %v12249_v3, %v5066_v35  ;;  %v12261_v3 = vld [vmem:[#allocation62_spill] sm:$0xff] }
 0x527   : > { %v7279_v17 = vmul.f32 -1.442695, %v11510_v26  ;;  %v11522_v39 = vadd.f32 %v11496_v45, %v6263_v34  ;;  %v6266_v21 = vadd.f32 %v7907_v44, %v5792_v42  ;;  %v5067_v34 = vadd.f32 %v12250_v6, %v4704_v51  ;;  %v12251_v42 = vld [vmem:[#allocation57_spill] sm:$0xff]  ;;  %v12253_v44 = vld [vmem:[#allocation48_spill] sm:$0xff]  ;;  %v11592_v63 = vpop.f32.mrf.mxu0 }
 0x528   : > { %v6139_v48 = vpop.f32.mrf.mxu1  ;;  %v4712_v53 = vadd.f32 %v12252_v32, %v12251_v42  ;;  %v5068_v51 = vadd.f32 %v12257_v20, %v4705_v47  ;;  %v5074_v50 = vadd.f32 %v12261_v3, %v4711_v61  ;;  %v12263_v47 = vld [vmem:[#allocation54_spill] sm:$0xff] }
 0x529   : > { %8153 = vpow2.f32 %v7279_v17  ;;  %v7277_v37 = vmul.f32 -1.442695, %v11522_v39  ;;  %v11535_v56 = vadd.f32 %v11496_v45, %v6266_v21  ;;  %v6264_v41 = vadd.f32 %v6139_v48, %v5790_v38  ;;  %v12254_v17 = vld [vmem:[#allocation45_spill] sm:$0xff]  ;;  %v12255_v48 = vld [vmem:[#allocation50_spill] sm:$0xff] }
 0x52a   : > { %v7910_v60 = vpop.f32.mrf.mxu1  ;;  %v4715_v21 = vadd.f32 %v12254_v17, %v12253_v44  ;;  %v5794_v35 = vadd.f32 %v12255_v48, %v5064_v10  ;;  %v12265_v44 = vld [vmem:[#allocation61_spill] sm:$0xff]  ;;  %v12266_v48 = vld [vmem:[#allocation40_spill] sm:$0xff] }
 0x52b   : > { %8155 = vpow2.f32 %v7277_v37  ;;  %v7280_v19 = vmul.f32 -1.442695, %v11535_v56  ;;  %v11545_v9 = vadd.f32 %v11496_v45, %v6264_v41  ;;  %v6269_v28 = vadd.f32 %v7910_v60, %v5795_v22  ;;  %v12258_v60 = vld [vmem:[#allocation56_spill] sm:$0xff] }
 0x52c   : > { %v6152_v62 = vpop.f32.mrf.mxu1  ;;  %v5072_v17 = vadd.f32 %v12265_v44, %v4709_v33  ;;  %v12270_v33 = vld [vmem:[#allocation65_spill] sm:$0xff] }
 0x52d   : > { %8157 = vpow2.f32 %v7280_v19  ;;  %v7278_v36 = vmul.f32 -1.442695, %v11545_v9  ;;  %v11557_v8 = vadd.f32 %v11496_v45, %v6269_v28  ;;  %v6267_v13 = vadd.f32 %v6152_v62, %v5793_v57  ;;  %v12259_v28 = vld [vmem:[#allocation39_spill] sm:$0xff] }
 0x52e   : > { %v7911_v38 = vpop.f32.mrf.mxu1  ;;  %v5073_v57 = vadd.f32 %v12258_v60, %v4710_v12  ;;  %v5799_v11 = vadd.f32 %v12259_v28, %v5069_v58  ;;  %v5071_v62 = vadd.f32 %v12260_v14, %v4708_v16  ;;  %v5800_v16 = vadd.f32 %v12266_v48, %v5070_v18  ;;  %v12269_v28 = vld [vmem:[#allocation64_spill] sm:$0xff]  ;;  %v12271_v18 = vld [vmem:[#allocation63_spill] sm:$0xff]  ;;  %v11609_v48 = vpop.f32.mrf.mxu0 }
 0x52f   : > { %8159 = vpow2.f32 %v7278_v36  ;;  %v7283_v22 = vmul.f32 -1.442695, %v11557_v8  ;;  %v11567_v37 = vadd.f32 %v11496_v45, %v6267_v13  ;;  %v6270_v41 = vadd.f32 %v7911_v38, %v5796_v54  ;;  %v12262_v54 = vld [vmem:[#allocation58_spill] sm:$0xff]  ;;  %v12264_v13 = vld [vmem:[#allocation51_spill] sm:$0xff] }
 0x530   : > { %v6155_v19 = vpop.f32.mrf.mxu1  ;;  %v4713_v36 = vadd.f32 %v12263_v47, %v12262_v54  ;;  %v5797_v6 = vadd.f32 %v12264_v13, %v5067_v34  ;;  %v5801_v14 = vadd.f32 %v12271_v18, %v5071_v62  ;;  %v12273_v13 = vld [vmem:[#allocation67_spill] sm:$0xff] }
 0x531   : > { %8161 = vpow2.f32 %v7283_v22  ;;  %v7281_v10 = vmul.f32 -1.442695, %v11567_v37  ;;  %v11577_v4 = vadd.f32 %v11496_v45, %v6270_v41  ;;  %v6268_v46 = vadd.f32 %v6155_v19, %v5794_v35  ;;  %v12267_v35 = vld [vmem:[#allocation42_spill] sm:$0xff]  ;;  %v12268_v22 = vld [vmem:[#allocation4_spill] sm:$0xff] }
 0x532   : > { %v7914_v12 = vpop.f32.mrf.mxu1  ;;  %v5798_v61 = vadd.f32 %v12267_v35, %v5068_v51  ;;  %v5803_v41 = vadd.f32 %v12268_v22, %v5073_v57  ;;  %v12272_v51 = vld [vmem:[#allocation66_spill] sm:$0xff] }
 0x533   : > { %8163 = vpow2.f32 %v7281_v10  ;;  %v7284_v58 = vmul.f32 -1.442695, %v11577_v4  ;;  %v11586_v42 = vadd.f32 %v11496_v45, %v6268_v46  ;;  %v6273_v32 = vadd.f32 %v7914_v12, %v5799_v11 }
 0x534   : > { %v6168_v38 = vpop.f32.mrf.mxu1  ;;  %v5077_v11 = vadd.f32 %v12269_v28, %v4714_v24  ;;  %v5075_v10 = vadd.f32 %v12270_v33, %v4712_v53  ;;  %v5804_v3 = vadd.f32 %v12272_v51, %v5074_v50  ;;  %v12275_v53 = vld [vmem:[#allocation69_spill] sm:$0xff] }
 0x535   : > { %8165 = vpow2.f32 %v7284_v58  ;;  %v7282_v34 = vmul.f32 -1.442695, %v11586_v42  ;;  %v11596_v20 = vadd.f32 %v11496_v45, %v6273_v32  ;;  %v6271_v60 = vadd.f32 %v6168_v38, %v5797_v6  ;;  %v12274_v58 = vld [vmem:[#allocation68_spill] sm:$0xff] }
 0x536   : > { %v8154_v19 = vpop.eup %8153  ;;  %v7915_v46 = vpop.f32.mrf.mxu1  ;;  %v5078_v6 = vadd.f32 %v12273_v13, %v4715_v21  ;;  %v5076_v32 = vadd.f32 %v12274_v58, %v4713_v36  ;;  %v5802_v38 = vadd.f32 %v12275_v53, %v5072_v17  ;;  %v5807_v21 = vadd.f32 %v11437_v55, %v5077_v11 }
 0x537   : > { %v6431_v57 = vadd.f32 1.0, %v8154_v19  ;;  %8167 = vpow2.f32 %v7282_v34  ;;  %v7287_v54 = vmul.f32 -1.442695, %v11596_v20  ;;  %v11604_v47 = vadd.f32 %v11496_v45, %v6271_v60 }
 0x538   : > { %v8156_v12 = vpop.eup %8155  ;;  %v6274_v24 = vadd.f32 %v7915_v46, %v5800_v16  ;;  %v6171_v44 = vpop.f32.mrf.mxu1  ;;  %v5805_v36 = vadd.f32 %v11445_v15, %v5075_v10  ;;  %v5808_v18 = vadd.f32 %v11453_v1, %v5078_v6  ;;  %v11623_v51 = vadd.f32 %v11461_v0, %v5076_v32 }
 0x539   : > { %8169 = vrcp.f32 %v6431_v57  ;;  %v6429_v62 = vadd.f32 1.0, %v8156_v12  ;;  %v7285_v50 = vmul.f32 -1.442695, %v11604_v47  ;;  %v6272_v35 = vadd.f32 %v6171_v44, %v5798_v61  ;;  %v7900_v16 = vpop.f32.mrf.mxu0  ;;  %v12277_v44 = vld [vmem:[#allocation71_spill] sm:$0xff] }
 0x53a   : > { %v8158_v22 = vpop.eup %8157  ;;  %8171 = vpow2.f32 %v7287_v54  ;;  %v11613_v34 = vadd.f32 %v11496_v45, %v6274_v24  ;;  %v7918_v60 = vpop.f32.mrf.mxu1  ;;  %v12276_v54 = vld [vmem:[#allocation70_spill] sm:$0xff]  ;;  %v11635_v1 = vadd.f32 %v11485_v49, %v11440_v31  ;;  %v11647_v31 = vadd.f32 %v11531_v2, %v11448_v30 }
 0x53b   : > { %8173 = vrcp.f32 %v6429_v62  ;;  %v6432_v17 = vadd.f32 1.0, %v8158_v22  ;;  %v11618_v19 = vadd.f32 %v11496_v45, %v6272_v35  ;;  %v6277_v28 = vadd.f32 %v7918_v60, %v5803_v41  ;;  %v5774_v0 = vpop.f32.mrf.mxu0  ;;  %v12278_v22 = vld [vmem:[#allocation72_spill] sm:$0xff] }
 0x53c   : > { %v8160_v33 = vpop.eup %8159  ;;  %8175 = vpow2.f32 %v7285_v50  ;;  %v7288_v61 = vmul.f32 -1.442695, %v11613_v34  ;;  %v6184_v46 = vpop.f32.mrf.mxu1  ;;  %v11631_v12 = vadd.f32 %v11473_v7, %v12276_v54  ;;  %v11643_v7 = vadd.f32 %v11507_v29, %v12277_v44 }
 0x53d   : > { %8177 = vrcp.f32 %v6432_v17  ;;  %v6430_v55 = vadd.f32 1.0, %v8160_v33  ;;  %v7286_v15 = vmul.f32 -1.442695, %v11618_v19  ;;  %v11627_v11 = vadd.f32 %v11496_v45, %v6277_v28  ;;  %v7901_v30 = vpop.f32.mrf.mxu0 }
 0x53e   : > { %v8162_v10 = vpop.eup %8161  ;;  %8179 = vpow2.f32 %v7288_v61  ;;  %v6275_v41 = vadd.f32 %v6184_v46, %v5801_v14  ;;  %v7919_v57 = vpop.f32.mrf.mxu1  ;;  %v11655_v60 = vadd.f32 %v11553_v25, %v12278_v22  ;;  %v11659_v29 = vadd.f32 %v11573_v43, %v11456_v27  ;;  %v12279_v46 = vld [vmem:[#allocation73_spill] sm:$0xff] }
 0x53f   : > { %8181 = vrcp.f32 %v6430_v55  ;;  %v6435_v13 = vadd.f32 1.0, %v8162_v10  ;;  %v7291_v6 = vmul.f32 -1.442695, %v11627_v11  ;;  %v6278_v58 = vadd.f32 %v7919_v57, %v5804_v3  ;;  %v12281_v22 = vld [vmem:[#allocation5_spill] sm:$0xff] }
 0x540   : > { %v8164_v32 = vpop.eup %8163  ;;  %8183 = vpow2.f32 %v7286_v15  ;;  %v11639_v24 = vadd.f32 %v11496_v45, %v6275_v41  ;;  %v6187_v14 = vpop.f32.mrf.mxu1  ;;  %v11667_v25 = vadd.f32 %v11592_v63, %v12279_v46  ;;  %v11671_v27 = vadd.f32 %v11609_v48, %v11464_v23 }
 0x541   : > { %8185 = vrcp.f32 %v6435_v13  ;;  %v6433_v49 = vadd.f32 1.0, %v8164_v32  ;;  %v11650_v53 = vadd.f32 %v11496_v45, %v6278_v58  ;;  %v6276_v3 = vadd.f32 %v6187_v14, %v5802_v38  ;;  %v5777_v23 = vpop.f32.mrf.mxu0  ;;  %v12280_v32 = vld [vmem:[#allocation7_spill] sm:$0xff] }
 0x542   : > { %v8166_v62 = vpop.eup %8165  ;;  %8187 = vpow2.f32 %v7291_v6  ;;  %v7289_v50 = vmul.f32 -1.442695, %v11639_v24  ;;  %v7922_v35 = vpop.f32.mrf.mxu1  ;;  %v11675_v41 = vadd.f32 %v7900_v16, %v11469_v59  ;;  %v11688_v16 = vadd.f32 %v7901_v30, %v11481_v40 }
 0x543   : > { %8189 = vrcp.f32 %v6433_v49  ;;  %v6436_v2 = vadd.f32 1.0, %v8166_v62  ;;  %v7292_v17 = vmul.f32 -1.442695, %v11650_v53  ;;  %v11663_v38 = vadd.f32 %v11496_v45, %v6276_v3 }
 0x544   : > { %v8168_v28 = vpop.eup %8167  ;;  %8191 = vpow2.f32 %v7289_v50  ;;  %v6281_v33 = vadd.f32 %v7922_v35, %v5807_v21  ;;  %v6200_v61 = vpop.f32.mrf.mxu1  ;;  %v11678_v21 = vadd.f32 %v5774_v0, %v11476_v52  ;;  %v11705_v40 = vadd.f32 %v5777_v23, %v11488_v5 }
 0x545   : > { %8193 = vrcp.f32 %v6436_v2  ;;  %v6434_v43 = vadd.f32 1.0, %v8168_v28  ;;  %v7290_v55 = vmul.f32 -1.442695, %v11663_v38  ;;  %v6279_v15 = vadd.f32 %v6200_v61, %v5805_v36 }
 0x546   : > { %v8170_v10 = vpop.eup %8169  ;;  %8195 = vpow2.f32 %v7292_v17  ;;  %v11681_v63 = vadd.f32 %v11496_v45, %v6281_v33  ;;  %v7923_v57 = vpop.f32.mrf.mxu1 }
 0x547   : > { %v8172_v54 = vpop.eup %8171  ;;  %v6527_v48 = vmul.f32 %v8170_v10, %v11510_v26  ;;  %8197 = vrcp.f32 %v6434_v43  ;;  %v11685_v36 = vadd.f32 %v11496_v45, %v6279_v15  ;;  %v6282_v13 = vadd.f32 %v7923_v57, %v5808_v18  ;;  %v12282_v43 = vld [vmem:[#allocation8_spill] sm:$0xff] }
 0x548   : > { %v8174_v59 = vpop.eup %8173  ;;  %v6439_v52 = vadd.f32 1.0, %v8172_v54  ;;  %8199 = vpow2.f32 %v7290_v55  ;;  %v7295_v0 = vmul.f32 -1.442695, %v11681_v63  ;;  %v6203_v6 = vpop.f32.mrf.mxu1 }
 0x549   : > { %v8176_v58 = vpop.eup %8175  ;;  %v6559_v14 = vadd.f32 %v6527_v48, %v12280_v32  ;;  %v6525_v26 = vmul.f32 %v8174_v59, %v11522_v39  ;;  %v7293_v44 = vmul.f32 -1.442695, %v11685_v36  ;;  %v11695_v49 = vadd.f32 %v11496_v45, %v6282_v13  ;;  %v12283_v59 = vld [vmem:[#allocation6_spill] sm:$0xff] }
 0x54a   : > { %v8178_v18 = vpop.eup %8177  ;;  %8201 = vrcp.f32 %v6439_v52  ;;  %v6437_v3 = vadd.f32 1.0, %v8176_v58  ;;  %v6280_v39 = vadd.f32 %v6203_v6, %v11623_v51  ;;  %v7926_v62 = vpop.f32.mrf.mxu1 }
 0x54b   : > { %v8180_v50 = vpop.eup %8179  ;;  %v7379_v35 = vpack.c.bf16 %v6559_v14, %v6559_v14  ;;  %v6557_v30 = vadd.f32 %v6525_v26, %v12281_v22  ;;  %v6528_v2 = vmul.f32 %v8178_v18, %v11535_v56  ;;  %8203 = vpow2.f32 %v7295_v0 }
 0x54c   : > { %v8182_v17 = vpop.eup %8181  ;;  %8205 = vrcp.f32 %v6437_v3  ;;  %v6440_v28 = vadd.f32 1.0, %v8180_v50  ;;  %v7296_v33 = vmul.f32 -1.442695, %v11695_v49  ;;  %v11712_v5 = vadd.f32 %v11496_v45, %v6280_v39  ;;  %v6216_v61 = vpop.f32.mrf.mxu1 }
 0x54d   : > { %v8184_v46 = vpop.eup %8183  ;;  %6719 = vst.msk [vmem:[%s11702_s19 + $0x8] sm:$0xf] %vm1110_vm1, %v7379_v35  ;;  %v7377_v51 = vpack.c.bf16 %v6557_v30, %v6557_v30  ;;  %v6560_v55 = vadd.f32 %v6528_v2, %v12282_v43  ;;  %v6526_v15 = vmul.f32 %v8182_v17, %v11545_v9  ;;  %8207 = vpow2.f32 %v7293_v44  ;;  %v12284_v44 = vld [vmem:[#allocation11_spill] sm:$0xff]  ;;  %v12285_v30 = vld [vmem:[#allocation9_spill] sm:$0xff] }
 0x54e   : > { %v8186_v56 = vpop.eup %8185  ;;  %8209 = vrcp.f32 %v6440_v28  ;;  %v6438_v10 = vadd.f32 1.0, %v8184_v46  ;;  %v7294_v57 = vmul.f32 -1.442695, %v11712_v5  ;;  %v6285_v54 = vadd.f32 %v7926_v62, %v11631_v12  ;;  %v7927_v23 = vpop.f32.mrf.mxu1 }
 0x54f   : > { %v8188_v48 = vpop.eup %8187  ;;  %6717 = vst.msk [vmem:[%s11702_s19] sm:$0xf] %vm1110_vm1, %v7377_v51  ;;  %v7380_v13 = vpack.c.bf16 %v6560_v55, %v6560_v55  ;;  %v6558_v52 = vadd.f32 %v6526_v15, %v12283_v59  ;;  %v6531_v0 = vmul.f32 %v8186_v56, %v11557_v8  ;;  %8211 = vpow2.f32 %v7296_v33  ;;  %v12286_v15 = vld [vmem:[#allocation12_spill] sm:$0xff] }
 0x550   : > { %v8190_v9 = vpop.eup %8189  ;;  %8213 = vrcp.f32 %v6438_v10  ;;  %v6443_v6 = vadd.f32 1.0, %v8188_v48  ;;  %v11725_v58 = vadd.f32 %v11496_v45, %v6285_v54  ;;  %v6283_v32 = vadd.f32 %v6216_v61, %v11635_v1  ;;  %v6219_v12 = vpop.f32.mrf.mxu1  ;;  %v12287_v48 = vld [vmem:[#allocation10_spill] sm:$0xff] }
 0x551   : > { %v8192_v14 = vpop.eup %8191  ;;  %6720 = vst.msk [vmem:[%s11702_s19 + $0xc] sm:$0xf] %vm1110_vm1, %v7380_v13  ;;  %v7378_v26 = vpack.c.bf16 %v6558_v52, %v6558_v52  ;;  %v6563_v18 = vadd.f32 %v6531_v0, %v12284_v44  ;;  %v6529_v3 = vmul.f32 %v8190_v9, %v11567_v37  ;;  %8215 = vpow2.f32 %v7294_v57 }
 0x552   : > { %v8194_v8 = vpop.eup %8193  ;;  %8217 = vrcp.f32 %v6443_v6  ;;  %v6441_v39 = vadd.f32 1.0, %v8192_v14  ;;  %v7299_v62 = vmul.f32 -1.442695, %v11725_v58  ;;  %v11734_v50 = vadd.f32 %v11496_v45, %v6283_v32  ;;  %v7930_v1 = vpop.f32.mrf.mxu1 }
 0x553   : > { %v8196_v35 = vpop.eup %8195  ;;  %6718 = vst.msk [vmem:[%s11702_s19 + $0x4] sm:$0xf] %vm1110_vm1, %v7378_v26  ;;  %v7383_v22 = vpack.c.bf16 %v6563_v18, %v6563_v18  ;;  %v6561_v2 = vadd.f32 %v6529_v3, %v12285_v30  ;;  %v6532_v17 = vmul.f32 %v8194_v8, %v11577_v4  ;;  %v6286_v37 = vadd.f32 %v7927_v23, %v11643_v7  ;;  %v12288_v18 = vld [vmem:[#allocation15_spill] sm:$0xff] }
 0x554   : > { %v8198_v28 = vpop.eup %8197  ;;  %8219 = vrcp.f32 %v6441_v39  ;;  %v6444_v33 = vadd.f32 1.0, %v8196_v35  ;;  %v7297_v61 = vmul.f32 -1.442695, %v11734_v50  ;;  %v6284_v46 = vadd.f32 %v6219_v12, %v11647_v31  ;;  %v6232_v51 = vpop.f32.mrf.mxu1 }
 0x555   : > { %v8200_v43 = vpop.eup %8199  ;;  %6723 = vst.msk [vmem:[%s11702_s19 + $0x18] sm:$0xf] %vm1110_vm1, %v7383_v22  ;;  %v7381_v55 = vpack.c.bf16 %v6561_v2, %v6561_v2  ;;  %v6564_v56 = vadd.f32 %v6532_v17, %v12286_v15  ;;  %v6530_v10 = vmul.f32 %v8198_v28, %v11586_v42  ;;  %8221 = vpow2.f32 %v7299_v62  ;;  %v12289_v2 = vld [vmem:[#allocation13_spill] sm:$0xff] }
 0x556   : > { %8223 = vrcp.f32 %v6444_v33  ;;  %v6442_v4 = vadd.f32 1.0, %v8200_v43  ;;  %v11748_v7 = vadd.f32 %v11496_v45, %v6286_v37  ;;  %v11751_v57 = vadd.f32 %v11496_v45, %v6284_v46  ;;  %v7931_v31 = vpop.f32.mrf.mxu1  ;;  %v12290_v43 = vld [vmem:[#allocation16_spill] sm:$0xff] }
 0x557   : > { %v8202_v54 = vpop.eup %8201  ;;  %6721 = vst.msk [vmem:[%s11702_s19 + $0x10] sm:$0xf] %vm1110_vm1, %v7381_v55  ;;  %v7384_v23 = vpack.c.bf16 %v6564_v56, %v6564_v56  ;;  %v6562_v13 = vadd.f32 %v6530_v10, %v12287_v48  ;;  %8225 = vpow2.f32 %v7297_v61  ;;  %v6289_v42 = vadd.f32 %v7930_v1, %v11655_v60 }
 0x558   : > { %v8204_v59 = vpop.eup %8203  ;;  %v6535_v52 = vmul.f32 %v8202_v54, %v11596_v20  ;;  %8227 = vrcp.f32 %v6442_v4  ;;  %v7300_v0 = vmul.f32 -1.442695, %v11748_v7  ;;  %v7298_v9 = vmul.f32 -1.442695, %v11751_v57  ;;  %v6235_v6 = vpop.f32.mrf.mxu1  ;;  %v12291_v54 = vld [vmem:[#allocation14_spill] sm:$0xff] }
 0x559   : > { %v8206_v32 = vpop.eup %8205  ;;  %6724 = vst.msk [vmem:[%s11702_s19 + $0x1c] sm:$0xf] %vm1110_vm1, %v7384_v23  ;;  %v7382_v12 = vpack.c.bf16 %v6562_v13, %v6562_v13  ;;  %v6447_v14 = vadd.f32 1.0, %v8204_v59  ;;  %v11763_v26 = vadd.f32 %v11496_v45, %v6289_v42  ;;  %v6287_v60 = vadd.f32 %v6232_v51, %v11659_v29 }
 0x55a   : > { %v8208_v44 = vpop.eup %8207  ;;  %v6567_v20 = vadd.f32 %v6535_v52, %v12288_v18  ;;  %v6533_v3 = vmul.f32 %v8206_v32, %v11604_v47  ;;  %8229 = vpow2.f32 %v7300_v0  ;;  %v6290_v8 = vadd.f32 %v7931_v31, %v11667_v25  ;;  %v7934_v39 = vpop.f32.mrf.mxu1  ;;  %v12293_v18 = vld [vmem:[#allocation17_spill] sm:$0xff] }
 0x55b   : > { %v8210_v62 = vpop.eup %8209  ;;  %6722 = vst.msk [vmem:[%s11702_s19 + $0x14] sm:$0xf] %vm1110_vm1, %v7382_v12  ;;  %8231 = vrcp.f32 %v6447_v14  ;;  %v6445_v1 = vadd.f32 1.0, %v8208_v44  ;;  %v7303_v35 = vmul.f32 -1.442695, %v11763_v26  ;;  %v11773_v22 = vadd.f32 %v11496_v45, %v6287_v60 }
 0x55c   : > { %v8212_v29 = vpop.eup %8211  ;;  %v7387_v30 = vpack.c.bf16 %v6567_v20, %v6567_v20  ;;  %v6565_v17 = vadd.f32 %v6533_v3, %v12289_v2  ;;  %v6536_v47 = vmul.f32 %v8210_v62, %v11613_v34  ;;  %8233 = vpow2.f32 %v7298_v9  ;;  %v6248_v25 = vpop.f32.mrf.mxu1  ;;  %v12292_v9 = vld [vmem:[#allocation19_spill] sm:$0xff] }
 0x55d   : > { %v8214_v37 = vpop.eup %8213  ;;  %8235 = vrcp.f32 %v6445_v1  ;;  %v6448_v28 = vadd.f32 1.0, %v8212_v29  ;;  %v7301_v33 = vmul.f32 -1.442695, %v11773_v22  ;;  %v11779_v61 = vadd.f32 %v11496_v45, %v6290_v8 }
 0x55e   : > { %v8216_v46 = vpop.eup %8215  ;;  %6727 = vst.msk [vmem:[%s11702_s19 + $0x28] sm:$0xf] %vm1110_vm1, %v7387_v30  ;;  %v7385_v51 = vpack.c.bf16 %v6565_v17, %v6565_v17  ;;  %v6568_v55 = vadd.f32 %v6536_v47, %v12290_v43  ;;  %v6534_v15 = vmul.f32 %v8214_v37, %v11618_v19  ;;  %8237 = vpow2.f32 %v7303_v35  ;;  %v7935_v13 = vpop.f32.mrf.mxu1  ;;  %v12294_v30 = vld [vmem:[#allocation20_spill] sm:$0xff] }
 0x55f   : > { %v8218_v34 = vpop.eup %8217  ;;  %8239 = vrcp.f32 %v6448_v28  ;;  %v6446_v56 = vadd.f32 1.0, %v8216_v46  ;;  %v7304_v10 = vmul.f32 -1.442695, %v11779_v61  ;;  %v6288_v4 = vadd.f32 %v6235_v6, %v11671_v27  ;;  %v12295_v28 = vld [vmem:[#allocation18_spill] sm:$0xff] }
 0x560   : > { %6725 = vst.msk [vmem:[%s11702_s19 + $0x20] sm:$0xf] %vm1110_vm1, %v7385_v51  ;;  %v7388_v31 = vpack.c.bf16 %v6568_v55, %v6568_v55  ;;  %v6566_v23 = vadd.f32 %v6534_v15, %v12291_v54  ;;  %v6539_v48 = vmul.f32 %v8218_v34, %v11627_v11  ;;  %8241 = vpow2.f32 %v7301_v33  ;;  %v6251_v8 = vpop.f32.mrf.mxu1 }
 0x561   : > { %v8220_v42 = vpop.eup %8219  ;;  %8243 = vrcp.f32 %v6446_v56  ;;  %v11792_v19 = vadd.f32 %v11496_v45, %v6288_v4  ;;  %v6293_v59 = vadd.f32 %v7934_v39, %v11675_v41  ;;  %v6291_v52 = vadd.f32 %v6248_v25, %v11678_v21 }
 0x562   : > { %v8222_v27 = vpop.eup %8221  ;;  %6728 = vst.msk [vmem:[%s11702_s19 + $0x2c] sm:$0xf] %vm1110_vm1, %v7388_v31  ;;  %v7386_v0 = vpack.c.bf16 %v6566_v23, %v6566_v23  ;;  %v6571_v6 = vadd.f32 %v6539_v48, %v12292_v9  ;;  %v6537_v11 = vmul.f32 %v8220_v42, %v11639_v24  ;;  %8245 = vpow2.f32 %v7304_v10  ;;  %v12296_v10 = vld [vmem:[#allocation23_spill] sm:$0xff]  ;;  %v12298_v9 = vld [vmem:[#allocation24_spill] sm:$0xff] }
 0x563   : > { %v8224_v32 = vpop.eup %8223  ;;  %v6451_v12 = vadd.f32 1.0, %v8222_v27  ;;  %v7302_v14 = vmul.f32 -1.442695, %v11792_v19  ;;  %v11802_v60 = vadd.f32 %v11496_v45, %v6293_v59  ;;  %v11805_v41 = vadd.f32 %v11496_v45, %v6291_v52 }
 0x564   : > { %v8226_v21 = vpop.eup %8225  ;;  %6726 = vst.msk [vmem:[%s11702_s19 + $0x24] sm:$0xf] %vm1110_vm1, %v7386_v0  ;;  %v7391_v44 = vpack.c.bf16 %v6571_v6, %v6571_v6  ;;  %v6569_v20 = vadd.f32 %v6537_v11, %v12293_v18  ;;  %v6540_v24 = vmul.f32 %v8224_v32, %v11650_v53  ;;  %v6294_v3 = vadd.f32 %v7935_v13, %v11688_v16  ;;  %v12297_v13 = vld [vmem:[#allocation21_spill] sm:$0xff] }
 0x565   : > { %v8228_v39 = vpop.eup %8227  ;;  %8247 = vrcp.f32 %v6451_v12  ;;  %v6449_v62 = vadd.f32 1.0, %v8226_v21  ;;  %v7307_v1 = vmul.f32 -1.442695, %v11802_v60  ;;  %v7305_v35 = vmul.f32 -1.442695, %v11805_v41 }
 0x566   : > { %6731 = vst.msk [vmem:[%s11702_s19 + $0x38] sm:$0xf] %vm1110_vm1, %v7391_v44  ;;  %v7389_v29 = vpack.c.bf16 %v6569_v20, %v6569_v20  ;;  %v6572_v2 = vadd.f32 %v6540_v24, %v12294_v30  ;;  %v6538_v17 = vmul.f32 %v8228_v39, %v11663_v38  ;;  %8249 = vpow2.f32 %v7302_v14 }
 0x567   : > { %v8230_v53 = vpop.eup %8229  ;;  %8251 = vrcp.f32 %v6449_v62  ;;  %v11819_v16 = vadd.f32 %v11496_v45, %v6294_v3  ;;  %v6292_v47 = vadd.f32 %v6251_v8, %v11705_v40 }
 0x568   : > { %v8232_v25 = vpop.eup %8231  ;;  %6729 = vst.msk [vmem:[%s11702_s19 + $0x30] sm:$0xf] %vm1110_vm1, %v7389_v29  ;;  %v7392_v37 = vpack.c.bf16 %v6572_v2, %v6572_v2  ;;  %v6570_v33 = vadd.f32 %v6538_v17, %v12295_v28  ;;  %v6452_v46 = vadd.f32 1.0, %v8230_v53  ;;  %8253 = vpow2.f32 %v7307_v1  ;;  %v12301_v2 = vld [vmem:[#allocation25_spill] sm:$0xff] }
 0x569   : > { %v8234_v51 = vpop.eup %8233  ;;  %v6543_v38 = vmul.f32 %v8232_v25, %v11681_v63  ;;  %8255 = vpow2.f32 %v7305_v35  ;;  %v7308_v43 = vmul.f32 -1.442695, %v11819_v16  ;;  %v11828_v55 = vadd.f32 %v11496_v45, %v6292_v47 }
 0x56a   : > { %v8236_v15 = vpop.eup %8235  ;;  %6732 = vst.msk [vmem:[%s11702_s19 + $0x3c] sm:$0xf] %vm1110_vm1, %v7392_v37  ;;  %v7390_v40 = vpack.c.bf16 %v6570_v33, %v6570_v33  ;;  %8257 = vrcp.f32 %v6452_v46  ;;  %v6450_v34 = vadd.f32 1.0, %v8234_v51  ;;  %v12302_v33 = vld [vmem:[#allocation28_spill] sm:$0xff] }
 0x56b   : > { %v8238_v56 = vpop.eup %8237  ;;  %v6575_v4 = vadd.f32 %v6543_v38, %v12296_v10  ;;  %v6541_v31 = vmul.f32 %v8236_v15, %v11685_v36  ;;  %8259 = vpow2.f32 %v7308_v43  ;;  %v7306_v63 = vmul.f32 -1.442695, %v11828_v55  ;;  %v12303_v15 = vld [vmem:[#allocation26_spill] sm:$0xff] }
 0x56c   : > { %v8240_v54 = vpop.eup %8239  ;;  %6730 = vst.msk [vmem:[%s11702_s19 + $0x34] sm:$0xf] %vm1110_vm1, %v7390_v40  ;;  %8261 = vrcp.f32 %v6450_v34  ;;  %v6455_v45 = vadd.f32 1.0, %v8238_v56 }
 0x56d   : > { %v8242_v23 = vpop.eup %8241  ;;  %v7395_v48 = vpack.c.bf16 %v6575_v4, %v6575_v4  ;;  %v6573_v42 = vadd.f32 %v6541_v31, %v12297_v13  ;;  %v6544_v59 = vmul.f32 %v8240_v54, %v11695_v49  ;;  %8263 = vpow2.f32 %v7306_v63  ;;  %v12299_v49 = vld [vmem:[#allocation22_spill] sm:$0xff]  ;;  %v12304_v4 = vld [vmem:[#allocation31_spill] sm:$0xff]  ;;  %v12306_v13 = vld [vmem:[#allocation32_spill] sm:$0xff] }
 0x56e   : > { %v8244_v52 = vpop.eup %8243  ;;  %8265 = vrcp.f32 %v6455_v45  ;;  %v6453_v36 = vadd.f32 1.0, %v8242_v23  ;;  %v12305_v45 = vld [vmem:[#allocation29_spill] sm:$0xff] }
 0x56f   : > { %v8246_v27 = vpop.eup %8245  ;;  %6735 = vst.msk [vmem:[%s11702_s19 + $0x48] sm:$0xf] %vm1110_vm1, %v7395_v48  ;;  %v7393_v0 = vpack.c.bf16 %v6573_v42, %v6573_v42  ;;  %v6576_v6 = vadd.f32 %v6544_v59, %v12298_v9  ;;  %v6542_v11 = vmul.f32 %v8244_v52, %v11712_v5  ;;  %v12300_v5 = vld [vmem:[#allocation27_spill] sm:$0xff] }
 0x570   : > { %8267 = vrcp.f32 %v6453_v36  ;;  %v6456_v32 = vadd.f32 1.0, %v8246_v27 }
 0x571   : > { %6733 = vst.msk [vmem:[%s11702_s19 + $0x40] sm:$0xf] %vm1110_vm1, %v7393_v0  ;;  %v7396_v12 = vpack.c.bf16 %v6576_v6, %v6576_v6  ;;  %v6574_v14 = vadd.f32 %v6542_v11, %v12299_v49  ;;  %v12307_v0 = vld [vmem:[#allocation30_spill] sm:$0xff] }
 0x572   : > { %v8248_v21 = vpop.eup %8247  ;;  %8269 = vrcp.f32 %v6456_v32 }
 0x573   : > { %v8250_v44 = vpop.eup %8249  ;;  %6736 = vst.msk [vmem:[%s11702_s19 + $0x4c] sm:$0xf] %vm1110_vm1, %v7396_v12  ;;  %v7394_v18 = vpack.c.bf16 %v6574_v14, %v6574_v14  ;;  %v6547_v20 = vmul.f32 %v8248_v21, %v11725_v58  ;;  %v12308_v12 = vld [vmem:[#allocation35_spill] sm:$0xff]  ;;  %v12309_v14 = vld [vmem:[#allocation33_spill] sm:$0xff] }
 0x574   : > { %v8252_v24 = vpop.eup %8251  ;;  %v6454_v3 = vadd.f32 1.0, %v8250_v44 }
 0x575   : > { %v8254_v8 = vpop.eup %8253  ;;  %6734 = vst.msk [vmem:[%s11702_s19 + $0x44] sm:$0xf] %vm1110_vm1, %v7394_v18  ;;  %v6579_v39 = vadd.f32 %v6547_v20, %v12300_v5  ;;  %v6545_v62 = vmul.f32 %v8252_v24, %v11734_v50  ;;  %v12310_v24 = vld [vmem:[#allocation36_spill] sm:$0xff] }
 0x576   : > { %v8256_v1 = vpop.eup %8255  ;;  %8271 = vrcp.f32 %v6454_v3  ;;  %v6459_v35 = vadd.f32 1.0, %v8254_v8  ;;  %v12311_v8 = vld [vmem:[#allocation34_spill] sm:$0xff] }
 0x577   : > { %v8258_v29 = vpop.eup %8257  ;;  %v7399_v30 = vpack.c.bf16 %v6579_v39, %v6579_v39  ;;  %v6577_v17 = vadd.f32 %v6545_v62, %v12301_v2  ;;  %v6457_v53 = vadd.f32 1.0, %v8256_v1 }
 0x578   : > { %v8260_v58 = vpop.eup %8259  ;;  %v6548_v47 = vmul.f32 %v8258_v29, %v11748_v7  ;;  %8273 = vrcp.f32 %v6459_v35 }
 0x579   : > { %v8262_v25 = vpop.eup %8261  ;;  %6739 = vst.msk [vmem:[%s11702_s19 + $0x58] sm:$0xf] %vm1110_vm1, %v7399_v30  ;;  %v7397_v37 = vpack.c.bf16 %v6577_v17, %v6577_v17  ;;  %8275 = vrcp.f32 %v6457_v53  ;;  %v6460_v50 = vadd.f32 1.0, %v8260_v58 }
 0x57a   : > { %v8264_v28 = vpop.eup %8263  ;;  %v6580_v46 = vadd.f32 %v6548_v47, %v12302_v33  ;;  %v6546_v51 = vmul.f32 %v8262_v25, %v11751_v57 }
 0x57b   : > { %v8266_v38 = vpop.eup %8265  ;;  %6737 = vst.msk [vmem:[%s11702_s19 + $0x50] sm:$0xf] %vm1110_vm1, %v7397_v37  ;;  %8277 = vrcp.f32 %v6460_v50  ;;  %v6458_v7 = vadd.f32 1.0, %v8264_v28 }
 0x57c   : > { %v7400_v43 = vpack.c.bf16 %v6580_v46, %v6580_v46  ;;  %v6578_v40 = vadd.f32 %v6546_v51, %v12303_v15  ;;  %v6551_v34 = vmul.f32 %v8266_v38, %v11763_v26 }
 0x57d   : > { %v8268_v56 = vpop.eup %8267  ;;  %8279 = vrcp.f32 %v6458_v7 }
 0x57e   : > { %6740 = vst.msk [vmem:[%s11702_s19 + $0x5c] sm:$0xf] %vm1110_vm1, %v7400_v43  ;;  %v7398_v10 = vpack.c.bf16 %v6578_v40, %v6578_v40  ;;  %v6583_v31 = vadd.f32 %v6551_v34, %v12304_v4  ;;  %v6549_v57 = vmul.f32 %v8268_v56, %v11773_v22 }
 0x57f   : > { %v8270_v63 = vpop.eup %8269 }
 0x580   : > { %6738 = vst.msk [vmem:[%s11702_s19 + $0x54] sm:$0xf] %vm1110_vm1, %v7398_v10  ;;  %v7403_v54 = vpack.c.bf16 %v6583_v31, %v6583_v31  ;;  %v6581_v23 = vadd.f32 %v6549_v57, %v12305_v45  ;;  %v6552_v48 = vmul.f32 %v8270_v63, %v11779_v61 }
 0x582   : > { %6743 = vst.msk [vmem:[%s11702_s19 + $0x68] sm:$0xf] %vm1110_vm1, %v7403_v54  ;;  %v7401_v26 = vpack.c.bf16 %v6581_v23, %v6581_v23  ;;  %v6584_v42 = vadd.f32 %v6552_v48, %v12306_v13 }
 0x583   : > { %v8272_v59 = vpop.eup %8271 }
 0x584   : > { %6741 = vst.msk [vmem:[%s11702_s19 + $0x60] sm:$0xf] %vm1110_vm1, %v7401_v26  ;;  %v7404_v52 = vpack.c.bf16 %v6584_v42, %v6584_v42  ;;  %v6550_v22 = vmul.f32 %v8272_v59, %v11792_v19 }
 0x585   : > { %v8274_v36 = vpop.eup %8273 }
 0x586   : > { %v8276_v27 = vpop.eup %8275  ;;  %6744 = vst.msk [vmem:[%s11702_s19 + $0x6c] sm:$0xf] %vm1110_vm1, %v7404_v52  ;;  %v6582_v61 = vadd.f32 %v6550_v22, %v12307_v0  ;;  %v6555_v9 = vmul.f32 %v8274_v36, %v11802_v60 }
 0x587   : > { %v6553_v6 = vmul.f32 %v8276_v27, %v11805_v41 }
 0x588   : > { %v8278_v11 = vpop.eup %8277  ;;  %v7402_v32 = vpack.c.bf16 %v6582_v61, %v6582_v61  ;;  %v6587_v49 = vadd.f32 %v6555_v9, %v12308_v12 }
 0x589   : > { %v6585_v19 = vadd.f32 %v6553_v6, %v12309_v14  ;;  %v6556_v21 = vmul.f32 %v8278_v11, %v11819_v16 }
 0x58a   : > { %v8280_v44 = vpop.eup %8279  ;;  %6742 = vst.msk [vmem:[%s11702_s19 + $0x64] sm:$0xf] %vm1110_vm1, %v7402_v32  ;;  %v7407_v18 = vpack.c.bf16 %v6587_v49, %v6587_v49 }
 0x58b   : > { %v7405_v20 = vpack.c.bf16 %v6585_v19, %v6585_v19  ;;  %v6588_v3 = vadd.f32 %v6556_v21, %v12310_v24  ;;  %v6554_v60 = vmul.f32 %v8280_v44, %v11828_v55 }
 0x58c   : > { %6747 = vst.msk [vmem:[%s11702_s19 + $0x78] sm:$0xf] %vm1110_vm1, %v7407_v18 }
 0x58d   : > { %6745 = vst.msk [vmem:[%s11702_s19 + $0x70] sm:$0xf] %vm1110_vm1, %v7405_v20  ;;  %v7408_v41 = vpack.c.bf16 %v6588_v3, %v6588_v3  ;;  %v6586_v5 = vadd.f32 %v6554_v60, %v12311_v8 }
 0x58f   : > { %6748 = vst.msk [vmem:[%s11702_s19 + $0x7c] sm:$0xf] %vm1110_vm1, %v7408_v41  ;;  %v7406_v39 = vpack.c.bf16 %v6586_v5, %v6586_v5 }
 0x591   : > { %6746 = vst.msk [vmem:[%s11702_s19 + $0x74] sm:$0xf] %vm1110_vm1, %v7406_v39 }
 0x592 PF: > { %s17_s24 = sadd.s32 1, %s8289_s24  }
 0x593   : > { %p14_p4 = scmp.ge.s32.totalorder %s17_s24, 4  }
 0x595   :  { %16 = sbr.rel (!%p14_p4) target bundleno = 1 (0x1), region = 88 }

</bundles_post_ra>
